<compile_context>
chip_gen: v7x
topology: tpu7x:2x2x1
jax: 0.10.0
libtpu: 0.0.40
codegen_flags: <defaults>
</compile_context>

<pallas_src>
import functools

import jax
import jax.numpy as jnp
import numpy as np
from jax.experimental import pallas as pl
from jax.experimental.pallas import tpu as pltpu

LABEL_DIM = 10
LEAKY_SLOPE = 0.01                    # PyTorch nn.LeakyReLU() default
VMEM_LIMIT_BYTES = 32 * 1024 * 1024   # fits v7x's 64 MiB/TC with headroom


def _leaky(z):
    return jnp.where(z > 0, z, LEAKY_SLOPE * z)


def _pick_tile_b(batch):
    """Largest small batch tile that divides B and keeps >= 2 grid programs."""
    for tb in (4, 2):
        if batch % tb == 0 and batch // tb >= 2:
            return tb
    return 1


# ---------------------------------------------------------------------------
# The single fused kernel: fused input_x/input_y conv -> c0 -> c1 -> c2 head
# -> sigmoid, for a tile of `tile_b` samples per grid step.  All weights and
# intermediates stay in VMEM.
# ---------------------------------------------------------------------------
def _fused_disc_kernel(cols1_ref, w1_ref, b1_ref, qc0_ref, w0_ref, b0_ref,
                       qc1_ref, w1c_ref, b1c_ref, w2_ref, b2_ref, o_ref,
                       *, tile_b):
    # ---- fused input_x / input_y layer: one matmul for the whole tile ------
    h1 = jnp.dot(cols1_ref[...], w1_ref[...],
                 preferred_element_type=jnp.float32)           # (tb*256, 128)
    h1 = _leaky(h1 + b1_ref[...]).astype(jnp.bfloat16)

    qc0 = qc0_ref[...]
    w0 = w0_ref[...]
    b0 = b0_ref[...]
    qc1 = qc1_ref[...]
    w1c = w1c_ref[...]
    b1c = b1c_ref[...]
    w2 = w2_ref[...]
    b2 = b2_ref[...]

    for s in range(tile_b):
        h1_s = h1[s * 256:(s + 1) * 256, :]                    # (256,128) bf16

        # ---- c0: Conv2d(128, 64, 4, 2, 1) on the 16x16 map ------------------
        # In-kernel patch extraction: qc0 is a constant 0/1 gather matrix that
        # stacks, per kernel tap, the 8x8 stride-2 window of h1 (zero rows
        # where a tap falls in the zero-padding).
        t0 = jnp.dot(qc0, h1_s,
                     preferred_element_type=jnp.float32)       # (1024, 128)
        t0 = t0.astype(jnp.bfloat16)                           # exact copies
        acc0 = jnp.zeros((64, 64), jnp.float32)
        for p in range(16):
            acc0 = acc0 + jnp.dot(t0[p * 64:(p + 1) * 64, :],
                                  w0[p * 128:(p + 1) * 128, :],
                                  preferred_element_type=jnp.float32)
        h2 = _leaky(acc0 + b0).astype(jnp.bfloat16)            # (64, 64)

        # ---- c1: Conv2d(64, 128, 3, 2, 1) on the 8x8 map --------------------
        t1 = jnp.dot(qc1, h2,
                     preferred_element_type=jnp.float32)       # (144, 64)
        t1 = t1.astype(jnp.bfloat16)
        acc1 = jnp.zeros((16, 128), jnp.float32)
        for p in range(9):
            acc1 = acc1 + jnp.dot(t1[p * 16:(p + 1) * 16, :],
                                  w1c[p * 64:(p + 1) * 64, :],
                                  preferred_element_type=jnp.float32)
        h3 = _leaky(acc1 + b1c)                                # (16, 128) f32

        # ---- c2: Conv2d(128, 1, 4, 2, 0) on the 4x4 map == weighted sum -----
        tap = jnp.sum(h3 * w2, axis=1, keepdims=True)          # (16, 1)
        logit = jnp.sum(tap, axis=0, keepdims=True) + b2       # (1, 1)
        e = jnp.exp(-jnp.abs(logit))                           # stable sigmoid
        sig = jnp.where(logit >= 0, 1.0 / (1.0 + e), e / (1.0 + e))
        o_ref[s] = jnp.broadcast_to(sig, (1, 128)).astype(o_ref.dtype)


def _fused_forward(cols1, p, batch):
    tb = _pick_tile_b(batch)
    grid = (batch // tb,)
    k_in = cols1.shape[1]

    flops_per_sample = (
        2 * 256 * k_in * 128            # fused first layer
        + 2 * 1024 * 256 * 128          # c0 patch gather (selection matmul)
        + 16 * 2 * 64 * 128 * 64        # c0 conv taps
        + 2 * 144 * 64 * 64             # c1 patch gather
        + 9 * 2 * 16 * 64 * 128)        # c1 conv taps
    wbytes = sum(int(a.size) * a.dtype.itemsize for a in (
        p["w_in"], p["b_in"], p["qc0"], p["w_c0"], p["b_c0"],
        p["qc1"], p["w_c1"], p["b_c1"], p["w_c2"], p["b_c2"]))
    bytes_accessed = int(cols1.size * cols1.dtype.itemsize + wbytes
                         + batch * 128 * 4)

    kernel = functools.partial(_fused_disc_kernel, tile_b=tb)
    return pl.pallas_call(
        kernel,
        out_shape=jax.ShapeDtypeStruct((batch, 1, 128), jnp.float32),
        grid=grid,
        in_specs=[
            pl.BlockSpec((tb * 256, k_in), lambda i: (i, 0)),
            pl.BlockSpec(p["w_in"].shape, lambda i: (0, 0)),
            pl.BlockSpec(p["b_in"].shape, lambda i: (0, 0)),
            pl.BlockSpec(p["qc0"].shape, lambda i: (0, 0)),
            pl.BlockSpec(p["w_c0"].shape, lambda i: (0, 0)),
            pl.BlockSpec(p["b_c0"].shape, lambda i: (0, 0)),
            pl.BlockSpec(p["qc1"].shape, lambda i: (0, 0)),
            pl.BlockSpec(p["w_c1"].shape, lambda i: (0, 0)),
            pl.BlockSpec(p["b_c1"].shape, lambda i: (0, 0)),
            pl.BlockSpec(p["w_c2"].shape, lambda i: (0, 0)),
            pl.BlockSpec(p["b_c2"].shape, lambda i: (0, 0)),
        ],
        out_specs=pl.BlockSpec((tb, 1, 128), lambda i: (i, 0, 0)),
        compiler_params=pltpu.CompilerParams(
            dimension_semantics=("parallel",),
            vmem_limit_bytes=VMEM_LIMIT_BYTES),
        cost_estimate=pl.CostEstimate(
            flops=int(batch * flops_per_sample),
            transcendentals=int(batch),
            bytes_accessed=bytes_accessed),
    )(cols1, p["w_in"], p["b_in"], p["qc0"], p["w_c0"], p["b_c0"],
      p["qc1"], p["w_c1"], p["b_c1"], p["w_c2"], p["b_c2"])


# ---------------------------------------------------------------------------
# Host-side glue: first-layer im2col (pure padding/slicing) + one-time prep.
# ---------------------------------------------------------------------------
def _im2col(x_nhwc, kh, kw, stride, pad):
    n, h, w, c = x_nhwc.shape
    xp = jnp.pad(x_nhwc, ((0, 0), (pad, pad), (pad, pad), (0, 0)))
    oh = (h + 2 * pad - kh) // stride + 1
    ow = (w + 2 * pad - kw) // stride + 1
    cols = []
    for i in range(kh):
        for j in range(kw):
            cols.append(xp[:, i:i + stride * oh:stride,
                           j:j + stride * ow:stride, :])
    patches = jnp.stack(cols, axis=3)              # (n, oh, ow, kh*kw, c)
    return patches.reshape(n * oh * ow, kh * kw * c)


def prepare_params(params):
    """One-time weight re-layout + selection-matrix construction (hoisted)."""
    wx, bx = params["input_x"]        # (64, cx, 4, 4), (64,)
    wy, by = params["input_y"]        # (64, cy, 4, 4), (64,)
    w0, b0 = params["c0"]             # (64, 128, 4, 4), (64,)
    w1, b1 = params["c1"]             # (128, 64, 3, 3), (128,)
    w2, b2 = params["c2"]             # (1, 128, 4, 4), (1,)
    bf = jnp.bfloat16

    cx, cy = wx.shape[1], wy.shape[1]
    cin = cx + cy
    cpad = ((cin + 7) // 8) * 8                    # 13 -> 16

    # Fused input_x/input_y layer: block-diagonal weight over the channel-
    # concatenated (and channel-padded) input -> lane-dense 128-ch output.
    w_in = np.zeros((4, 4, cpad, 128), np.float32)
    w_in[:, :, :cx, :64] = np.transpose(np.asarray(wx), (2, 3, 1, 0))
    w_in[:, :, cx:cx + cy, 64:] = np.transpose(np.asarray(wy), (2, 3, 1, 0))
    w_in = w_in.reshape(16 * cpad, 128)
    b_in = np.concatenate([np.asarray(bx), np.asarray(by)]).reshape(1, 128)

    # c0 / c1 weights as stacked per-tap (Cin, Cout) blocks; c2 as a (16, 128)
    # per-pixel weight map (4x4 conv on a 4x4 map == weighted sum).
    w0m = np.transpose(np.asarray(w0), (2, 3, 1, 0)).reshape(16 * 128, 64)
    b0m = np.asarray(b0).reshape(1, 64)
    w1m = np.transpose(np.asarray(w1), (2, 3, 1, 0)).reshape(9 * 64, 128)
    b1m = np.asarray(b1).reshape(1, 128)
    w2m = np.transpose(np.asarray(w2), (2, 3, 1, 0)).reshape(16, 128)
    b2m = np.asarray(b2).reshape(1, 1)

    # Constant 0/1 gather matrices for in-kernel stride-2 patch extraction.
    qc0 = np.zeros((16 * 64, 256), np.float32)     # c0: 16 taps x 8x8 outputs
    for p in range(16):
        kh, kw = p // 4, p % 4
        for oi in range(8):
            for oj in range(8):
                ii, jj = 2 * oi + kh - 1, 2 * oj + kw - 1
                if 0 <= ii < 16 and 0 <= jj < 16:
                    qc0[p * 64 + oi * 8 + oj, ii * 16 + jj] = 1.0
    qc1 = np.zeros((9 * 16, 64), np.float32)       # c1: 9 taps x 4x4 outputs
    for p in range(9):
        kh, kw = p // 3, p % 3
        for oi in range(4):
            for oj in range(4):
                ii, jj = 2 * oi + kh - 1, 2 * oj + kw - 1
                if 0 <= ii < 8 and 0 <= jj < 8:
                    qc1[p * 16 + oi * 4 + oj, ii * 8 + jj] = 1.0

    return {
        "w_in": jnp.asarray(w_in, bf), "b_in": jnp.asarray(b_in, jnp.float32),
        "qc0": jnp.asarray(qc0, bf),
        "w_c0": jnp.asarray(w0m, bf), "b_c0": jnp.asarray(b0m, jnp.float32),
        "qc1": jnp.asarray(qc1, bf),
        "w_c1": jnp.asarray(w1m, bf), "b_c1": jnp.asarray(b1m, jnp.float32),
        "w_c2": jnp.asarray(w2m, jnp.float32),
        "b_c2": jnp.asarray(b2m, jnp.float32),
    }


def discriminator_forward(prepped, x_nchw, y_nchw):
    batch = x_nchw.shape[0]
    cin = x_nchw.shape[1] + y_nchw.shape[1]
    cpad = ((cin + 7) // 8) * 8                    # must match prepare_params

    x = jnp.transpose(x_nchw, (0, 2, 3, 1))
    y = jnp.transpose(y_nchw, (0, 2, 3, 1))
    xy = jnp.concatenate([x, y], axis=-1)
    if cpad > cin:
        xy = jnp.pad(xy, ((0, 0), (0, 0), (0, 0), (0, cpad - cin)))
    xy = xy.astype(jnp.bfloat16)

    # TODO(synk): move this remaining (first-layer) patch extraction in-kernel
    # via space-to-depth; it is the only activation-expanding HBM write left.
    cols1 = _im2col(xy, 4, 4, 2, 1)                # (B*256, 16*cpad)
    out = _fused_forward(cols1, prepped, batch)    # (B, 1, 128)
    return out[:, :, :1].reshape(batch, 1, 1, 1)


# ---------------------------------------------------------------------------
# Parameters + references for the self-check
# ---------------------------------------------------------------------------
def init_params(key, c_dim, label_dim):
    ks = jax.random.split(key, 10)

    def conv(kw_, kb_, cout, cin, kh, kw):
        w = 0.05 * jax.random.normal(kw_, (cout, cin, kh, kw), jnp.float32)
        b = 0.05 * jax.random.normal(kb_, (cout,), jnp.float32)
        return w, b

    return {
        "input_x": conv(ks[0], ks[1], 64, c_dim, 4, 4),
        "input_y": conv(ks[2], ks[3], 64, label_dim, 4, 4),
        "c0": conv(ks[4], ks[5], 64, 128, 4, 4),
        "c1": conv(ks[6], ks[7], 128, 64, 3, 3),
        "c2": conv(ks[8], ks[9], 1, 128, 4, 4),
    }


def ref_forward_f32(params, x, y):
    def conv(h, wb, stride, pad):
        w, b = wb
        out = jax.lax.conv_general_dilated(
            h, w, (stride, stride), [(pad, pad), (pad, pad)],
            dimension_numbers=("NCHW", "OIHW", "NCHW"))
        return out + b.reshape(1, -1, 1, 1)

    hx = _leaky(conv(x, params["input_x"], 2, 1))
    hy = _leaky(conv(y, params["input_y"], 2, 1))
    h = jnp.concatenate([hx, hy], axis=1)
    h = _leaky(conv(h, params["c0"], 2, 1))
    h = _leaky(conv(h, params["c1"], 2, 1))
    return jax.nn.sigmoid(conv(h, params["c2"], 2, 0))


def ref_forward_bf16(params, x, y):
    """Reference with the same bf16-operand / f32-accumulate precision."""
    bf = jnp.bfloat16

    def conv(h, wb, stride, pad):
        w, b = wb
        out = jax.lax.conv_general_dilated(
            h.astype(bf), w.astype(bf), (stride, stride),
            [(pad, pad), (pad, pad)],
            dimension_numbers=("NCHW", "OIHW", "NCHW"),
            preferred_element_type=jnp.float32)
        return out + b.reshape(1, -1, 1, 1)

    hx = _leaky(conv(x, params["input_x"], 2, 1))
    hy = _leaky(conv(y, params["input_y"], 2, 1))
    h = jnp.concatenate([hx, hy], axis=1)
    h = _leaky(conv(h, params["c0"], 2, 1))
    h = _leaky(conv(h, params["c1"], 2, 1))                   # (B,128,4,4) f32
    w2, b2 = params["c2"]
    logit = jnp.sum(h[:, None] * w2[None], axis=(2, 3, 4)) + b2   # (B, 1) f32
    return jax.nn.sigmoid(logit).reshape(-1, 1, 1, 1)


if __name__ == "__main__":
    key = jax.random.PRNGKey(0)
    kp, kx, ky = jax.random.split(key, 3)

    c_dim, B, H, W = 3, 2, 32, 32
    params = init_params(kp, c_dim, LABEL_DIM)
    x = jax.random.normal(kx, (B, c_dim, H, W), jnp.float32)
    y = jax.random.normal(ky, (B, LABEL_DIM, H, W), jnp.float32)

    prepped = prepare_params(params)          # hoisted: built once, reused
    fwd = jax.jit(discriminator_forward)
    out = jax.block_until_ready(fwd(prepped, x, y))
    assert out.shape == (B, 1, 1, 1), out.shape

    ref_m = jax.block_until_ready(ref_forward_bf16(params, x, y))
    assert jnp.allclose(out, ref_m, atol=1e-2, rtol=1e-2), \
        "mismatch vs matched-precision (bf16 matmul) reference"

    ref32 = jax.block_until_ready(ref_forward_f32(params, x, y))
    assert jnp.allclose(out, ref32, atol=6e-2, rtol=6e-2), \
        "mismatch vs float32 lax.conv reference"

    print("KERNEL_OK")
</pallas_src>

<mosaic_0001>
module attributes {stable_mosaic.version = 11 : i64} {
  func.func @_fused_disc_kernel(%arg0: i32, %arg1: memref<256x256xbf16, #tpu.memory_space<vmem>>, %arg2: memref<256x128xbf16, #tpu.memory_space<vmem>>, %arg3: memref<1x128xf32, #tpu.memory_space<vmem>>, %arg4: memref<1024x256xbf16, #tpu.memory_space<vmem>>, %arg5: memref<2048x64xbf16, #tpu.memory_space<vmem>>, %arg6: memref<1x64xf32, #tpu.memory_space<vmem>>, %arg7: memref<144x64xbf16, #tpu.memory_space<vmem>>, %arg8: memref<576x128xbf16, #tpu.memory_space<vmem>>, %arg9: memref<1x128xf32, #tpu.memory_space<vmem>>, %arg10: memref<16x128xf32, #tpu.memory_space<vmem>>, %arg11: memref<1x1xf32, #tpu.memory_space<vmem>>, %arg12: memref<1x1x128xf32, #tpu.memory_space<vmem>>) attributes {dimension_semantics = [#tpu.dimension_semantics<parallel>], iteration_bounds = array<i64: 2>, scalar_prefetch = 0 : i64, scratch_operands = 0 : i64, tpu.core_type = #tpu.core_type<tc>, window_params = [{transform_indices = @transform_0, window_bounds = array<i64: 256, 256>}, {pipeline_mode = #tpu.pipeline_mode<synchronous>, transform_indices = @transform_1, window_bounds = array<i64: 256, 128>}, {pipeline_mode = #tpu.pipeline_mode<synchronous>, transform_indices = @transform_2, window_bounds = array<i64: 1, 128>}, {pipeline_mode = #tpu.pipeline_mode<synchronous>, transform_indices = @transform_3, window_bounds = array<i64: 1024, 256>}, {pipeline_mode = #tpu.pipeline_mode<synchronous>, transform_indices = @transform_4, window_bounds = array<i64: 2048, 64>}, {pipeline_mode = #tpu.pipeline_mode<synchronous>, transform_indices = @transform_5, window_bounds = array<i64: 1, 64>}, {pipeline_mode = #tpu.pipeline_mode<synchronous>, transform_indices = @transform_6, window_bounds = array<i64: 144, 64>}, {pipeline_mode = #tpu.pipeline_mode<synchronous>, transform_indices = @transform_7, window_bounds = array<i64: 576, 128>}, {pipeline_mode = #tpu.pipeline_mode<synchronous>, transform_indices = @transform_8, window_bounds = array<i64: 1, 128>}, {pipeline_mode = #tpu.pipeline_mode<synchronous>, transform_indices = @transform_9, window_bounds = array<i64: 16, 128>}, {pipeline_mode = #tpu.pipeline_mode<synchronous>, transform_indices = @transform_10, window_bounds = array<i64: 1, 1>}, {transform_indices = @transform_11, window_bounds = array<i64: 1, 1, 128>}]} {
    %c0 = arith.constant 0 : index
    %c0_0 = arith.constant 0 : index
    %0 = vector.load %arg1[%c0, %c0_0] : memref<256x256xbf16, #tpu.memory_space<vmem>>, vector<256x256xbf16>
    %c0_1 = arith.constant 0 : index
    %c0_2 = arith.constant 0 : index
    %1 = vector.load %arg2[%c0_1, %c0_2] : memref<256x128xbf16, #tpu.memory_space<vmem>>, vector<256x128xbf16>
    %cst = arith.constant dense<0.000000e+00> : vector<256x128xf32>
    %2 = tpu.matmul %0, %1, %cst {dimension_numbers = #tpu.dot_dimension_numbers<[1], [0], [0], [1], [0, 0, 1, 1], [], []>} : vector<256x256xbf16>, vector<256x128xbf16>, vector<256x128xf32> -> vector<256x128xf32>
    %c0_3 = arith.constant 0 : index
    %c0_4 = arith.constant 0 : index
    %3 = vector.load %arg3[%c0_3, %c0_4] : memref<1x128xf32, #tpu.memory_space<vmem>>, vector<1x128xf32>
    %4 = vector.broadcast %3 : vector<1x128xf32> to vector<256x128xf32>
    %5 = arith.addf %2, %4 : vector<256x128xf32>
    %cst_5 = arith.constant 0.000000e+00 : f32
    %6 = vector.broadcast %cst_5 : f32 to vector<256x128xf32>
    %7 = arith.cmpf ogt, %5, %6 : vector<256x128xf32>
    %cst_6 = arith.constant 0.00999999977 : f32
    %8 = vector.broadcast %cst_6 : f32 to vector<256x128xf32>
    %9 = arith.mulf %8, %5 : vector<256x128xf32>
    %10 = arith.select %7, %5, %9 : vector<256x128xi1>, vector<256x128xf32>
    %11 = arith.truncf %10 : vector<256x128xf32> to vector<256x128xbf16>
    %c0_7 = arith.constant 0 : index
    %c0_8 = arith.constant 0 : index
    %12 = vector.load %arg4[%c0_7, %c0_8] : memref<1024x256xbf16, #tpu.memory_space<vmem>>, vector<1024x256xbf16>
    %c0_9 = arith.constant 0 : index
    %c0_10 = arith.constant 0 : index
    %13 = vector.load %arg5[%c0_9, %c0_10] : memref<2048x64xbf16, #tpu.memory_space<vmem>>, vector<2048x64xbf16>
    %c0_11 = arith.constant 0 : index
    %c0_12 = arith.constant 0 : index
    %14 = vector.load %arg6[%c0_11, %c0_12] : memref<1x64xf32, #tpu.memory_space<vmem>>, vector<1x64xf32>
    %c0_13 = arith.constant 0 : index
    %c0_14 = arith.constant 0 : index
    %15 = vector.load %arg7[%c0_13, %c0_14] : memref<144x64xbf16, #tpu.memory_space<vmem>>, vector<144x64xbf16>
    %c0_15 = arith.constant 0 : index
    %c0_16 = arith.constant 0 : index
    %16 = vector.load %arg8[%c0_15, %c0_16] : memref<576x128xbf16, #tpu.memory_space<vmem>>, vector<576x128xbf16>
    %c0_17 = arith.constant 0 : index
    %c0_18 = arith.constant 0 : index
    %17 = vector.load %arg9[%c0_17, %c0_18] : memref<1x128xf32, #tpu.memory_space<vmem>>, vector<1x128xf32>
    %c0_19 = arith.constant 0 : index
    %c0_20 = arith.constant 0 : index
    %18 = vector.load %arg10[%c0_19, %c0_20] : memref<16x128xf32, #tpu.memory_space<vmem>>, vector<16x128xf32>
    %c0_21 = arith.constant 0 : index
    %c0_22 = arith.constant 0 : index
    %19 = vector.load %arg11[%c0_21, %c0_22] : memref<1x1xf32, #tpu.memory_space<vmem>>, vector<1x1xf32>
    %cst_23 = arith.constant dense<0.000000e+00> : vector<1024x128xf32>
    %20 = tpu.matmul %12, %11, %cst_23 {dimension_numbers = #tpu.dot_dimension_numbers<[1], [0], [0], [1], [0, 0, 1, 1], [], []>} : vector<1024x256xbf16>, vector<256x128xbf16>, vector<1024x128xf32> -> vector<1024x128xf32>
    %21 = arith.truncf %20 : vector<1024x128xf32> to vector<1024x128xbf16>
    %cst_24 = arith.constant 0.000000e+00 : f32
    %22 = vector.broadcast %cst_24 : f32 to vector<64x64xf32>
    %23 = vector.extract_strided_slice %21 {offsets = [0, 0], sizes = [64, 128], strides = [1, 1]} : vector<1024x128xbf16> to vector<64x128xbf16>
    %24 = vector.extract_strided_slice %13 {offsets = [0, 0], sizes = [128, 64], strides = [1, 1]} : vector<2048x64xbf16> to vector<128x64xbf16>
    %cst_25 = arith.constant dense<0.000000e+00> : vector<64x64xf32>
    %25 = tpu.matmul %23, %24, %cst_25 {dimension_numbers = #tpu.dot_dimension_numbers<[1], [0], [0], [1], [0, 0, 1, 1], [], []>} : vector<64x128xbf16>, vector<128x64xbf16>, vector<64x64xf32> -> vector<64x64xf32>
    %26 = arith.addf %22, %25 : vector<64x64xf32>
    %27 = vector.extract_strided_slice %21 {offsets = [64, 0], sizes = [64, 128], strides = [1, 1]} : vector<1024x128xbf16> to vector<64x128xbf16>
    %28 = vector.extract_strided_slice %13 {offsets = [128, 0], sizes = [128, 64], strides = [1, 1]} : vector<2048x64xbf16> to vector<128x64xbf16>
    %cst_26 = arith.constant dense<0.000000e+00> : vector<64x64xf32>
    %29 = tpu.matmul %27, %28, %cst_26 {dimension_numbers = #tpu.dot_dimension_numbers<[1], [0], [0], [1], [0, 0, 1, 1], [], []>} : vector<64x128xbf16>, vector<128x64xbf16>, vector<64x64xf32> -> vector<64x64xf32>
    %30 = arith.addf %26, %29 : vector<64x64xf32>
    %31 = vector.extract_strided_slice %21 {offsets = [128, 0], sizes = [64, 128], strides = [1, 1]} : vector<1024x128xbf16> to vector<64x128xbf16>
    %32 = vector.extract_strided_slice %13 {offsets = [256, 0], sizes = [128, 64], strides = [1, 1]} : vector<2048x64xbf16> to vector<128x64xbf16>
    %cst_27 = arith.constant dense<0.000000e+00> : vector<64x64xf32>
    %33 = tpu.matmul %31, %32, %cst_27 {dimension_numbers = #tpu.dot_dimension_numbers<[1], [0], [0], [1], [0, 0, 1, 1], [], []>} : vector<64x128xbf16>, vector<128x64xbf16>, vector<64x64xf32> -> vector<64x64xf32>
    %34 = arith.addf %30, %33 : vector<64x64xf32>
    %35 = vector.extract_strided_slice %21 {offsets = [192, 0], sizes = [64, 128], strides = [1, 1]} : vector<1024x128xbf16> to vector<64x128xbf16>
    %36 = vector.extract_strided_slice %13 {offsets = [384, 0], sizes = [128, 64], strides = [1, 1]} : vector<2048x64xbf16> to vector<128x64xbf16>
    %cst_28 = arith.constant dense<0.000000e+00> : vector<64x64xf32>
    %37 = tpu.matmul %35, %36, %cst_28 {dimension_numbers = #tpu.dot_dimension_numbers<[1], [0], [0], [1], [0, 0, 1, 1], [], []>} : vector<64x128xbf16>, vector<128x64xbf16>, vector<64x64xf32> -> vector<64x64xf32>
    %38 = arith.addf %34, %37 : vector<64x64xf32>
    %39 = vector.extract_strided_slice %21 {offsets = [256, 0], sizes = [64, 128], strides = [1, 1]} : vector<1024x128xbf16> to vector<64x128xbf16>
    %40 = vector.extract_strided_slice %13 {offsets = [512, 0], sizes = [128, 64], strides = [1, 1]} : vector<2048x64xbf16> to vector<128x64xbf16>
    %cst_29 = arith.constant dense<0.000000e+00> : vector<64x64xf32>
    %41 = tpu.matmul %39, %40, %cst_29 {dimension_numbers = #tpu.dot_dimension_numbers<[1], [0], [0], [1], [0, 0, 1, 1], [], []>} : vector<64x128xbf16>, vector<128x64xbf16>, vector<64x64xf32> -> vector<64x64xf32>
    %42 = arith.addf %38, %41 : vector<64x64xf32>
    %43 = vector.extract_strided_slice %21 {offsets = [320, 0], sizes = [64, 128], strides = [1, 1]} : vector<1024x128xbf16> to vector<64x128xbf16>
    %44 = vector.extract_strided_slice %13 {offsets = [640, 0], sizes = [128, 64], strides = [1, 1]} : vector<2048x64xbf16> to vector<128x64xbf16>
    %cst_30 = arith.constant dense<0.000000e+00> : vector<64x64xf32>
    %45 = tpu.matmul %43, %44, %cst_30 {dimension_numbers = #tpu.dot_dimension_numbers<[1], [0], [0], [1], [0, 0, 1, 1], [], []>} : vector<64x128xbf16>, vector<128x64xbf16>, vector<64x64xf32> -> vector<64x64xf32>
    %46 = arith.addf %42, %45 : vector<64x64xf32>
    %47 = vector.extract_strided_slice %21 {offsets = [384, 0], sizes = [64, 128], strides = [1, 1]} : vector<1024x128xbf16> to vector<64x128xbf16>
    %48 = vector.extract_strided_slice %13 {offsets = [768, 0], sizes = [128, 64], strides = [1, 1]} : vector<2048x64xbf16> to vector<128x64xbf16>
    %cst_31 = arith.constant dense<0.000000e+00> : vector<64x64xf32>
    %49 = tpu.matmul %47, %48, %cst_31 {dimension_numbers = #tpu.dot_dimension_numbers<[1], [0], [0], [1], [0, 0, 1, 1], [], []>} : vector<64x128xbf16>, vector<128x64xbf16>, vector<64x64xf32> -> vector<64x64xf32>
    %50 = arith.addf %46, %49 : vector<64x64xf32>
    %51 = vector.extract_strided_slice %21 {offsets = [448, 0], sizes = [64, 128], strides = [1, 1]} : vector<1024x128xbf16> to vector<64x128xbf16>
    %52 = vector.extract_strided_slice %13 {offsets = [896, 0], sizes = [128, 64], strides = [1, 1]} : vector<2048x64xbf16> to vector<128x64xbf16>
    %cst_32 = arith.constant dense<0.000000e+00> : vector<64x64xf32>
    %53 = tpu.matmul %51, %52, %cst_32 {dimension_numbers = #tpu.dot_dimension_numbers<[1], [0], [0], [1], [0, 0, 1, 1], [], []>} : vector<64x128xbf16>, vector<128x64xbf16>, vector<64x64xf32> -> vector<64x64xf32>
    %54 = arith.addf %50, %53 : vector<64x64xf32>
    %55 = vector.extract_strided_slice %21 {offsets = [512, 0], sizes = [64, 128], strides = [1, 1]} : vector<1024x128xbf16> to vector<64x128xbf16>
    %56 = vector.extract_strided_slice %13 {offsets = [1024, 0], sizes = [128, 64], strides = [1, 1]} : vector<2048x64xbf16> to vector<128x64xbf16>
    %cst_33 = arith.constant dense<0.000000e+00> : vector<64x64xf32>
    %57 = tpu.matmul %55, %56, %cst_33 {dimension_numbers = #tpu.dot_dimension_numbers<[1], [0], [0], [1], [0, 0, 1, 1], [], []>} : vector<64x128xbf16>, vector<128x64xbf16>, vector<64x64xf32> -> vector<64x64xf32>
    %58 = arith.addf %54, %57 : vector<64x64xf32>
    %59 = vector.extract_strided_slice %21 {offsets = [576, 0], sizes = [64, 128], strides = [1, 1]} : vector<1024x128xbf16> to vector<64x128xbf16>
    %60 = vector.extract_strided_slice %13 {offsets = [1152, 0], sizes = [128, 64], strides = [1, 1]} : vector<2048x64xbf16> to vector<128x64xbf16>
    %cst_34 = arith.constant dense<0.000000e+00> : vector<64x64xf32>
    %61 = tpu.matmul %59, %60, %cst_34 {dimension_numbers = #tpu.dot_dimension_numbers<[1], [0], [0], [1], [0, 0, 1, 1], [], []>} : vector<64x128xbf16>, vector<128x64xbf16>, vector<64x64xf32> -> vector<64x64xf32>
    %62 = arith.addf %58, %61 : vector<64x64xf32>
    %63 = vector.extract_strided_slice %21 {offsets = [640, 0], sizes = [64, 128], strides = [1, 1]} : vector<1024x128xbf16> to vector<64x128xbf16>
    %64 = vector.extract_strided_slice %13 {offsets = [1280, 0], sizes = [128, 64], strides = [1, 1]} : vector<2048x64xbf16> to vector<128x64xbf16>
    %cst_35 = arith.constant dense<0.000000e+00> : vector<64x64xf32>
    %65 = tpu.matmul %63, %64, %cst_35 {dimension_numbers = #tpu.dot_dimension_numbers<[1], [0], [0], [1], [0, 0, 1, 1], [], []>} : vector<64x128xbf16>, vector<128x64xbf16>, vector<64x64xf32> -> vector<64x64xf32>
    %66 = arith.addf %62, %65 : vector<64x64xf32>
    %67 = vector.extract_strided_slice %21 {offsets = [704, 0], sizes = [64, 128], strides = [1, 1]} : vector<1024x128xbf16> to vector<64x128xbf16>
    %68 = vector.extract_strided_slice %13 {offsets = [1408, 0], sizes = [128, 64], strides = [1, 1]} : vector<2048x64xbf16> to vector<128x64xbf16>
    %cst_36 = arith.constant dense<0.000000e+00> : vector<64x64xf32>
    %69 = tpu.matmul %67, %68, %cst_36 {dimension_numbers = #tpu.dot_dimension_numbers<[1], [0], [0], [1], [0, 0, 1, 1], [], []>} : vector<64x128xbf16>, vector<128x64xbf16>, vector<64x64xf32> -> vector<64x64xf32>
    %70 = arith.addf %66, %69 : vector<64x64xf32>
    %71 = vector.extract_strided_slice %21 {offsets = [768, 0], sizes = [64, 128], strides = [1, 1]} : vector<1024x128xbf16> to vector<64x128xbf16>
    %72 = vector.extract_strided_slice %13 {offsets = [1536, 0], sizes = [128, 64], strides = [1, 1]} : vector<2048x64xbf16> to vector<128x64xbf16>
    %cst_37 = arith.constant dense<0.000000e+00> : vector<64x64xf32>
    %73 = tpu.matmul %71, %72, %cst_37 {dimension_numbers = #tpu.dot_dimension_numbers<[1], [0], [0], [1], [0, 0, 1, 1], [], []>} : vector<64x128xbf16>, vector<128x64xbf16>, vector<64x64xf32> -> vector<64x64xf32>
    %74 = arith.addf %70, %73 : vector<64x64xf32>
    %75 = vector.extract_strided_slice %21 {offsets = [832, 0], sizes = [64, 128], strides = [1, 1]} : vector<1024x128xbf16> to vector<64x128xbf16>
    %76 = vector.extract_strided_slice %13 {offsets = [1664, 0], sizes = [128, 64], strides = [1, 1]} : vector<2048x64xbf16> to vector<128x64xbf16>
    %cst_38 = arith.constant dense<0.000000e+00> : vector<64x64xf32>
    %77 = tpu.matmul %75, %76, %cst_38 {dimension_numbers = #tpu.dot_dimension_numbers<[1], [0], [0], [1], [0, 0, 1, 1], [], []>} : vector<64x128xbf16>, vector<128x64xbf16>, vector<64x64xf32> -> vector<64x64xf32>
    %78 = arith.addf %74, %77 : vector<64x64xf32>
    %79 = vector.extract_strided_slice %21 {offsets = [896, 0], sizes = [64, 128], strides = [1, 1]} : vector<1024x128xbf16> to vector<64x128xbf16>
    %80 = vector.extract_strided_slice %13 {offsets = [1792, 0], sizes = [128, 64], strides = [1, 1]} : vector<2048x64xbf16> to vector<128x64xbf16>
    %cst_39 = arith.constant dense<0.000000e+00> : vector<64x64xf32>
    %81 = tpu.matmul %79, %80, %cst_39 {dimension_numbers = #tpu.dot_dimension_numbers<[1], [0], [0], [1], [0, 0, 1, 1], [], []>} : vector<64x128xbf16>, vector<128x64xbf16>, vector<64x64xf32> -> vector<64x64xf32>
    %82 = arith.addf %78, %81 : vector<64x64xf32>
    %83 = vector.extract_strided_slice %21 {offsets = [960, 0], sizes = [64, 128], strides = [1, 1]} : vector<1024x128xbf16> to vector<64x128xbf16>
    %84 = vector.extract_strided_slice %13 {offsets = [1920, 0], sizes = [128, 64], strides = [1, 1]} : vector<2048x64xbf16> to vector<128x64xbf16>
    %cst_40 = arith.constant dense<0.000000e+00> : vector<64x64xf32>
    %85 = tpu.matmul %83, %84, %cst_40 {dimension_numbers = #tpu.dot_dimension_numbers<[1], [0], [0], [1], [0, 0, 1, 1], [], []>} : vector<64x128xbf16>, vector<128x64xbf16>, vector<64x64xf32> -> vector<64x64xf32>
    %86 = arith.addf %82, %85 : vector<64x64xf32>
    %87 = vector.broadcast %14 : vector<1x64xf32> to vector<64x64xf32>
    %88 = arith.addf %86, %87 : vector<64x64xf32>
    %cst_41 = arith.constant 0.000000e+00 : f32
    %89 = vector.broadcast %cst_41 : f32 to vector<64x64xf32>
    %90 = arith.cmpf ogt, %88, %89 : vector<64x64xf32>
    %cst_42 = arith.constant 0.00999999977 : f32
    %91 = vector.broadcast %cst_42 : f32 to vector<64x64xf32>
    %92 = arith.mulf %91, %88 : vector<64x64xf32>
    %93 = arith.select %90, %88, %92 : vector<64x64xi1>, vector<64x64xf32>
    %94 = arith.truncf %93 : vector<64x64xf32> to vector<64x64xbf16>
    %cst_43 = arith.constant dense<0.000000e+00> : vector<144x64xf32>
    %95 = tpu.matmul %15, %94, %cst_43 {dimension_numbers = #tpu.dot_dimension_numbers<[1], [0], [0], [1], [0, 0, 1, 1], [], []>} : vector<144x64xbf16>, vector<64x64xbf16>, vector<144x64xf32> -> vector<144x64xf32>
    %96 = arith.truncf %95 : vector<144x64xf32> to vector<144x64xbf16>
    %cst_44 = arith.constant 0.000000e+00 : f32
    %97 = vector.broadcast %cst_44 : f32 to vector<16x128xf32>
    %98 = vector.extract_strided_slice %96 {offsets = [0, 0], sizes = [16, 64], strides = [1, 1]} : vector<144x64xbf16> to vector<16x64xbf16>
    %99 = vector.extract_strided_slice %16 {offsets = [0, 0], sizes = [64, 128], strides = [1, 1]} : vector<576x128xbf16> to vector<64x128xbf16>
    %cst_45 = arith.constant dense<0.000000e+00> : vector<16x128xf32>
    %100 = tpu.matmul %98, %99, %cst_45 {dimension_numbers = #tpu.dot_dimension_numbers<[1], [0], [0], [1], [0, 0, 1, 1], [], []>} : vector<16x64xbf16>, vector<64x128xbf16>, vector<16x128xf32> -> vector<16x128xf32>
    %101 = arith.addf %97, %100 : vector<16x128xf32>
    %102 = vector.extract_strided_slice %96 {offsets = [16, 0], sizes = [16, 64], strides = [1, 1]} : vector<144x64xbf16> to vector<16x64xbf16>
    %103 = vector.extract_strided_slice %16 {offsets = [64, 0], sizes = [64, 128], strides = [1, 1]} : vector<576x128xbf16> to vector<64x128xbf16>
    %cst_46 = arith.constant dense<0.000000e+00> : vector<16x128xf32>
    %104 = tpu.matmul %102, %103, %cst_46 {dimension_numbers = #tpu.dot_dimension_numbers<[1], [0], [0], [1], [0, 0, 1, 1], [], []>} : vector<16x64xbf16>, vector<64x128xbf16>, vector<16x128xf32> -> vector<16x128xf32>
    %105 = arith.addf %101, %104 : vector<16x128xf32>
    %106 = vector.extract_strided_slice %96 {offsets = [32, 0], sizes = [16, 64], strides = [1, 1]} : vector<144x64xbf16> to vector<16x64xbf16>
    %107 = vector.extract_strided_slice %16 {offsets = [128, 0], sizes = [64, 128], strides = [1, 1]} : vector<576x128xbf16> to vector<64x128xbf16>
    %cst_47 = arith.constant dense<0.000000e+00> : vector<16x128xf32>
    %108 = tpu.matmul %106, %107, %cst_47 {dimension_numbers = #tpu.dot_dimension_numbers<[1], [0], [0], [1], [0, 0, 1, 1], [], []>} : vector<16x64xbf16>, vector<64x128xbf16>, vector<16x128xf32> -> vector<16x128xf32>
    %109 = arith.addf %105, %108 : vector<16x128xf32>
    %110 = vector.extract_strided_slice %96 {offsets = [48, 0], sizes = [16, 64], strides = [1, 1]} : vector<144x64xbf16> to vector<16x64xbf16>
    %111 = vector.extract_strided_slice %16 {offsets = [192, 0], sizes = [64, 128], strides = [1, 1]} : vector<576x128xbf16> to vector<64x128xbf16>
    %cst_48 = arith.constant dense<0.000000e+00> : vector<16x128xf32>
    %112 = tpu.matmul %110, %111, %cst_48 {dimension_numbers = #tpu.dot_dimension_numbers<[1], [0], [0], [1], [0, 0, 1, 1], [], []>} : vector<16x64xbf16>, vector<64x128xbf16>, vector<16x128xf32> -> vector<16x128xf32>
    %113 = arith.addf %109, %112 : vector<16x128xf32>
    %114 = vector.extract_strided_slice %96 {offsets = [64, 0], sizes = [16, 64], strides = [1, 1]} : vector<144x64xbf16> to vector<16x64xbf16>
    %115 = vector.extract_strided_slice %16 {offsets = [256, 0], sizes = [64, 128], strides = [1, 1]} : vector<576x128xbf16> to vector<64x128xbf16>
    %cst_49 = arith.constant dense<0.000000e+00> : vector<16x128xf32>
    %116 = tpu.matmul %114, %115, %cst_49 {dimension_numbers = #tpu.dot_dimension_numbers<[1], [0], [0], [1], [0, 0, 1, 1], [], []>} : vector<16x64xbf16>, vector<64x128xbf16>, vector<16x128xf32> -> vector<16x128xf32>
    %117 = arith.addf %113, %116 : vector<16x128xf32>
    %118 = vector.extract_strided_slice %96 {offsets = [80, 0], sizes = [16, 64], strides = [1, 1]} : vector<144x64xbf16> to vector<16x64xbf16>
    %119 = vector.extract_strided_slice %16 {offsets = [320, 0], sizes = [64, 128], strides = [1, 1]} : vector<576x128xbf16> to vector<64x128xbf16>
    %cst_50 = arith.constant dense<0.000000e+00> : vector<16x128xf32>
    %120 = tpu.matmul %118, %119, %cst_50 {dimension_numbers = #tpu.dot_dimension_numbers<[1], [0], [0], [1], [0, 0, 1, 1], [], []>} : vector<16x64xbf16>, vector<64x128xbf16>, vector<16x128xf32> -> vector<16x128xf32>
    %121 = arith.addf %117, %120 : vector<16x128xf32>
    %122 = vector.extract_strided_slice %96 {offsets = [96, 0], sizes = [16, 64], strides = [1, 1]} : vector<144x64xbf16> to vector<16x64xbf16>
    %123 = vector.extract_strided_slice %16 {offsets = [384, 0], sizes = [64, 128], strides = [1, 1]} : vector<576x128xbf16> to vector<64x128xbf16>
    %cst_51 = arith.constant dense<0.000000e+00> : vector<16x128xf32>
    %124 = tpu.matmul %122, %123, %cst_51 {dimension_numbers = #tpu.dot_dimension_numbers<[1], [0], [0], [1], [0, 0, 1, 1], [], []>} : vector<16x64xbf16>, vector<64x128xbf16>, vector<16x128xf32> -> vector<16x128xf32>
    %125 = arith.addf %121, %124 : vector<16x128xf32>
    %126 = vector.extract_strided_slice %96 {offsets = [112, 0], sizes = [16, 64], strides = [1, 1]} : vector<144x64xbf16> to vector<16x64xbf16>
    %127 = vector.extract_strided_slice %16 {offsets = [448, 0], sizes = [64, 128], strides = [1, 1]} : vector<576x128xbf16> to vector<64x128xbf16>
    %cst_52 = arith.constant dense<0.000000e+00> : vector<16x128xf32>
    %128 = tpu.matmul %126, %127, %cst_52 {dimension_numbers = #tpu.dot_dimension_numbers<[1], [0], [0], [1], [0, 0, 1, 1], [], []>} : vector<16x64xbf16>, vector<64x128xbf16>, vector<16x128xf32> -> vector<16x128xf32>
    %129 = arith.addf %125, %128 : vector<16x128xf32>
    %130 = vector.extract_strided_slice %96 {offsets = [128, 0], sizes = [16, 64], strides = [1, 1]} : vector<144x64xbf16> to vector<16x64xbf16>
    %131 = vector.extract_strided_slice %16 {offsets = [512, 0], sizes = [64, 128], strides = [1, 1]} : vector<576x128xbf16> to vector<64x128xbf16>
    %cst_53 = arith.constant dense<0.000000e+00> : vector<16x128xf32>
    %132 = tpu.matmul %130, %131, %cst_53 {dimension_numbers = #tpu.dot_dimension_numbers<[1], [0], [0], [1], [0, 0, 1, 1], [], []>} : vector<16x64xbf16>, vector<64x128xbf16>, vector<16x128xf32> -> vector<16x128xf32>
    %133 = arith.addf %129, %132 : vector<16x128xf32>
    %134 = vector.broadcast %17 : vector<1x128xf32> to vector<16x128xf32>
    %135 = arith.addf %133, %134 : vector<16x128xf32>
    %cst_54 = arith.constant 0.000000e+00 : f32
    %136 = vector.broadcast %cst_54 : f32 to vector<16x128xf32>
    %137 = arith.cmpf ogt, %135, %136 : vector<16x128xf32>
    %cst_55 = arith.constant 0.00999999977 : f32
    %138 = vector.broadcast %cst_55 : f32 to vector<16x128xf32>
    %139 = arith.mulf %138, %135 : vector<16x128xf32>
    %140 = arith.select %137, %135, %139 : vector<16x128xi1>, vector<16x128xf32>
    %141 = arith.mulf %140, %18 : vector<16x128xf32>
    %cst_56 = arith.constant dense<0.000000e+00> : vector<16xf32>
    %142 = vector.multi_reduction <add>, %141, %cst_56 [1] : vector<16x128xf32> to vector<16xf32>
    %143 = vector.shape_cast %142 : vector<16xf32> to vector<16x1xf32>
    %cst_57 = arith.constant dense<0.000000e+00> : vector<1xf32>
    %144 = vector.multi_reduction <add>, %143, %cst_57 [0] : vector<16x1xf32> to vector<1xf32>
    %145 = vector.shape_cast %144 : vector<1xf32> to vector<1x1xf32>
    %146 = arith.addf %145, %19 : vector<1x1xf32>
    %147 = math.absf %146 : vector<1x1xf32>
    %cst_58 = arith.constant 0.000000e+00 : f32
    %148 = vector.broadcast %cst_58 : f32 to vector<1x1xf32>
    %149 = arith.subf %148, %147 : vector<1x1xf32>
    %150 = math.exp %149 : vector<1x1xf32>
    %cst_59 = arith.constant 0.000000e+00 : f32
    %151 = vector.broadcast %cst_59 : f32 to vector<1x1xf32>
    %152 = arith.cmpf oge, %146, %151 : vector<1x1xf32>
    %cst_60 = arith.constant 1.000000e+00 : f32
    %153 = vector.broadcast %cst_60 : f32 to vector<1x1xf32>
    %154 = arith.addf %153, %150 : vector<1x1xf32>
    %cst_61 = arith.constant 1.000000e+00 : f32
    %155 = vector.broadcast %cst_61 : f32 to vector<1x1xf32>
    %156 = arith.divf %155, %154 : vector<1x1xf32>
    %cst_62 = arith.constant 1.000000e+00 : f32
    %157 = vector.broadcast %cst_62 : f32 to vector<1x1xf32>
    %158 = arith.addf %157, %150 : vector<1x1xf32>
    %159 = arith.divf %150, %158 : vector<1x1xf32>
    %160 = arith.select %152, %156, %159 : vector<1x1xi1>, vector<1x1xf32>
    %161 = vector.shape_cast %160 : vector<1x1xf32> to vector<1x1xf32>
    %162 = vector.broadcast %161 : vector<1x1xf32> to vector<1x128xf32>
    %c0_63 = arith.constant 0 : index
    %c0_64 = arith.constant 0 : index
    %c0_65 = arith.constant 0 : index
    %163 = vector.load %arg12[%c0_63, %c0_64, %c0_65] : memref<1x1x128xf32, #tpu.memory_space<vmem>>, vector<1x1x128xf32>
    %164 = vector.shape_cast %163 : vector<1x1x128xf32> to vector<1x128xf32>
    %165 = vector.shape_cast %162 : vector<1x128xf32> to vector<1x1x128xf32>
    tpu.vector_store %arg12[%c0_63, %c0_64, %c0_65], %165 {strides = array<i32>} : memref<1x1x128xf32, #tpu.memory_space<vmem>>, vector<1x1x128xf32>,
    return
  }
  func.func @transform_0(%arg0: i32) -> (i32, i32) {
    %c0_i32 = arith.constant 0 : i32
    %c0_i32_0 = arith.constant 0 : i32
    return %arg0, %c0_i32 : i32, i32
  }
  func.func @transform_1(%arg0: i32) -> (i32, i32) {
    %c0_i32 = arith.constant 0 : i32
    %c0_i32_0 = arith.constant 0 : i32
    %c0_i32_1 = arith.constant 0 : i32
    return %c0_i32, %c0_i32_0 : i32, i32
  }
  func.func @transform_2(%arg0: i32) -> (i32, i32) {
    %c0_i32 = arith.constant 0 : i32
    %c0_i32_0 = arith.constant 0 : i32
    %c0_i32_1 = arith.constant 0 : i32
    return %c0_i32, %c0_i32_0 : i32, i32
  }
  func.func @transform_3(%arg0: i32) -> (i32, i32) {
    %c0_i32 = arith.constant 0 : i32
    %c0_i32_0 = arith.constant 0 : i32
    %c0_i32_1 = arith.constant 0 : i32
    return %c0_i32, %c0_i32_0 : i32, i32
  }
  func.func @transform_4(%arg0: i32) -> (i32, i32) {
    %c0_i32 = arith.constant 0 : i32
    %c0_i32_0 = arith.constant 0 : i32
    %c0_i32_1 = arith.constant 0 : i32
    return %c0_i32, %c0_i32_0 : i32, i32
  }
  func.func @transform_5(%arg0: i32) -> (i32, i32) {
    %c0_i32 = arith.constant 0 : i32
    %c0_i32_0 = arith.constant 0 : i32
    %c0_i32_1 = arith.constant 0 : i32
    return %c0_i32, %c0_i32_0 : i32, i32
  }
  func.func @transform_6(%arg0: i32) -> (i32, i32) {
    %c0_i32 = arith.constant 0 : i32
    %c0_i32_0 = arith.constant 0 : i32
    %c0_i32_1 = arith.constant 0 : i32
    return %c0_i32, %c0_i32_0 : i32, i32
  }
  func.func @transform_7(%arg0: i32) -> (i32, i32) {
    %c0_i32 = arith.constant 0 : i32
    %c0_i32_0 = arith.constant 0 : i32
    %c0_i32_1 = arith.constant 0 : i32
    return %c0_i32, %c0_i32_0 : i32, i32
  }
  func.func @transform_8(%arg0: i32) -> (i32, i32) {
    %c0_i32 = arith.constant 0 : i32
    %c0_i32_0 = arith.constant 0 : i32
    %c0_i32_1 = arith.constant 0 : i32
    return %c0_i32, %c0_i32_0 : i32, i32
  }
  func.func @transform_9(%arg0: i32) -> (i32, i32) {
    %c0_i32 = arith.constant 0 : i32
    %c0_i32_0 = arith.constant 0 : i32
    %c0_i32_1 = arith.constant 0 : i32
    return %c0_i32, %c0_i32_0 : i32, i32
  }
  func.func @transform_10(%arg0: i32) -> (i32, i32) {
    %c0_i32 = arith.constant 0 : i32
    %c0_i32_0 = arith.constant 0 : i32
    %c0_i32_1 = arith.constant 0 : i32
    return %c0_i32, %c0_i32_0 : i32, i32
  }
  func.func @transform_11(%arg0: i32) -> (i32, i32, i32) {
    %c0_i32 = arith.constant 0 : i32
    %c0_i32_0 = arith.constant 0 : i32
    %c0_i32_1 = arith.constant 0 : i32
    return %arg0, %c0_i32, %c0_i32_0 : i32, i32, i32
  }
}

</mosaic_0001>

<bundles_post_ra>
// kernel: discriminator_forward.1
= control target key start
LH: loop header
LB: loop body
LE: loop exit
PB: predicated region body
PF: predicated region fallthrough
CT: control target
= control target key end

     0   :  { %s7508_s19 = smov 0   ;;  %s8776_s0 = inlined_call_operand.vmem [shape: bf16[512,256], index: 0, kind: input, shape index: {}]   ;;  %s8777_s1 = inlined_call_operand.vmem [shape: bf16[256,128], index: 1, kind: input, shape index: {}]   ;;  %s8778_s2 = inlined_call_operand.vmem [shape: f32[1,128], index: 2, kind: input, shape index: {}]   ;;  %s8779_s3 = inlined_call_operand.vmem [shape: bf16[1024,256], index: 3, kind: input, shape index: {}]   ;;  %s8780_s4 = inlined_call_operand.vmem [shape: bf16[2048,64], index: 4, kind: input, shape index: {}]   ;;  %s8781_s5 = inlined_call_operand.vmem [shape: f32[1,64], index: 5, kind: input, shape index: {}]   ;;  %s8782_s6 = inlined_call_operand.vmem [shape: bf16[144,64], index: 6, kind: input, shape index: {}]   ;;  %s8783_s7 = inlined_call_operand.vmem [shape: bf16[576,128], index: 7, kind: input, shape index: {}]   ;;  %s8784_s8 = inlined_call_operand.vmem [shape: f32[1,128], index: 8, kind: input, shape index: {}]   ;;  %s8785_s9 = inlined_call_operand.vmem [shape: f32[16,128], index: 9, kind: input, shape index: {}]   ;;  %s8786_s10 = inlined_call_operand.<no memory space> [shape: f32[1,1], index: 10, kind: input, shape index: {}]   ;;  %s8787_s11 = inlined_call_operand.vmem [shape: f32[2,1,128], index: 11, kind: output, shape index: {}]  }
   0x1   :  { %v16_v0 = vstv %s8786_s10 }
   0x2   :  { %17 = vst [vmem:[#allocation2] sm:$0x1] %v16_v0 }
   0x3 LB: > { %s7514_s20 = sadd.s32 4294967295, %s7440_s19   ;;  %p5593_p0 = scmp.ge.s32.totalorder %s7440_s19, 1  ;;  %s7440_s19 = sphi %s7508_s19, %s23_s19  }
   0x4   : > { %p341_p1 = scmp.lt.s32.totalorder %s7440_s19, 3 }
   0x6   : > { %p342_p2 = pnand %p5593_p0, %p341_p1 }
   0x7   : > { %v7001_v1 = vld [vmem:[%s8777_s1 + $0x40] sm:$0xff] (!%p342_p2)   ;;  %s5594_s10 = sshll.u32 (!%p342_p2), %s7514_s20, 5  ;;  %v7003_v3 = vld [vmem:[%s8777_s1 + $0x48] sm:$0xff] (!%p342_p2)   ;;  %v7005_v5 = vld [vmem:[%s8777_s1 + $0x50] sm:$0xff] (!%p342_p2)   ;;  %v7442_v44 = vmov (!%p342_p2), 0   ;;  %p387_p4 = scmp.lt.s32.totalorder (!%p342_p2), %s7514_s20, 1 }
   0x8   : > { %345 = sbr.rel (%p342_p2) target bundleno = 2195 (0x893), region = 64  ;;  %v7002_v2 = vld [vmem:[%s8777_s1] sm:$0xff] (!%p342_p2)   ;;  %5970 = vmatprep.subr.bf16.mxu0 (!%p342_p2), %v7001_v1  ;;  %v7004_v4 = vld [vmem:[%s8777_s1 + $0x8] sm:$0xff] (!%p342_p2)   ;;  %p381_p3 = scmp.lt.s32.totalorder (!%p342_p2), %s5594_s10, 63  ;;  %v7006_v6 = vld [vmem:[%s8777_s1 + $0x10] sm:$0xff] (!%p342_p2)   ;;  %2110 = vmatprep.subr.bf16.mxu1 (!%p342_p2), %v7442_v44 }
   0x9   : > { %5971 = vmatpush3.bf16.msra.mxu0 (!%p342_p2), %v7002_v2  ;;  %v7007_v7 = vld [vmem:[%s8777_s1 + $0x58] sm:$0xff] (!%p342_p2)   ;;  %v7009_v9 = vld [vmem:[%s8777_s1 + $0x60] sm:$0xff] (!%p342_p2)   ;;  %v7011_v11 = vld [vmem:[%s8777_s1 + $0x68] sm:$0xff] (!%p342_p2)   ;;  %6999 = vset.pattern.permute.xlu1 (!%p342_p2), %v7442_v44 }
   0xa   : > { %5972 = vmatprep.subr.bf16.mxu0 (!%p342_p2), %v7003_v3  ;;  %v7008_v8 = vld [vmem:[%s8777_s1 + $0x18] sm:$0xff] (!%p342_p2)   ;;  %v7010_v10 = vld [vmem:[%s8777_s1 + $0x20] sm:$0xff] (!%p342_p2)   ;;  %v7012_v13 = vld [vmem:[%s8777_s1 + $0x28] sm:$0xff] (!%p342_p2)   ;;  %7000 = vset.pattern.permute.xlu0 (!%p342_p2), %v7442_v44 }
   0xb   : > { %v7013_v14 = vld [vmem:[%s8777_s1 + $0x70] sm:$0xff] (!%p342_p2)   ;;  %v7015_v16 = vld [vmem:[%s8777_s1 + $0x78] sm:$0xff] (!%p342_p2)   ;;  %v7610_v51 = vld [vmem:[%s8778_s2] ss:$0 sm:$0xff] (!%p342_p2) }
   0xc   : > { %v7014_v15 = vld [vmem:[%s8777_s1 + $0x30] sm:$0xff] (!%p342_p2)   ;;  %v7016_v17 = vld [vmem:[%s8777_s1 + $0x38] sm:$0xff] (!%p342_p2)   ;;  %v7067_v58 = vld [vmem:[%s8779_s3 + $0x4] ss:$8 sps:$4 sm:$0xff] (!%p342_p2)  }
   0xd   : > { %5973 = vmatpush3.bf16.msra.mxu0 (!%p342_p2), %v7004_v4  ;;  %2142 = vmatprep.mubr.bf16.mxu1 (!%p342_p2), %v7067_v58 }
   0xe   : > { %5974 = vmatprep.subr.bf16.mxu0 (!%p342_p2), %v7005_v5 }
   0xf   : > { %s8789_s10 = smov (!%p381_p3, %s5594_s10), 63  ;;  %s8791_s20 = smov (!%p387_p4, %s7514_s20), 1 }
  0x10   : > { %s5969_s18 = sshll.u32 %s8789_s10, 3  ;;  %s389_s24 = scalar_lea.vmem %s8787_s11, %s8791_s20 }
  0x11   : > { %5975 = vmatpush3.bf16.msra.mxu0 %v7006_v6  ;;  %s7549_s25 = scalar_lea.vmem %s8776_s0, %s5969_s18 }
  0x12   : > { %5976 = vmatprep.subr.bf16.mxu0 %v7007_v7  ;;  %v7019_v12 = vld [vmem:[%s7549_s25 + $0x4] ss:$8 sps:$4 sm:$0xff]   ;;  %v7017_v18 = vld [vmem:[%s7549_s25] ss:$8 sps:$4 sm:$0xff]   ;;  %v7020_v19 = vld [vmem:[%s7549_s25 + $0x14] ss:$8 sps:$4 sm:$0xff]  }
  0x13   : > { %750 = vmatprep.mubr.bf16.mxu0 %v7019_v12  ;;  %v7022_v20 = vld [vmem:[%s7549_s25 + $0x10] ss:$8 sps:$4 sm:$0xff]   ;;  %v7023_v21 = vld [vmem:[%s7549_s25 + $0x24] ss:$8 sps:$4 sm:$0xff]   ;;  %v7025_v22 = vld [vmem:[%s7549_s25 + $0x20] ss:$8 sps:$4 sm:$0xff]  }
  0x14   : > { %v7026_v23 = vld [vmem:[%s7549_s25 + $0x34] ss:$8 sps:$4 sm:$0xff]   ;;  %v7028_v24 = vld [vmem:[%s7549_s25 + $0x30] ss:$8 sps:$4 sm:$0xff]   ;;  %v7029_v25 = vld [vmem:[%s7549_s25 + $0x44] ss:$8 sps:$4 sm:$0xff]  }
  0x15   : > { %5977 = vmatpush3.bf16.msra.mxu0 %v7008_v8  ;;  %v7031_v26 = vld [vmem:[%s7549_s25 + $0x40] ss:$8 sps:$4 sm:$0xff]   ;;  %v7032_v27 = vld [vmem:[%s7549_s25 + $0x54] ss:$8 sps:$4 sm:$0xff]   ;;  %v7034_v28 = vld [vmem:[%s7549_s25 + $0x50] ss:$8 sps:$4 sm:$0xff]  }
  0x16   : > { %5978 = vmatprep.subr.bf16.mxu0 %v7009_v9  ;;  %v7035_v29 = vld [vmem:[%s7549_s25 + $0x64] ss:$8 sps:$4 sm:$0xff]   ;;  %v7037_v30 = vld [vmem:[%s7549_s25 + $0x60] ss:$8 sps:$4 sm:$0xff]   ;;  %v7038_v31 = vld [vmem:[%s7549_s25 + $0x74] ss:$8 sps:$4 sm:$0xff]  }
  0x17   : > { %v7040_v32 = vld [vmem:[%s7549_s25 + $0x70] ss:$8 sps:$4 sm:$0xff]   ;;  %v7041_v33 = vld [vmem:[%s7549_s25 + $0x84] ss:$8 sps:$4 sm:$0xff]   ;;  %v7043_v34 = vld [vmem:[%s7549_s25 + $0x80] ss:$8 sps:$4 sm:$0xff]  }
  0x18   : > { %v7044_v35 = vld [vmem:[%s7549_s25 + $0x94] ss:$8 sps:$4 sm:$0xff]   ;;  %v7046_v36 = vld [vmem:[%s7549_s25 + $0x90] ss:$8 sps:$4 sm:$0xff]   ;;  %v7047_v37 = vld [vmem:[%s7549_s25 + $0xa4] ss:$8 sps:$4 sm:$0xff]  }
  0x19   : > { %5979 = vmatpush3.bf16.msra.mxu0 %v7010_v10  ;;  %v7049_v38 = vld [vmem:[%s7549_s25 + $0xa0] ss:$8 sps:$4 sm:$0xff]   ;;  %v7050_v39 = vld [vmem:[%s7549_s25 + $0xb4] ss:$8 sps:$4 sm:$0xff]   ;;  %v7052_v40 = vld [vmem:[%s7549_s25 + $0xb0] ss:$8 sps:$4 sm:$0xff]  }
  0x1a   : > { %5980 = vmatprep.subr.bf16.mxu0 %v7011_v11  ;;  %v7053_v41 = vld [vmem:[%s7549_s25 + $0xc4] ss:$8 sps:$4 sm:$0xff]   ;;  %v7055_v42 = vld [vmem:[%s7549_s25 + $0xc0] ss:$8 sps:$4 sm:$0xff]   ;;  %v7056_v43 = vld [vmem:[%s7549_s25 + $0xd4] ss:$8 sps:$4 sm:$0xff]  }
  0x1b   : > { %v7058_v45 = vld [vmem:[%s7549_s25 + $0xd0] ss:$8 sps:$4 sm:$0xff]   ;;  %v7059_v46 = vld [vmem:[%s7549_s25 + $0xe4] ss:$8 sps:$4 sm:$0xff]   ;;  %v7061_v47 = vld [vmem:[%s7549_s25 + $0xe0] ss:$8 sps:$4 sm:$0xff]  }
  0x1c   : > { %v7062_v48 = vld [vmem:[%s7549_s25 + $0xf4] ss:$8 sps:$4 sm:$0xff]   ;;  %v7064_v49 = vld [vmem:[%s7549_s25 + $0xf0] ss:$8 sps:$4 sm:$0xff]  }
  0x1d   : > { %5981 = vmatpush3.bf16.msra.mxu0 %v7012_v13 }
  0x1e   : > { %5982 = vmatprep.subr.bf16.mxu0 %v7013_v14 }
  0x21   : > { %5983 = vmatpush3.bf16.msra.mxu0 %v7014_v15 }
  0x22   : > { %5984 = vmatprep.subr.bf16.mxu0 %v7015_v16 }
  0x25   : > { %5985 = vmatpush3.bf16.msra.mxu0 %v7016_v17 }
  0x28   : > { %751 = vmatmul.mubr.bf16.vlgmr.msra.gmra.mrb[0].mxu0 %v7017_v18 }
  0x29   : > { %758 = vmatprep.mubr.bf16.mxu0 %v7020_v19 }
  0x30   : > { %759 = vmatmul.mubr.bf16.gmra.mrb[4].mxu0 %v7022_v20 }
  0x31   : > { %766 = vmatprep.mubr.bf16.mxu0 %v7023_v21 }
  0x38   : > { %767 = vmatmul.mubr.bf16.gmra.mrb[8].mxu0 %v7025_v22 }
  0x39   : > { %774 = vmatprep.mubr.bf16.mxu0 %v7026_v23 }
  0x40   : > { %775 = vmatmul.mubr.bf16.gmra.mrb[12].mxu0 %v7028_v24 }
  0x41   : > { %782 = vmatprep.mubr.bf16.mxu0 %v7029_v25 }
  0x48   : > { %783 = vmatmul.mubr.bf16.gmra.mrb[16].mxu0 %v7031_v26 }
  0x49   : > { %790 = vmatprep.mubr.bf16.mxu0 %v7032_v27 }
  0x50   : > { %791 = vmatmul.mubr.bf16.gmra.mrb[20].mxu0 %v7034_v28 }
  0x51   : > { %798 = vmatprep.mubr.bf16.mxu0 %v7035_v29 }
  0x58   : > { %799 = vmatmul.mubr.bf16.gmra.mrb[24].mxu0 %v7037_v30 }
  0x59   : > { %806 = vmatprep.mubr.bf16.mxu0 %v7038_v31 }
  0x60   : > { %807 = vmatmul.mubr.bf16.gmra.mrb[28].mxu0 %v7040_v32 }
  0x61   : > { %814 = vmatprep.mubr.bf16.mxu0 %v7041_v33 }
  0x68   : > { %815 = vmatmul.mubr.bf16.gmra.mrb[32].mxu0 %v7043_v34 }
  0x69   : > { %822 = vmatprep.mubr.bf16.mxu0 %v7044_v35 }
  0x70   : > { %823 = vmatmul.mubr.bf16.gmra.mrb[36].mxu0 %v7046_v36 }
  0x71   : > { %830 = vmatprep.mubr.bf16.mxu0 %v7047_v37 }
  0x78   : > { %831 = vmatmul.mubr.bf16.gmra.mrb[40].mxu0 %v7049_v38 }
  0x79   : > { %838 = vmatprep.mubr.bf16.mxu0 %v7050_v39 }
  0x80   : > { %839 = vmatmul.mubr.bf16.gmra.mrb[44].mxu0 %v7052_v40 }
  0x81   : > { %846 = vmatprep.mubr.bf16.mxu0 %v7053_v41 }
  0x88   : > { %847 = vmatmul.mubr.bf16.gmra.mrb[48].mxu0 %v7055_v42 }
  0x89   : > { %854 = vmatprep.mubr.bf16.mxu0 %v7056_v43 }
  0x90   : > { %855 = vmatmul.mubr.bf16.gmra.mrb[52].mxu0 %v7058_v45 }
  0x91   : > { %862 = vmatprep.mubr.bf16.mxu0 %v7059_v46 }
  0x98   : > { %863 = vmatmul.mubr.bf16.gmra.mrb[56].mxu0 %v7061_v47 }
  0x99   : > { %870 = vmatprep.mubr.bf16.mxu0 %v7062_v48 }
  0xa0   : > { %871 = vmatmul.mubr.bf16.gmra.mrb[60].mxu0 %v7064_v49 }
  0xfb   : > { %v5986_v50 = vpop.f32.mrb[0].mxu0 }
  0xfc   : > { %v5987_v52 = vpop.f32.mrb[1].mxu0 }
  0xfd   : > { %v5988_v53 = vadd.f32 %v5987_v52, %v5986_v50  ;;  %v5989_v54 = vpop.f32.mrb[2].mxu0 }
  0xfe   : > { %v5990_v55 = vpop.f32.mrb[3].mxu0 }
  0xff   : > { %v753_v56 = vadd.f32 %v5988_v53, %v7610_v51  ;;  %v5991_v57 = vadd.f32 %v5990_v55, %v5989_v54 }
 0x101   : > { %v756_v59 = vadd.f32 %v5991_v57, %v7610_v51  ;;  %v911_v60 = vmul.f32 0.01, %v753_v56  ;;  %vm879_vm0 = vcmp.gt.f32.partialorder %v753_v56, 0.0 }
 0x103   : > { %v5992_v61 = vpop.f32.mrb[4].mxu0  ;;  %vm880_vm1 = vcmp.gt.f32.partialorder %v756_v59, 0.0  ;;  %v912_v62 = vmul.f32 0.01, %v756_v59  ;;  %v943_v2 = vsel %vm879_vm0, %v753_v56, %v911_v60 }
 0x104   : > { %v5993_v63 = vpop.f32.mrb[5].mxu0 }
 0x105   : > { %v5994_v0 = vadd.f32 %v5993_v63, %v5992_v61  ;;  %v5995_v1 = vpop.f32.mrb[6].mxu0  ;;  %v944_v3 = vsel %vm880_vm1, %v756_v59, %v912_v62 }
 0x106   : > { %v5996_v4 = vpop.f32.mrb[7].mxu0  ;;  %v975_v5 = vpack.c.bf16 %v944_v3, %v943_v2 }
 0x107   : > { %v761_v6 = vadd.f32 %v5994_v0, %v7610_v51  ;;  %v5997_v7 = vadd.f32 %v5996_v4, %v5995_v1 }
 0x108   : > { %2111 = vmatpush1.bf16.msra.mxu1 %v975_v5 }
 0x109   : > { %v913_v8 = vmul.f32 0.01, %v761_v6  ;;  %v764_v9 = vadd.f32 %v5997_v7, %v7610_v51  ;;  %2112 = vmatprep.subr.bf16.mxu1 %v7442_v44  ;;  %vm881_vm2 = vcmp.gt.f32.partialorder %v761_v6, 0.0 }
 0x10b   : > { %vm882_vm3 = vcmp.gt.f32.partialorder %v764_v9, 0.0  ;;  %v914_v10 = vmul.f32 0.01, %v764_v9  ;;  %v5998_v11 = vpop.f32.mrb[8].mxu0  ;;  %v945_v15 = vsel %vm881_vm2, %v761_v6, %v913_v8 }
 0x10c   : > { %v5999_v12 = vpop.f32.mrb[9].mxu0 }
 0x10d   : > { %v6000_v13 = vadd.f32 %v5999_v12, %v5998_v11  ;;  %v6001_v14 = vpop.f32.mrb[10].mxu0  ;;  %v946_v16 = vsel %vm882_vm3, %v764_v9, %v914_v10 }
 0x10e   : > { %v6002_v17 = vpop.f32.mrb[11].mxu0  ;;  %v976_v18 = vpack.c.bf16 %v946_v16, %v945_v15 }
 0x10f   : > { %v769_v19 = vadd.f32 %v6000_v13, %v7610_v51  ;;  %v6003_v20 = vadd.f32 %v6002_v17, %v6001_v14 }
 0x110   : > { %2113 = vmatpush1.bf16.msra.mxu1 %v976_v18 }
 0x111   : > { %v915_v21 = vmul.f32 0.01, %v769_v19  ;;  %v772_v22 = vadd.f32 %v6003_v20, %v7610_v51  ;;  %2114 = vmatprep.subr.bf16.mxu1 %v7442_v44  ;;  %vm883_vm4 = vcmp.gt.f32.partialorder %v769_v19, 0.0 }
 0x113   : > { %vm884_vm5 = vcmp.gt.f32.partialorder %v772_v22, 0.0  ;;  %v916_v23 = vmul.f32 0.01, %v772_v22  ;;  %v6004_v24 = vpop.f32.mrb[12].mxu0  ;;  %v947_v28 = vsel %vm883_vm4, %v769_v19, %v915_v21 }
 0x114   : > { %v6005_v25 = vpop.f32.mrb[13].mxu0 }
 0x115   : > { %v6006_v26 = vadd.f32 %v6005_v25, %v6004_v24  ;;  %v6007_v27 = vpop.f32.mrb[14].mxu0  ;;  %v948_v29 = vsel %vm884_vm5, %v772_v22, %v916_v23 }
 0x116   : > { %v6008_v30 = vpop.f32.mrb[15].mxu0  ;;  %v977_v31 = vpack.c.bf16 %v948_v29, %v947_v28 }
 0x117   : > { %v777_v32 = vadd.f32 %v6006_v26, %v7610_v51  ;;  %v6009_v33 = vadd.f32 %v6008_v30, %v6007_v27 }
 0x118   : > { %2115 = vmatpush1.bf16.msra.mxu1 %v977_v31 }
 0x119   : > { %v917_v34 = vmul.f32 0.01, %v777_v32  ;;  %v780_v35 = vadd.f32 %v6009_v33, %v7610_v51  ;;  %2116 = vmatprep.subr.bf16.mxu1 %v7442_v44  ;;  %vm885_vm6 = vcmp.gt.f32.partialorder %v777_v32, 0.0 }
 0x11b   : > { %vm886_vm7 = vcmp.gt.f32.partialorder %v780_v35, 0.0  ;;  %v918_v36 = vmul.f32 0.01, %v780_v35  ;;  %v6010_v37 = vpop.f32.mrb[16].mxu0  ;;  %v949_v41 = vsel %vm885_vm6, %v777_v32, %v917_v34 }
 0x11c   : > { %v6011_v38 = vpop.f32.mrb[17].mxu0 }
 0x11d   : > { %v6012_v39 = vadd.f32 %v6011_v38, %v6010_v37  ;;  %v6013_v40 = vpop.f32.mrb[18].mxu0  ;;  %v950_v42 = vsel %vm886_vm7, %v780_v35, %v918_v36 }
 0x11e   : > { %v6014_v43 = vpop.f32.mrb[19].mxu0  ;;  %v978_v45 = vpack.c.bf16 %v950_v42, %v949_v41 }
 0x11f   : > { %v785_v46 = vadd.f32 %v6012_v39, %v7610_v51  ;;  %v6015_v47 = vadd.f32 %v6014_v43, %v6013_v40 }
 0x120   : > { %2117 = vmatpush1.bf16.msra.mxu1 %v978_v45 }
 0x121   : > { %v919_v48 = vmul.f32 0.01, %v785_v46  ;;  %v788_v49 = vadd.f32 %v6015_v47, %v7610_v51  ;;  %2118 = vmatprep.subr.bf16.mxu1 %v7442_v44  ;;  %vm887_vm8 = vcmp.gt.f32.partialorder %v785_v46, 0.0 }
 0x123   : > { %vm888_vm9 = vcmp.gt.f32.partialorder %v788_v49, 0.0  ;;  %v920_v50 = vmul.f32 0.01, %v788_v49  ;;  %v6016_v52 = vpop.f32.mrb[20].mxu0  ;;  %v951_v56 = vsel %vm887_vm8, %v785_v46, %v919_v48 }
 0x124   : > { %v6017_v53 = vpop.f32.mrb[21].mxu0 }
 0x125   : > { %v6018_v54 = vadd.f32 %v6017_v53, %v6016_v52  ;;  %v6019_v55 = vpop.f32.mrb[22].mxu0  ;;  %v952_v57 = vsel %vm888_vm9, %v788_v49, %v920_v50 }
 0x126   : > { %v6020_v58 = vpop.f32.mrb[23].mxu0  ;;  %v979_v59 = vpack.c.bf16 %v952_v57, %v951_v56 }
 0x127   : > { %v793_v60 = vadd.f32 %v6018_v54, %v7610_v51  ;;  %v6021_v61 = vadd.f32 %v6020_v58, %v6019_v55 }
 0x128   : > { %2119 = vmatpush1.bf16.msra.mxu1 %v979_v59 }
 0x129   : > { %v921_v62 = vmul.f32 0.01, %v793_v60  ;;  %v796_v63 = vadd.f32 %v6021_v61, %v7610_v51  ;;  %2120 = vmatprep.subr.bf16.mxu1 %v7442_v44  ;;  %vm889_vm10 = vcmp.gt.f32.partialorder %v793_v60, 0.0 }
 0x12b   : > { %vm890_vm11 = vcmp.gt.f32.partialorder %v796_v63, 0.0  ;;  %v922_v0 = vmul.f32 0.01, %v796_v63  ;;  %v6022_v1 = vpop.f32.mrb[24].mxu0  ;;  %v953_v5 = vsel %vm889_vm10, %v793_v60, %v921_v62 }
 0x12c   : > { %v6023_v2 = vpop.f32.mrb[25].mxu0 }
 0x12d   : > { %v6024_v3 = vadd.f32 %v6023_v2, %v6022_v1  ;;  %v6025_v4 = vpop.f32.mrb[26].mxu0  ;;  %v954_v6 = vsel %vm890_vm11, %v796_v63, %v922_v0 }
 0x12e   : > { %v6026_v7 = vpop.f32.mrb[27].mxu0  ;;  %v980_v8 = vpack.c.bf16 %v954_v6, %v953_v5 }
 0x12f   : > { %v801_v9 = vadd.f32 %v6024_v3, %v7610_v51  ;;  %v6027_v10 = vadd.f32 %v6026_v7, %v6025_v4 }
 0x130   : > { %2121 = vmatpush1.bf16.msra.mxu1 %v980_v8 }
 0x131   : > { %v923_v11 = vmul.f32 0.01, %v801_v9  ;;  %v804_v12 = vadd.f32 %v6027_v10, %v7610_v51  ;;  %2122 = vmatprep.subr.bf16.mxu1 %v7442_v44  ;;  %vm891_vm12 = vcmp.gt.f32.partialorder %v801_v9, 0.0 }
 0x133   : > { %vm892_vm13 = vcmp.gt.f32.partialorder %v804_v12, 0.0  ;;  %v924_v13 = vmul.f32 0.01, %v804_v12  ;;  %v6028_v14 = vpop.f32.mrb[28].mxu0  ;;  %v955_v18 = vsel %vm891_vm12, %v801_v9, %v923_v11 }
 0x134   : > { %v6029_v15 = vpop.f32.mrb[29].mxu0 }
 0x135   : > { %v6030_v16 = vadd.f32 %v6029_v15, %v6028_v14  ;;  %v6031_v17 = vpop.f32.mrb[30].mxu0  ;;  %v956_v19 = vsel %vm892_vm13, %v804_v12, %v924_v13 }
 0x136   : > { %v6032_v20 = vpop.f32.mrb[31].mxu0  ;;  %v981_v21 = vpack.c.bf16 %v956_v19, %v955_v18 }
 0x137   : > { %v809_v22 = vadd.f32 %v6030_v16, %v7610_v51  ;;  %v6033_v23 = vadd.f32 %v6032_v20, %v6031_v17 }
 0x138   : > { %2123 = vmatpush1.bf16.msra.mxu1 %v981_v21 }
 0x139   : > { %v925_v24 = vmul.f32 0.01, %v809_v22  ;;  %v812_v25 = vadd.f32 %v6033_v23, %v7610_v51  ;;  %2124 = vmatprep.subr.bf16.mxu1 %v7442_v44  ;;  %vm893_vm14 = vcmp.gt.f32.partialorder %v809_v22, 0.0 }
 0x13b   : > { %vm894_vm15 = vcmp.gt.f32.partialorder %v812_v25, 0.0  ;;  %v926_v26 = vmul.f32 0.01, %v812_v25  ;;  %v6034_v27 = vpop.f32.mrb[32].mxu0  ;;  %v957_v31 = vsel %vm893_vm14, %v809_v22, %v925_v24 }
 0x13c   : > { %v6035_v28 = vpop.f32.mrb[33].mxu0 }
 0x13d   : > { %v6036_v29 = vadd.f32 %v6035_v28, %v6034_v27  ;;  %v6037_v30 = vpop.f32.mrb[34].mxu0  ;;  %v958_v32 = vsel %vm894_vm15, %v812_v25, %v926_v26 }
 0x13e   : > { %v6038_v33 = vpop.f32.mrb[35].mxu0  ;;  %v982_v34 = vpack.c.bf16 %v958_v32, %v957_v31 }
 0x13f   : > { %v817_v35 = vadd.f32 %v6036_v29, %v7610_v51  ;;  %v6039_v36 = vadd.f32 %v6038_v33, %v6037_v30 }
 0x140   : > { %2125 = vmatpush1.bf16.msra.mxu1 %v982_v34 }
 0x141   : > { %v927_v37 = vmul.f32 0.01, %v817_v35  ;;  %v820_v38 = vadd.f32 %v6039_v36, %v7610_v51  ;;  %2126 = vmatprep.subr.bf16.mxu1 %v7442_v44  ;;  %vm895_vm0 = vcmp.gt.f32.partialorder %v817_v35, 0.0 }
 0x143   : > { %vm896_vm1 = vcmp.gt.f32.partialorder %v820_v38, 0.0  ;;  %v928_v39 = vmul.f32 0.01, %v820_v38  ;;  %v6040_v40 = vpop.f32.mrb[36].mxu0  ;;  %v959_v45 = vsel %vm895_vm0, %v817_v35, %v927_v37  ;;  %vm7444_vm0 = vmmov 0  }
 0x144   : > { %v6041_v41 = vpop.f32.mrb[37].mxu0 }
 0x145   : > { %v6042_v42 = vadd.f32 %v6041_v41, %v6040_v40  ;;  %v6043_v43 = vpop.f32.mrb[38].mxu0  ;;  %v960_v46 = vsel %vm896_vm1, %v820_v38, %v928_v39 }
 0x146   : > { %v6044_v47 = vpop.f32.mrb[39].mxu0  ;;  %v983_v48 = vpack.c.bf16 %v960_v46, %v959_v45 }
 0x147   : > { %v825_v49 = vadd.f32 %v6042_v42, %v7610_v51  ;;  %v6045_v50 = vadd.f32 %v6044_v47, %v6043_v43 }
 0x148   : > { %2127 = vmatpush1.bf16.msra.mxu1 %v983_v48 }
 0x149   : > { %v929_v52 = vmul.f32 0.01, %v825_v49  ;;  %v828_v53 = vadd.f32 %v6045_v50, %v7610_v51  ;;  %2128 = vmatprep.subr.bf16.mxu1 %v7442_v44  ;;  %vm897_vm2 = vcmp.gt.f32.partialorder %v825_v49, 0.0 }
 0x14b   : > { %vm898_vm3 = vcmp.gt.f32.partialorder %v828_v53, 0.0  ;;  %v930_v54 = vmul.f32 0.01, %v828_v53  ;;  %v6046_v55 = vpop.f32.mrb[40].mxu0  ;;  %v961_v59 = vsel %vm897_vm2, %v825_v49, %v929_v52 }
 0x14c   : > { %v6047_v56 = vpop.f32.mrb[41].mxu0 }
 0x14d   : > { %v6048_v57 = vadd.f32 %v6047_v56, %v6046_v55  ;;  %v6049_v58 = vpop.f32.mrb[42].mxu0  ;;  %v962_v60 = vsel %vm898_vm3, %v828_v53, %v930_v54 }
 0x14e   : > { %v6050_v61 = vpop.f32.mrb[43].mxu0  ;;  %v984_v62 = vpack.c.bf16 %v962_v60, %v961_v59 }
 0x14f   : > { %v833_v63 = vadd.f32 %v6048_v57, %v7610_v51  ;;  %v6051_v0 = vadd.f32 %v6050_v61, %v6049_v58 }
 0x150   : > { %2129 = vmatpush1.bf16.msra.mxu1 %v984_v62 }
 0x151   : > { %v931_v1 = vmul.f32 0.01, %v833_v63  ;;  %v836_v2 = vadd.f32 %v6051_v0, %v7610_v51  ;;  %2130 = vmatprep.subr.bf16.mxu1 %v7442_v44  ;;  %vm899_vm4 = vcmp.gt.f32.partialorder %v833_v63, 0.0 }
 0x153   : > { %vm900_vm5 = vcmp.gt.f32.partialorder %v836_v2, 0.0  ;;  %v932_v3 = vmul.f32 0.01, %v836_v2  ;;  %v6052_v4 = vpop.f32.mrb[44].mxu0  ;;  %v963_v8 = vsel %vm899_vm4, %v833_v63, %v931_v1 }
 0x154   : > { %v6053_v5 = vpop.f32.mrb[45].mxu0 }
 0x155   : > { %v6054_v6 = vadd.f32 %v6053_v5, %v6052_v4  ;;  %v6055_v7 = vpop.f32.mrb[46].mxu0  ;;  %v964_v9 = vsel %vm900_vm5, %v836_v2, %v932_v3 }
 0x156   : > { %v6056_v10 = vpop.f32.mrb[47].mxu0  ;;  %v985_v11 = vpack.c.bf16 %v964_v9, %v963_v8 }
 0x157   : > { %v841_v12 = vadd.f32 %v6054_v6, %v7610_v51  ;;  %v6057_v13 = vadd.f32 %v6056_v10, %v6055_v7  ;;  %v7065_v10 = vld [vmem:[%s8779_s3] ss:$8 sps:$4 sm:$0xff]  }
 0x158   : > { %2131 = vmatpush1.bf16.msra.mxu1 %v985_v11  ;;  %v7068_v11 = vld [vmem:[%s8779_s3 + $0x14] ss:$8 sps:$4 sm:$0xff]  }
 0x159   : > { %v933_v14 = vmul.f32 0.01, %v841_v12  ;;  %v844_v15 = vadd.f32 %v6057_v13, %v7610_v51  ;;  %2132 = vmatprep.subr.bf16.mxu1 %v7442_v44  ;;  %vm901_vm6 = vcmp.gt.f32.partialorder %v841_v12, 0.0  ;;  %v7074_v13 = vld [vmem:[%s8779_s3 + $0x34] ss:$8 sps:$4 sm:$0xff]  }
 0x15b   : > { %vm902_vm7 = vcmp.gt.f32.partialorder %v844_v15, 0.0  ;;  %v934_v16 = vmul.f32 0.01, %v844_v15  ;;  %v6058_v17 = vpop.f32.mrb[48].mxu0  ;;  %v965_v21 = vsel %vm901_vm6, %v841_v12, %v933_v14  ;;  %v7073_v12 = vld [vmem:[%s8779_s3 + $0x20] ss:$8 sps:$4 sm:$0xff]  }
 0x15c   : > { %v6059_v18 = vpop.f32.mrb[49].mxu0  ;;  %v7076_v14 = vld [vmem:[%s8779_s3 + $0x30] ss:$8 sps:$4 sm:$0xff]  }
 0x15d   : > { %v6060_v19 = vadd.f32 %v6059_v18, %v6058_v17  ;;  %v6061_v20 = vpop.f32.mrb[50].mxu0  ;;  %v966_v22 = vsel %vm902_vm7, %v844_v15, %v934_v16  ;;  %v7077_v15 = vld [vmem:[%s8779_s3 + $0x44] ss:$8 sps:$4 sm:$0xff]   ;;  %v7079_v16 = vld [vmem:[%s8779_s3 + $0x40] ss:$8 sps:$4 sm:$0xff]  }
 0x15e   : > { %v6062_v23 = vpop.f32.mrb[51].mxu0  ;;  %v986_v24 = vpack.c.bf16 %v966_v22, %v965_v21  ;;  %v7080_v17 = vld [vmem:[%s8779_s3 + $0x54] ss:$8 sps:$4 sm:$0xff]   ;;  %v7082_v18 = vld [vmem:[%s8779_s3 + $0x50] ss:$8 sps:$4 sm:$0xff]  }
 0x15f   : > { %v849_v25 = vadd.f32 %v6060_v19, %v7610_v51  ;;  %v6063_v26 = vadd.f32 %v6062_v23, %v6061_v20  ;;  %v7083_v19 = vld [vmem:[%s8779_s3 + $0x64] ss:$8 sps:$4 sm:$0xff]   ;;  %v7085_v20 = vld [vmem:[%s8779_s3 + $0x60] ss:$8 sps:$4 sm:$0xff]   ;;  %v7086_v21 = vld [vmem:[%s8779_s3 + $0x74] ss:$8 sps:$4 sm:$0xff]  }
 0x160   : > { %2133 = vmatpush1.bf16.msra.mxu1 %v986_v24  ;;  %v7088_v22 = vld [vmem:[%s8779_s3 + $0x70] ss:$8 sps:$4 sm:$0xff]   ;;  %v7089_v23 = vld [vmem:[%s8779_s3 + $0x84] ss:$8 sps:$4 sm:$0xff]   ;;  %v7091_v24 = vld [vmem:[%s8779_s3 + $0x80] ss:$8 sps:$4 sm:$0xff]  }
 0x161   : > { %v935_v27 = vmul.f32 0.01, %v849_v25  ;;  %v852_v28 = vadd.f32 %v6063_v26, %v7610_v51  ;;  %2134 = vmatprep.subr.bf16.mxu1 %v7442_v44  ;;  %vm903_vm8 = vcmp.gt.f32.partialorder %v849_v25, 0.0  ;;  %v7094_v26 = vld [vmem:[%s8779_s3 + $0x90] ss:$8 sps:$4 sm:$0xff]  }
 0x163   : > { %vm904_vm9 = vcmp.gt.f32.partialorder %v852_v28, 0.0  ;;  %v936_v29 = vmul.f32 0.01, %v852_v28  ;;  %v6064_v30 = vpop.f32.mrb[52].mxu0  ;;  %v967_v34 = vsel %vm903_vm8, %v849_v25, %v935_v27  ;;  %v7092_v25 = vld [vmem:[%s8779_s3 + $0x94] ss:$8 sps:$4 sm:$0xff]  }
 0x164   : > { %v6065_v31 = vpop.f32.mrb[53].mxu0  ;;  %v7095_v27 = vld [vmem:[%s8779_s3 + $0xa4] ss:$8 sps:$4 sm:$0xff]  }
 0x165   : > { %v6066_v32 = vadd.f32 %v6065_v31, %v6064_v30  ;;  %v6067_v33 = vpop.f32.mrb[54].mxu0  ;;  %v968_v35 = vsel %vm904_vm9, %v852_v28, %v936_v29  ;;  %v7097_v28 = vld [vmem:[%s8779_s3 + $0xa0] ss:$8 sps:$4 sm:$0xff]   ;;  %v7098_v29 = vld [vmem:[%s8779_s3 + $0xb4] ss:$8 sps:$4 sm:$0xff]   ;;  %vm4726_vm9 = vcmask 523264  }
 0x166   : > { %v6068_v36 = vpop.f32.mrb[55].mxu0  ;;  %v987_v37 = vpack.c.bf16 %v968_v35, %v967_v34  ;;  %v7100_v30 = vld [vmem:[%s8779_s3 + $0xb0] ss:$8 sps:$4 sm:$0xff]   ;;  %v7101_v31 = vld [vmem:[%s8779_s3 + $0xc4] ss:$8 sps:$4 sm:$0xff]  }
 0x167   : > { %v857_v38 = vadd.f32 %v6066_v32, %v7610_v51  ;;  %v6069_v39 = vadd.f32 %v6068_v36, %v6067_v33  ;;  %v7103_v32 = vld [vmem:[%s8779_s3 + $0xc0] ss:$8 sps:$4 sm:$0xff]   ;;  %v7104_v33 = vld [vmem:[%s8779_s3 + $0xd4] ss:$8 sps:$4 sm:$0xff]   ;;  %v7106_v36 = vld [vmem:[%s8779_s3 + $0xd0] ss:$8 sps:$4 sm:$0xff]  }
 0x168   : > { %2135 = vmatpush1.bf16.msra.mxu1 %v987_v37  ;;  %v7143_v34 = vld [vmem:[%s8780_s4 + $0x40] sm:$0xff]   ;;  %v7144_v35 = vld [vmem:[%s8780_s4 + $0x48] sm:$0xff]  }
 0x169   : > { %v937_v40 = vmul.f32 0.01, %v857_v38  ;;  %v860_v41 = vadd.f32 %v6069_v39, %v7610_v51  ;;  %2136 = vmatprep.subr.bf16.mxu1 %v7442_v44  ;;  %vm905_vm10 = vcmp.gt.f32.partialorder %v857_v38, 0.0  ;;  %6332 = vmatprep.subr.bf16.mxu0 %v7143_v34  ;;  %v7107_v37 = vld [vmem:[%s8779_s3 + $0xe4] ss:$8 sps:$4 sm:$0xff]   ;;  %v7149_v39 = vld [vmem:[%s8780_s4 + $0x58] sm:$0xff]  }
 0x16a   : > { %6333 = vmatpush3.bf16.msra.mxu0 %v7143_v34 }
 0x16b   : > { %vm906_vm11 = vcmp.gt.f32.partialorder %v860_v41, 0.0  ;;  %v938_v42 = vmul.f32 0.01, %v860_v41  ;;  %v6070_v43 = vpop.f32.mrb[56].mxu0  ;;  %v969_v48 = vsel %vm905_vm10, %v857_v38, %v937_v40  ;;  %6334 = vmatprep.subr.bf16.mxu0 %v7144_v35  ;;  %v7148_v38 = vld [vmem:[%s8780_s4 + $0x50] sm:$0xff]  }
 0x16c   : > { %v6071_v45 = vpop.f32.mrb[57].mxu0  ;;  %v7109_v40 = vld [vmem:[%s8779_s3 + $0xe0] ss:$8 sps:$4 sm:$0xff]  }
 0x16d   : > { %v6072_v46 = vadd.f32 %v6071_v45, %v6070_v43  ;;  %v6073_v47 = vpop.f32.mrb[58].mxu0  ;;  %v970_v49 = vsel %vm906_vm11, %v860_v41, %v938_v42  ;;  %v7110_v41 = vld [vmem:[%s8779_s3 + $0xf4] ss:$8 sps:$4 sm:$0xff]   ;;  %v7153_v42 = vld [vmem:[%s8780_s4 + $0x60] sm:$0xff]   ;;  %v7154_v43 = vld [vmem:[%s8780_s4 + $0x68] sm:$0xff]  }
 0x16e   : > { %v6074_v50 = vpop.f32.mrb[59].mxu0  ;;  %v988_v52 = vpack.c.bf16 %v970_v49, %v969_v48  ;;  %6335 = vmatpush3.bf16.msra.mxu0 %v7144_v35  ;;  %v7112_v45 = vld [vmem:[%s8779_s3 + $0xf0] ss:$8 sps:$4 sm:$0xff]   ;;  %v7115_v49 = vld [vmem:[%s8779_s3 + $0x100] ss:$8 sps:$4 sm:$0xff]  }
 0x16f   : > { %v865_v53 = vadd.f32 %v6072_v46, %v7610_v51  ;;  %v6075_v54 = vadd.f32 %v6074_v50, %v6073_v47  ;;  %6336 = vmatprep.subr.bf16.mxu0 %v7148_v38  ;;  %v7113_v46 = vld [vmem:[%s8779_s3 + $0x104] ss:$8 sps:$4 sm:$0xff]   ;;  %v7158_v47 = vld [vmem:[%s8780_s4 + $0x70] sm:$0xff]   ;;  %v7159_v48 = vld [vmem:[%s8780_s4 + $0x78] sm:$0xff]  }
 0x170   : > { %2137 = vmatpush1.bf16.msra.mxu1 %v988_v52  ;;  %v7116_v50 = vld [vmem:[%s8779_s3 + $0x114] ss:$8 sps:$4 sm:$0xff]   ;;  %v7791_v52 = vld [vmem:[%s8780_s4] sm:$0xff]  }
 0x171   : > { %v939_v55 = vmul.f32 0.01, %v865_v53  ;;  %v868_v56 = vadd.f32 %v6075_v54, %v7610_v51  ;;  %2138 = vmatprep.subr.bf16.mxu1 %v7442_v44  ;;  %vm907_vm12 = vcmp.gt.f32.partialorder %v865_v53, 0.0  ;;  %v7119_v54 = vld [vmem:[%s8779_s3 + $0x124] ss:$8 sps:$4 sm:$0xff]  }
 0x172   : > { %6337 = vmatpush3.bf16.msra.mxu0 %v7148_v38 }
 0x173   : > { %vm908_vm13 = vcmp.gt.f32.partialorder %v868_v56, 0.0  ;;  %v940_v57 = vmul.f32 0.01, %v868_v56  ;;  %v6076_v58 = vpop.f32.mrb[60].mxu0  ;;  %v971_v62 = vsel %vm907_vm12, %v865_v53, %v939_v55  ;;  %6338 = vmatprep.subr.bf16.mxu0 %v7149_v39  ;;  %v7118_v53 = vld [vmem:[%s8779_s3 + $0x110] ss:$8 sps:$4 sm:$0xff]  }
 0x174   : > { %v6077_v59 = vpop.f32.mrb[61].mxu0  ;;  %v7121_v55 = vld [vmem:[%s8779_s3 + $0x120] ss:$8 sps:$4 sm:$0xff]  }
 0x175   : > { %v6078_v60 = vadd.f32 %v6077_v59, %v6076_v58  ;;  %v6079_v61 = vpop.f32.mrb[62].mxu0  ;;  %v972_v63 = vsel %vm908_vm13, %v868_v56, %v940_v57  ;;  %v7122_v56 = vld [vmem:[%s8779_s3 + $0x134] ss:$8 sps:$4 sm:$0xff]   ;;  %v7124_v57 = vld [vmem:[%s8779_s3 + $0x130] ss:$8 sps:$4 sm:$0xff]  }
 0x176   : > { %v6080_v0 = vpop.f32.mrb[63].mxu0  ;;  %v989_v1 = vpack.c.bf16 %v972_v63, %v971_v62  ;;  %6339 = vmatpush3.bf16.msra.mxu0 %v7149_v39  ;;  %v7125_v58 = vld [vmem:[%s8779_s3 + $0x144] ss:$8 sps:$4 sm:$0xff]   ;;  %v7127_v59 = vld [vmem:[%s8779_s3 + $0x140] ss:$8 sps:$4 sm:$0xff]  }
 0x177   : > { %v873_v2 = vadd.f32 %v6078_v60, %v7610_v51  ;;  %v6081_v3 = vadd.f32 %v6080_v0, %v6079_v61  ;;  %6340 = vmatprep.subr.bf16.mxu0 %v7153_v42  ;;  %v7128_v60 = vld [vmem:[%s8779_s3 + $0x154] ss:$8 sps:$4 sm:$0xff]   ;;  %v7130_v61 = vld [vmem:[%s8779_s3 + $0x150] ss:$8 sps:$4 sm:$0xff]   ;;  %v7131_v62 = vld [vmem:[%s8779_s3 + $0x164] ss:$8 sps:$4 sm:$0xff]  }
 0x178   : > { %2139 = vmatpush1.bf16.msra.mxu1 %v989_v1  ;;  %v7133_v63 = vld [vmem:[%s8779_s3 + $0x160] ss:$8 sps:$4 sm:$0xff]   ;;  %v7134_v0 = vld [vmem:[%s8779_s3 + $0x174] ss:$8 sps:$4 sm:$0xff]   ;;  %v7136_v1 = vld [vmem:[%s8779_s3 + $0x170] ss:$8 sps:$4 sm:$0xff]  }
 0x179   : > { %v941_v4 = vmul.f32 0.01, %v873_v2  ;;  %v876_v5 = vadd.f32 %v6081_v3, %v7610_v51  ;;  %2140 = vmatprep.subr.bf16.mxu1 %v7442_v44  ;;  %vm909_vm14 = vcmp.gt.f32.partialorder %v873_v2, 0.0  ;;  %v7070_v44 = vld [vmem:[%s8779_s3 + $0x10] ss:$8 sps:$4 sm:$0xff]  }
 0x17a   : > { %v7071_v51 = vld [vmem:[%s8779_s3 + $0x24] ss:$8 sps:$4 sm:$0xff]   ;;  %6341 = vmatpush3.bf16.msra.mxu0 %v7153_v42  ;;  %v7139_v3 = vld [vmem:[%s8779_s3 + $0x180] ss:$8 sps:$4 sm:$0xff]  }
 0x17b   : > { %vm910_vm15 = vcmp.gt.f32.partialorder %v876_v5, 0.0  ;;  %v942_v6 = vmul.f32 0.01, %v876_v5  ;;  %v973_v7 = vsel %vm909_vm14, %v873_v2, %v941_v4  ;;  %6342 = vmatprep.subr.bf16.mxu0 %v7154_v43  ;;  %v7137_v2 = vld [vmem:[%s8779_s3 + $0x184] ss:$8 sps:$4 sm:$0xff]  }
 0x17c   : > { %v7140_v4 = vld [vmem:[%s8779_s3 + $0x194] ss:$8 sps:$4 sm:$0xff]   ;;  %v7175_v39 = vld [vmem:[%s8779_s3 + $0x204] ss:$8 sps:$4 sm:$0xff]  }
 0x17d   : > { %v974_v8 = vsel %vm910_vm15, %v876_v5, %v942_v6  ;;  %v7142_v5 = vld [vmem:[%s8779_s3 + $0x190] ss:$8 sps:$4 sm:$0xff]   ;;  %v7145_v6 = vld [vmem:[%s8779_s3 + $0x1a4] ss:$8 sps:$4 sm:$0xff]  }
 0x17e   : > { %v990_v9 = vpack.c.bf16 %v974_v8, %v973_v7  ;;  %6343 = vmatpush3.bf16.msra.mxu0 %v7154_v43  ;;  %v7147_v7 = vld [vmem:[%s8779_s3 + $0x1a0] ss:$8 sps:$4 sm:$0xff]   ;;  %v7150_v8 = vld [vmem:[%s8779_s3 + $0x1b4] ss:$8 sps:$4 sm:$0xff]  }
 0x17f   : > { %6344 = vmatprep.subr.bf16.mxu0 %v7158_v47 }
 0x180   : > { %2141 = vmatpush1.bf16.msra.mxu1 %v990_v9 }
 0x182   : > { %6345 = vmatpush3.bf16.msra.mxu0 %v7158_v47  ;;  %v7180_v47 = vld [vmem:[%s8779_s3 + $0x214] ss:$8 sps:$4 sm:$0xff]  }
 0x183   : > { %2143 = vmatmul.mubr.bf16.vlgmr.msra.gmra.mrb[0].mxu1 %v7065_v10  ;;  %6346 = vmatprep.subr.bf16.mxu0 %v7159_v48 }
 0x184   : > { %2150 = vmatprep.mubr.bf16.mxu1 %v7068_v11  ;;  %v7152_v11 = vld [vmem:[%s8779_s3 + $0x1b0] ss:$8 sps:$4 sm:$0xff]  }
 0x186   : > { %6347 = vmatpush3.bf16.msra.mxu0 %v7159_v48 }
 0x187   : > { %6356 = vmatprep.subr.bf16.mxu0 %v7791_v52 }
 0x18b   : > { %2151 = vmatmul.mubr.bf16.gmra.mrb[4].mxu1 %v7070_v44 }
 0x18c   : > { %2158 = vmatprep.mubr.bf16.mxu1 %v7071_v51  ;;  %v7155_v51 = vld [vmem:[%s8779_s3 + $0x1c4] ss:$8 sps:$4 sm:$0xff]  }
 0x193   : > { %2159 = vmatmul.mubr.bf16.gmra.mrb[8].mxu1 %v7073_v12 }
 0x194   : > { %2166 = vmatprep.mubr.bf16.mxu1 %v7074_v13 }
 0x19b   : > { %2167 = vmatmul.mubr.bf16.gmra.mrb[12].mxu1 %v7076_v14 }
 0x19c   : > { %2174 = vmatprep.mubr.bf16.mxu1 %v7077_v15 }
 0x1a3   : > { %2175 = vmatmul.mubr.bf16.gmra.mrb[16].mxu1 %v7079_v16  ;;  %v7157_v16 = vld [vmem:[%s8779_s3 + $0x1c0] ss:$8 sps:$4 sm:$0xff]  }
 0x1a4   : > { %2182 = vmatprep.mubr.bf16.mxu1 %v7080_v17 }
 0x1ab   : > { %2183 = vmatmul.mubr.bf16.gmra.mrb[20].mxu1 %v7082_v18  ;;  %v7160_v18 = vld [vmem:[%s8779_s3 + $0x1d4] ss:$8 sps:$4 sm:$0xff]  }
 0x1ac   : > { %2190 = vmatprep.mubr.bf16.mxu1 %v7083_v19 }
 0x1b3   : > { %2191 = vmatmul.mubr.bf16.gmra.mrb[24].mxu1 %v7085_v20 }
 0x1b4   : > { %2198 = vmatprep.mubr.bf16.mxu1 %v7086_v21 }
 0x1bb   : > { %2199 = vmatmul.mubr.bf16.gmra.mrb[28].mxu1 %v7088_v22 }
 0x1bc   : > { %2206 = vmatprep.mubr.bf16.mxu1 %v7089_v23  ;;  %v7162_v23 = vld [vmem:[%s8779_s3 + $0x1d0] ss:$8 sps:$4 sm:$0xff]  }
 0x1c3   : > { %2207 = vmatmul.mubr.bf16.gmra.mrb[32].mxu1 %v7091_v24 }
 0x1c4   : > { %2214 = vmatprep.mubr.bf16.mxu1 %v7092_v25  ;;  %v7165_v25 = vld [vmem:[%s8779_s3 + $0x1e4] ss:$8 sps:$4 sm:$0xff]  }
 0x1cb   : > { %2215 = vmatmul.mubr.bf16.gmra.mrb[36].mxu1 %v7094_v26 }
 0x1cc   : > { %2222 = vmatprep.mubr.bf16.mxu1 %v7095_v27 }
 0x1d3   : > { %2223 = vmatmul.mubr.bf16.gmra.mrb[40].mxu1 %v7097_v28 }
 0x1d4   : > { %2230 = vmatprep.mubr.bf16.mxu1 %v7098_v29 }
 0x1db   : > { %2231 = vmatmul.mubr.bf16.gmra.mrb[44].mxu1 %v7100_v30  ;;  %v7167_v30 = vld [vmem:[%s8779_s3 + $0x1e0] ss:$8 sps:$4 sm:$0xff]  }
 0x1dc   : > { %2238 = vmatprep.mubr.bf16.mxu1 %v7101_v31 }
 0x1e3   : > { %2239 = vmatmul.mubr.bf16.gmra.mrb[48].mxu1 %v7103_v32  ;;  %v7170_v32 = vld [vmem:[%s8779_s3 + $0x1f4] ss:$8 sps:$4 sm:$0xff]  }
 0x1e4   : > { %2246 = vmatprep.mubr.bf16.mxu1 %v7104_v33 }
 0x1eb   : > { %2247 = vmatmul.mubr.bf16.gmra.mrb[52].mxu1 %v7106_v36 }
 0x1ec   : > { %2254 = vmatprep.mubr.bf16.mxu1 %v7107_v37  ;;  %v7172_v37 = vld [vmem:[%s8779_s3 + $0x1f0] ss:$8 sps:$4 sm:$0xff]  }
 0x1f3   : > { %2255 = vmatmul.mubr.bf16.gmra.mrb[56].mxu1 %v7109_v40 }
 0x1f4   : > { %2262 = vmatprep.mubr.bf16.mxu1 %v7110_v41 }
 0x1fb   : > { %2263 = vmatmul.mubr.bf16.gmra.mrb[60].mxu1 %v7112_v45  ;;  %v7177_v45 = vld [vmem:[%s8779_s3 + $0x200] ss:$8 sps:$4 sm:$0xff]  }
 0x1fc   : > { %2270 = vmatprep.mubr.bf16.mxu1 %v7113_v46 }
 0x203   : > { %2271 = vmatmul.mubr.bf16.gmra.mrb[64].mxu1 %v7115_v49 }
 0x204   : > { %2278 = vmatprep.mubr.bf16.mxu1 %v7116_v50  ;;  %v7164_v50 = vld [vmem:[%s8780_s4 + $0x8] sm:$0xff]  }
 0x20b   : > { %2279 = vmatmul.mubr.bf16.gmra.mrb[68].mxu1 %v7118_v53  ;;  %v7168_v53 = vld [vmem:[%s8780_s4 + $0x10] sm:$0xff]  }
 0x20c   : > { %2286 = vmatprep.mubr.bf16.mxu1 %v7119_v54 }
 0x213   : > { %2287 = vmatmul.mubr.bf16.gmra.mrb[72].mxu1 %v7121_v55 }
 0x214   : > { %2294 = vmatprep.mubr.bf16.mxu1 %v7122_v56  ;;  %v7182_v56 = vld [vmem:[%s8779_s3 + $0x210] ss:$8 sps:$4 sm:$0xff]  }
 0x21b   : > { %2295 = vmatmul.mubr.bf16.gmra.mrb[76].mxu1 %v7124_v57 }
 0x21c   : > { %2302 = vmatprep.mubr.bf16.mxu1 %v7125_v58  ;;  %v7185_v58 = vld [vmem:[%s8779_s3 + $0x224] ss:$8 sps:$4 sm:$0xff]  }
 0x223   : > { %2303 = vmatmul.mubr.bf16.gmra.mrb[80].mxu1 %v7127_v59 }
 0x224   : > { %2310 = vmatprep.mubr.bf16.mxu1 %v7128_v60  ;;  %v7169_v60 = vld [vmem:[%s8780_s4 + $0x18] sm:$0xff]  }
 0x22b   : > { %2311 = vmatmul.mubr.bf16.gmra.mrb[84].mxu1 %v7130_v61  ;;  %v7173_v61 = vld [vmem:[%s8780_s4 + $0x20] sm:$0xff]  }
 0x22c   : > { %2318 = vmatprep.mubr.bf16.mxu1 %v7131_v62 }
 0x233   : > { %2319 = vmatmul.mubr.bf16.gmra.mrb[88].mxu1 %v7133_v63 }
 0x234   : > { %2326 = vmatprep.mubr.bf16.mxu1 %v7134_v0  ;;  %v7187_v0 = vld [vmem:[%s8779_s3 + $0x220] ss:$8 sps:$4 sm:$0xff]  }
 0x23b   : > { %2327 = vmatmul.mubr.bf16.gmra.mrb[92].mxu1 %v7136_v1 }
 0x23c   : > { %2334 = vmatprep.mubr.bf16.mxu1 %v7137_v2 }
 0x243   : > { %2335 = vmatmul.mubr.bf16.gmra.mrb[96].mxu1 %v7139_v3 }
 0x244   : > { %2342 = vmatprep.mubr.bf16.mxu1 %v7140_v4  ;;  %v7174_v4 = vld [vmem:[%s8780_s4 + $0x28] sm:$0xff]  }
 0x24b   : > { %2343 = vmatmul.mubr.bf16.gmra.mrb[100].mxu1 %v7142_v5  ;;  %v7190_v5 = vld [vmem:[%s8779_s3 + $0x234] ss:$8 sps:$4 sm:$0xff]  }
 0x24c   : > { %2350 = vmatprep.mubr.bf16.mxu1 %v7145_v6  ;;  %v7178_v6 = vld [vmem:[%s8780_s4 + $0x30] sm:$0xff]  }
 0x253   : > { %2351 = vmatmul.mubr.bf16.gmra.mrb[104].mxu1 %v7147_v7 }
 0x254   : > { %2358 = vmatprep.mubr.bf16.mxu1 %v7150_v8  ;;  %v7192_v8 = vld [vmem:[%s8779_s3 + $0x230] ss:$8 sps:$4 sm:$0xff]  }
 0x256   : > { %v7854_v9 = vpop.f32.mrb[0].mxu1 }
 0x257   : > { %v2146_v10 = vpop.f32.mrb[1].mxu1 }
 0x258   : > { %v7859_v44 = vpop.f32.mrb[2].mxu1 }
 0x259   : > { %v2655_v12 = vpack.c.bf16 %v7859_v44, %v7854_v9  ;;  %v2149_v13 = vpop.f32.mrb[3].mxu1  ;;  %v7179_v9 = vld [vmem:[%s8780_s4 + $0x38] sm:$0xff]  }
 0x25a   : > { %v7183_v13 = vld [vmem:[%s8780_s4 + $0x80] sm:$0xff]  }
 0x25b   : > { %2359 = vmatmul.mubr.bf16.gmra.mrb[108].mxu1 %v7152_v11 }
 0x25c   : > { %2366 = vmatprep.mubr.bf16.mxu1 %v7155_v51  ;;  %v7195_v51 = vld [vmem:[%s8779_s3 + $0x244] ss:$8 sps:$4 sm:$0xff]  }
 0x25e   : > { %v7866_v14 = vpop.f32.mrb[4].mxu1 }
 0x25f   : > { %v2154_v15 = vpop.f32.mrb[5].mxu1 }
 0x260   : > { %v7871_v17 = vpop.f32.mrb[6].mxu1 }
 0x261   : > { %v2656_v19 = vpack.c.bf16 %v7871_v17, %v7866_v14  ;;  %v2157_v20 = vpop.f32.mrb[7].mxu1  ;;  %v7189_v17 = vld [vmem:[%s8780_s4 + $0x98] sm:$0xff]  }
 0x263   : > { %2367 = vmatmul.mubr.bf16.gmra.mrb[112].mxu1 %v7157_v16  ;;  %v7197_v16 = vld [vmem:[%s8779_s3 + $0x240] ss:$8 sps:$4 sm:$0xff]  }
 0x264   : > { %2374 = vmatprep.mubr.bf16.mxu1 %v7160_v18 }
 0x266   : > { %v7878_v21 = vpop.f32.mrb[8].mxu1 }
 0x267   : > { %v2162_v22 = vpop.f32.mrb[9].mxu1 }
 0x268   : > { %v7883_v24 = vpop.f32.mrb[10].mxu1  ;;  %v7184_v22 = vld [vmem:[%s8780_s4 + $0x88] sm:$0xff]  }
 0x269   : > { %v2657_v26 = vpack.c.bf16 %v7883_v24, %v7878_v21  ;;  %v2165_v27 = vpop.f32.mrb[11].mxu1  ;;  %v7205_v24 = vld [vmem:[%s8779_s3 + $0x264] ss:$8 sps:$4 sm:$0xff]  }
 0x26a   : > { %v7200_v27 = vld [vmem:[%s8779_s3 + $0x254] ss:$8 sps:$4 sm:$0xff]  }
 0x26b   : > { %2375 = vmatmul.mubr.bf16.gmra.mrb[116].mxu1 %v7162_v23 }
 0x26c   : > { %2382 = vmatprep.mubr.bf16.mxu1 %v7165_v25 }
 0x26e   : > { %v7890_v28 = vpop.f32.mrb[12].mxu1 }
 0x26f   : > { %v2170_v29 = vpop.f32.mrb[13].mxu1 }
 0x270   : > { %v7895_v31 = vpop.f32.mrb[14].mxu1  ;;  %v7188_v29 = vld [vmem:[%s8780_s4 + $0x90] sm:$0xff]  }
 0x271   : > { %v2658_v33 = vpack.c.bf16 %v7895_v31, %v7890_v28  ;;  %v2173_v34 = vpop.f32.mrb[15].mxu1  ;;  %v7210_v28 = vld [vmem:[%s8779_s3 + $0x274] ss:$8 sps:$4 sm:$0xff]   ;;  %v7194_v31 = vld [vmem:[%s8780_s4 + $0xa8] sm:$0xff]  }
 0x273   : > { %2383 = vmatmul.mubr.bf16.gmra.mrb[120].mxu1 %v7167_v30 }
 0x274   : > { %2390 = vmatprep.mubr.bf16.mxu1 %v7170_v32  ;;  %v7202_v32 = vld [vmem:[%s8779_s3 + $0x250] ss:$8 sps:$4 sm:$0xff]  }
 0x276   : > { %v2176_v35 = vpop.f32.mrb[16].mxu1 }
 0x277   : > { %v2178_v36 = vpop.f32.mrb[17].mxu1 }
 0x278   : > { %v2179_v38 = vpop.f32.mrb[18].mxu1  ;;  %v7207_v36 = vld [vmem:[%s8779_s3 + $0x260] ss:$8 sps:$4 sm:$0xff]  }
 0x279   : > { %v2659_v40 = vpack.c.bf16 %v2179_v38, %v2176_v35  ;;  %v2181_v41 = vpop.f32.mrb[19].mxu1 }
 0x27b   : > { %6348 = vmatprep.mubr.bf16.mxu0 %v2659_v40  ;;  %2391 = vmatmul.mubr.bf16.gmra.mrb[124].mxu1 %v7172_v37  ;;  %v7198_v40 = vld [vmem:[%s8780_s4 + $0xb0] sm:$0xff]  }
 0x27c   : > { %2398 = vmatprep.mubr.bf16.mxu1 %v7175_v39 }
 0x27e   : > { %v2184_v42 = vpop.f32.mrb[20].mxu1 }
 0x27f   : > { %v2186_v43 = vpop.f32.mrb[21].mxu1 }
 0x280   : > { %v2187_v46 = vpop.f32.mrb[22].mxu1 }
 0x281   : > { %v2660_v48 = vpack.c.bf16 %v2187_v46, %v2184_v42  ;;  %v2189_v49 = vpop.f32.mrb[23].mxu1  ;;  %v7212_v42 = vld [vmem:[%s8779_s3 + $0x270] ss:$8 sps:$4 sm:$0xff]   ;;  %v7215_v46 = vld [vmem:[%s8779_s3 + $0x284] ss:$8 sps:$4 sm:$0xff]  }
 0x283   : > { %6349 = vmatmul.mubr.bf16.vlgmr.msra.gmra.mrb[64].mxu0 %v2660_v48  ;;  %2399 = vmatmul.mubr.bf16.gmra.mrb[128].mxu1 %v7177_v45 }
 0x284   : > { %6357 = vmatpush3.bf16.msra.mxu0 %v7791_v52  ;;  %2406 = vmatprep.mubr.bf16.mxu1 %v7180_v47  ;;  %v7199_v47 = vld [vmem:[%s8780_s4 + $0xb8] sm:$0xff]  }
 0x285   : > { %6358 = vmatprep.subr.bf16.mxu0 %v7164_v50 }
 0x286   : > { %v2192_v54 = vpop.f32.mrb[24].mxu1 }
 0x287   : > { %v2194_v55 = vpop.f32.mrb[25].mxu1 }
 0x288   : > { %6359 = vmatpush3.bf16.msra.mxu0 %v7164_v50  ;;  %v2195_v57 = vpop.f32.mrb[26].mxu1  ;;  %v7203_v50 = vld [vmem:[%s8780_s4 + $0xc0] sm:$0xff]  }
 0x289   : > { %6360 = vmatprep.subr.bf16.mxu0 %v7168_v53  ;;  %v2661_v52 = vpack.c.bf16 %v2195_v57, %v2192_v54  ;;  %v2197_v59 = vpop.f32.mrb[27].mxu1  ;;  %v7217_v54 = vld [vmem:[%s8779_s3 + $0x280] ss:$8 sps:$4 sm:$0xff]  }
 0x28a   : > { %v7204_v57 = vld [vmem:[%s8780_s4 + $0xc8] sm:$0xff]   ;;  %v7220_v59 = vld [vmem:[%s8779_s3 + $0x294] ss:$8 sps:$4 sm:$0xff]  }
 0x28b   : > { %6352 = vmatprep.mubr.bf16.mxu0 %v2661_v52  ;;  %2407 = vmatmul.mubr.bf16.gmra.mrb[132].mxu1 %v7182_v56 }
 0x28c   : > { %6361 = vmatpush3.bf16.msra.mxu0 %v7168_v53  ;;  %2414 = vmatprep.mubr.bf16.mxu1 %v7185_v58 }
 0x28d   : > { %6362 = vmatprep.subr.bf16.mxu0 %v7169_v60 }
 0x28e   : > { %v2200_v62 = vpop.f32.mrb[28].mxu1 }
 0x28f   : > { %v2202_v63 = vpop.f32.mrb[29].mxu1 }
 0x290   : > { %6363 = vmatpush3.bf16.msra.mxu0 %v7169_v60  ;;  %v2203_v1 = vpop.f32.mrb[30].mxu1  ;;  %v7208_v60 = vld [vmem:[%s8780_s4 + $0xd0] sm:$0xff]  }
 0x291   : > { %v2662_v2 = vpack.c.bf16 %v2203_v1, %v2200_v62  ;;  %6364 = vmatprep.subr.bf16.mxu0 %v7173_v61  ;;  %v2205_v3 = vpop.f32.mrb[31].mxu1  ;;  %v7222_v62 = vld [vmem:[%s8779_s3 + $0x290] ss:$8 sps:$4 sm:$0xff]  }
 0x292   : > { %v7209_v1 = vld [vmem:[%s8780_s4 + $0xd8] sm:$0xff]  }
 0x293   : > { %6353 = vmatmul.mubr.bf16.gmra.mrb[68].mxu0 %v2662_v2  ;;  %2415 = vmatmul.mubr.bf16.gmra.mrb[136].mxu1 %v7187_v0 }
 0x294   : > { %6365 = vmatpush3.bf16.msra.mxu0 %v7173_v61  ;;  %6372 = vmatprep.mubr.bf16.mxu0 %v2655_v12 }
 0x295   : > { %6366 = vmatprep.subr.bf16.mxu0 %v7174_v4  ;;  %2422 = vmatprep.mubr.bf16.mxu1 %v7190_v5  ;;  %v7213_v5 = vld [vmem:[%s8780_s4 + $0xe0] sm:$0xff]  }
 0x296   : > { %v2208_v7 = vpop.f32.mrb[32].mxu1 }
 0x297   : > { %v2210_v10 = vpop.f32.mrb[33].mxu1 }
 0x298   : > { %6367 = vmatpush3.bf16.msra.mxu0 %v7174_v4  ;;  %v2211_v11 = vpop.f32.mrb[34].mxu1  ;;  %v7225_v4 = vld [vmem:[%s8779_s3 + $0x2a4] ss:$8 sps:$4 sm:$0xff]  }
 0x299   : > { %6368 = vmatprep.subr.bf16.mxu0 %v7178_v6  ;;  %v2663_v44 = vpack.c.bf16 %v2211_v11, %v2208_v7  ;;  %v2213_v12 = vpop.f32.mrb[35].mxu1  ;;  %v7227_v7 = vld [vmem:[%s8779_s3 + $0x2a0] ss:$8 sps:$4 sm:$0xff]   ;;  %v7230_v11 = vld [vmem:[%s8779_s3 + $0x2b4] ss:$8 sps:$4 sm:$0xff]  }
 0x29a   : > { %v7218_v12 = vld [vmem:[%s8780_s4 + $0xf0] sm:$0xff]  }
 0x29b   : > { %2423 = vmatmul.mubr.bf16.gmra.mrb[140].mxu1 %v7192_v8 }
 0x29c   : > { %6369 = vmatpush3.bf16.msra.mxu0 %v7178_v6  ;;  %2430 = vmatprep.mubr.bf16.mxu1 %v7195_v51  ;;  %v7214_v51 = vld [vmem:[%s8780_s4 + $0xe8] sm:$0xff]  }
 0x29d   : > { %6370 = vmatprep.subr.bf16.mxu0 %v7179_v9 }
 0x29e   : > { %v7960_v15 = vpop.f32.mrb[36].mxu1 }
 0x29f   : > { %v2218_v18 = vpop.f32.mrb[37].mxu1 }
 0x2a0   : > { %6371 = vmatpush3.bf16.msra.mxu0 %v7179_v9  ;;  %v7965_v20 = vpop.f32.mrb[38].mxu1 }
 0x2a1   : > { %6380 = vmatprep.subr.bf16.mxu0 %v7183_v13  ;;  %v2664_v23 = vpack.c.bf16 %v7965_v20, %v7960_v15  ;;  %v2221_v25 = vpop.f32.mrb[39].mxu1  ;;  %v7232_v15 = vld [vmem:[%s8779_s3 + $0x2b0] ss:$8 sps:$4 sm:$0xff]   ;;  %v7235_v20 = vld [vmem:[%s8779_s3 + $0x2c4] ss:$8 sps:$4 sm:$0xff]  }
 0x2a3   : > { %6373 = vmatmul.mubr.bf16.vlgmr.msra.gmra.mrb[64].mxu0 %v2656_v19  ;;  %2431 = vmatmul.mubr.bf16.gmra.mrb[144].mxu1 %v7197_v16 }
 0x2a4   : > { %6376 = vmatprep.mubr.bf16.mxu0 %v2657_v26  ;;  %6381 = vmatpush3.bf16.msra.mxu0 %v7183_v13  ;;  %v7193_v26 = vld [vmem:[%s8780_s4 + $0xa0] sm:$0xff]  }
 0x2a5   : > { %6382 = vmatprep.subr.bf16.mxu0 %v7184_v22  ;;  %2438 = vmatprep.mubr.bf16.mxu1 %v7200_v27  ;;  %v7223_v27 = vld [vmem:[%s8780_s4 + $0x100] sm:$0xff]  }
 0x2a6   : > { %v2224_v30 = vpop.f32.mrb[40].mxu1 }
 0x2a7   : > { %v2226_v34 = vpop.f32.mrb[41].mxu1 }
 0x2a8   : > { %6383 = vmatpush3.bf16.msra.mxu0 %v7184_v22  ;;  %v2227_v14 = vpop.f32.mrb[42].mxu1  ;;  %v7219_v22 = vld [vmem:[%s8780_s4 + $0xf8] sm:$0xff]  }
 0x2a9   : > { %6384 = vmatprep.subr.bf16.mxu0 %v7188_v29  ;;  %v2665_v19 = vpack.c.bf16 %v2227_v14, %v2224_v30  ;;  %v2229_v21 = vpop.f32.mrb[43].mxu1  ;;  %v7237_v30 = vld [vmem:[%s8779_s3 + $0x2c0] ss:$8 sps:$4 sm:$0xff]  }
 0x2aa   : > { %v7224_v14 = vld [vmem:[%s8780_s4 + $0x108] sm:$0xff]   ;;  %v7240_v21 = vld [vmem:[%s8779_s3 + $0x2d4] ss:$8 sps:$4 sm:$0xff]  }
 0x2ab   : > { %6377 = vmatmul.mubr.bf16.gmra.mrb[68].mxu0 %v2658_v33  ;;  %2439 = vmatmul.mubr.bf16.gmra.mrb[148].mxu1 %v7202_v32 }
 0x2ac   : > { %6385 = vmatpush3.bf16.msra.mxu0 %v7188_v29  ;;  %6396 = vmatprep.mubr.bf16.mxu0 %v2663_v44 }
 0x2ad   : > { %6386 = vmatprep.subr.bf16.mxu0 %v7189_v17  ;;  %2446 = vmatprep.mubr.bf16.mxu1 %v7205_v24  ;;  %v7228_v24 = vld [vmem:[%s8780_s4 + $0x110] sm:$0xff]  }
 0x2ae   : > { %v2232_v35 = vpop.f32.mrb[44].mxu1 }
 0x2af   : > { %v2234_v37 = vpop.f32.mrb[45].mxu1 }
 0x2b0   : > { %6387 = vmatpush3.bf16.msra.mxu0 %v7189_v17  ;;  %v2235_v38 = vpop.f32.mrb[46].mxu1 }
 0x2b1   : > { %6388 = vmatprep.subr.bf16.mxu0 %v7193_v26  ;;  %v2666_v33 = vpack.c.bf16 %v2235_v38, %v2232_v35  ;;  %v2237_v39 = vpop.f32.mrb[47].mxu1  ;;  %v7242_v35 = vld [vmem:[%s8779_s3 + $0x2d0] ss:$8 sps:$4 sm:$0xff]  }
 0x2b2   : > { %v7229_v38 = vld [vmem:[%s8780_s4 + $0x118] sm:$0xff]   ;;  %v7233_v39 = vld [vmem:[%s8780_s4 + $0x120] sm:$0xff]  }
 0x2b3   : > { %2447 = vmatmul.mubr.bf16.gmra.mrb[152].mxu1 %v7207_v36 }
 0x2b4   : > { %6389 = vmatpush3.bf16.msra.mxu0 %v7193_v26  ;;  %2454 = vmatprep.mubr.bf16.mxu1 %v7210_v28 }
 0x2b5   : > { %6390 = vmatprep.subr.bf16.mxu0 %v7194_v31 }
 0x2b6   : > { %v2240_v41 = vpop.f32.mrb[48].mxu1 }
 0x2b7   : > { %v2242_v43 = vpop.f32.mrb[49].mxu1 }
 0x2b8   : > { %6391 = vmatpush3.bf16.msra.mxu0 %v7194_v31  ;;  %v2243_v45 = vpop.f32.mrb[50].mxu1 }
 0x2b9   : > { %6392 = vmatprep.subr.bf16.mxu0 %v7198_v40  ;;  %v2667_v48 = vpack.c.bf16 %v2243_v45, %v2240_v41  ;;  %v2245_v49 = vpop.f32.mrb[51].mxu1  ;;  %v7247_v41 = vld [vmem:[%s8779_s3 + $0x2e0] ss:$8 sps:$4 sm:$0xff]   ;;  %v7250_v45 = vld [vmem:[%s8779_s3 + $0x2f4] ss:$8 sps:$4 sm:$0xff]  }
 0x2ba   : > { %v7238_v49 = vld [vmem:[%s8780_s4 + $0x130] sm:$0xff]  }
 0x2bb   : > { %2455 = vmatmul.mubr.bf16.gmra.mrb[156].mxu1 %v7212_v42 }
 0x2bc   : > { %6393 = vmatpush3.bf16.msra.mxu0 %v7198_v40  ;;  %2462 = vmatprep.mubr.bf16.mxu1 %v7215_v46  ;;  %v7234_v46 = vld [vmem:[%s8780_s4 + $0x128] sm:$0xff]  }
 0x2bd   : > { %6394 = vmatprep.subr.bf16.mxu0 %v7199_v47 }
 0x2be   : > { %v8023_v53 = vpop.f32.mrb[52].mxu1 }
 0x2bf   : > { %v2250_v55 = vpop.f32.mrb[53].mxu1 }
 0x2c0   : > { %6395 = vmatpush3.bf16.msra.mxu0 %v7199_v47  ;;  %v8028_v56 = vpop.f32.mrb[54].mxu1 }
 0x2c1   : > { %6404 = vmatprep.subr.bf16.mxu0 %v7203_v50  ;;  %v2668_v58 = vpack.c.bf16 %v8028_v56, %v8023_v53  ;;  %v2253_v52 = vpop.f32.mrb[55].mxu1  ;;  %v7252_v53 = vld [vmem:[%s8779_s3 + $0x2f0] ss:$8 sps:$4 sm:$0xff]   ;;  %v7255_v56 = vld [vmem:[%s8779_s3 + $0x304] ss:$8 sps:$4 sm:$0xff]  }
 0x2c3   : > { %6397 = vmatmul.mubr.bf16.vlgmr.msra.gmra.mrb[64].mxu0 %v2664_v23  ;;  %2463 = vmatmul.mubr.bf16.gmra.mrb[160].mxu1 %v7217_v54 }
 0x2c4   : > { %6405 = vmatpush3.bf16.msra.mxu0 %v7203_v50  ;;  %6400 = vmatprep.mubr.bf16.mxu0 %v2665_v19 }
 0x2c5   : > { %6406 = vmatprep.subr.bf16.mxu0 %v7204_v57  ;;  %2470 = vmatprep.mubr.bf16.mxu1 %v7220_v59  ;;  %v7243_v59 = vld [vmem:[%s8780_s4 + $0x140] sm:$0xff]  }
 0x2c6   : > { %v2256_v61 = vpop.f32.mrb[56].mxu1 }
 0x2c7   : > { %v2258_v63 = vpop.f32.mrb[57].mxu1 }
 0x2c8   : > { %6407 = vmatpush3.bf16.msra.mxu0 %v7204_v57  ;;  %v2259_v0 = vpop.f32.mrb[58].mxu1  ;;  %v7239_v57 = vld [vmem:[%s8780_s4 + $0x138] sm:$0xff]  }
 0x2c9   : > { %6408 = vmatprep.subr.bf16.mxu0 %v7208_v60  ;;  %v2669_v2 = vpack.c.bf16 %v2259_v0, %v2256_v61  ;;  %v2261_v3 = vpop.f32.mrb[59].mxu1  ;;  %v7257_v61 = vld [vmem:[%s8779_s3 + $0x300] ss:$8 sps:$4 sm:$0xff]  }
 0x2ca   : > { %v7244_v0 = vld [vmem:[%s8780_s4 + $0x148] sm:$0xff]   ;;  %v7260_v3 = vld [vmem:[%s8779_s3 + $0x314] ss:$8 sps:$4 sm:$0xff]  }
 0x2cb   : > { %6401 = vmatmul.mubr.bf16.gmra.mrb[68].mxu0 %v2666_v33  ;;  %2471 = vmatmul.mubr.bf16.gmra.mrb[164].mxu1 %v7222_v62  ;;  %v7245_v33 = vld [vmem:[%s8779_s3 + $0x2e4] ss:$8 sps:$4 sm:$0xff]  }
 0x2cc   : > { %6409 = vmatpush3.bf16.msra.mxu0 %v7208_v60  ;;  %6420 = vmatprep.mubr.bf16.mxu0 %v2667_v48 }
 0x2cd   : > { %6410 = vmatprep.subr.bf16.mxu0 %v7209_v1  ;;  %2478 = vmatprep.mubr.bf16.mxu1 %v7225_v4  ;;  %v7248_v4 = vld [vmem:[%s8780_s4 + $0x150] sm:$0xff]  }
 0x2ce   : > { %v2264_v6 = vpop.f32.mrb[60].mxu1 }
 0x2cf   : > { %v2266_v8 = vpop.f32.mrb[61].mxu1 }
 0x2d0   : > { %6411 = vmatpush3.bf16.msra.mxu0 %v7209_v1  ;;  %v2267_v10 = vpop.f32.mrb[62].mxu1 }
 0x2d1   : > { %6412 = vmatprep.subr.bf16.mxu0 %v7213_v5  ;;  %v2670_v9 = vpack.c.bf16 %v2267_v10, %v2264_v6  ;;  %v2269_v44 = vpop.f32.mrb[63].mxu1  ;;  %v7262_v6 = vld [vmem:[%s8779_s3 + $0x310] ss:$8 sps:$4 sm:$0xff]  }
 0x2d2   : > { %v7249_v10 = vld [vmem:[%s8780_s4 + $0x158] sm:$0xff]   ;;  %v7253_v44 = vld [vmem:[%s8780_s4 + $0x160] sm:$0xff]  }
 0x2d3   : > { %2479 = vmatmul.mubr.bf16.gmra.mrb[168].mxu1 %v7227_v7 }
 0x2d4   : > { %6413 = vmatpush3.bf16.msra.mxu0 %v7213_v5  ;;  %2486 = vmatprep.mubr.bf16.mxu1 %v7230_v11 }
 0x2d5   : > { %6414 = vmatprep.subr.bf16.mxu0 %v7214_v51 }
 0x2d6   : > { %v2272_v13 = vpop.f32.mrb[64].mxu1 }
 0x2d7   : > { %v2274_v16 = vpop.f32.mrb[65].mxu1 }
 0x2d8   : > { %6415 = vmatpush3.bf16.msra.mxu0 %v7214_v51  ;;  %v2275_v18 = vpop.f32.mrb[66].mxu1 }
 0x2d9   : > { %6416 = vmatprep.subr.bf16.mxu0 %v7218_v12  ;;  %v2671_v23 = vpack.c.bf16 %v2275_v18, %v2272_v13  ;;  %v2277_v25 = vpop.f32.mrb[67].mxu1  ;;  %v7267_v13 = vld [vmem:[%s8779_s3 + $0x320] ss:$8 sps:$4 sm:$0xff]   ;;  %v7270_v18 = vld [vmem:[%s8779_s3 + $0x334] ss:$8 sps:$4 sm:$0xff]  }
 0x2da   : > { %v7258_v25 = vld [vmem:[%s8780_s4 + $0x170] sm:$0xff]  }
 0x2db   : > { %2487 = vmatmul.mubr.bf16.gmra.mrb[172].mxu1 %v7232_v15 }
 0x2dc   : > { %6417 = vmatpush3.bf16.msra.mxu0 %v7218_v12  ;;  %2494 = vmatprep.mubr.bf16.mxu1 %v7235_v20  ;;  %v7254_v20 = vld [vmem:[%s8780_s4 + $0x168] sm:$0xff]  }
 0x2dd   : > { %6418 = vmatprep.subr.bf16.mxu0 %v7219_v22 }
 0x2de   : > { %v8080_v29 = vpop.f32.mrb[68].mxu1 }
 0x2df   : > { %v2282_v32 = vpop.f32.mrb[69].mxu1 }
 0x2e0   : > { %6419 = vmatpush3.bf16.msra.mxu0 %v7219_v22  ;;  %v8085_v34 = vpop.f32.mrb[70].mxu1 }
 0x2e1   : > { %6428 = vmatprep.subr.bf16.mxu0 %v7223_v27  ;;  %v2672_v17 = vpack.c.bf16 %v8085_v34, %v8080_v29  ;;  %v2285_v19 = vpop.f32.mrb[71].mxu1  ;;  %v7272_v29 = vld [vmem:[%s8779_s3 + $0x330] ss:$8 sps:$4 sm:$0xff]   ;;  %v7275_v34 = vld [vmem:[%s8779_s3 + $0x344] ss:$8 sps:$4 sm:$0xff]  }
 0x2e3   : > { %6421 = vmatmul.mubr.bf16.vlgmr.msra.gmra.mrb[64].mxu0 %v2668_v58  ;;  %2495 = vmatmul.mubr.bf16.gmra.mrb[176].mxu1 %v7237_v30 }
 0x2e4   : > { %6429 = vmatpush3.bf16.msra.mxu0 %v7223_v27  ;;  %6424 = vmatprep.mubr.bf16.mxu0 %v2669_v2 }
 0x2e5   : > { %6430 = vmatprep.subr.bf16.mxu0 %v7224_v14  ;;  %2502 = vmatprep.mubr.bf16.mxu1 %v7240_v21  ;;  %v7263_v21 = vld [vmem:[%s8780_s4 + $0x180] sm:$0xff]  }
 0x2e6   : > { %v2288_v26 = vpop.f32.mrb[72].mxu1 }
 0x2e7   : > { %v2290_v36 = vpop.f32.mrb[73].mxu1 }
 0x2e8   : > { %6431 = vmatpush3.bf16.msra.mxu0 %v7224_v14  ;;  %v2291_v37 = vpop.f32.mrb[74].mxu1  ;;  %v7259_v14 = vld [vmem:[%s8780_s4 + $0x178] sm:$0xff]  }
 0x2e9   : > { %6432 = vmatprep.subr.bf16.mxu0 %v7228_v24  ;;  %v2673_v28 = vpack.c.bf16 %v2291_v37, %v2288_v26  ;;  %v2293_v31 = vpop.f32.mrb[75].mxu1  ;;  %v7277_v26 = vld [vmem:[%s8779_s3 + $0x340] ss:$8 sps:$4 sm:$0xff]  }
 0x2ea   : > { %v7264_v37 = vld [vmem:[%s8780_s4 + $0x188] sm:$0xff]   ;;  %v7280_v31 = vld [vmem:[%s8779_s3 + $0x354] ss:$8 sps:$4 sm:$0xff]  }
 0x2eb   : > { %6425 = vmatmul.mubr.bf16.gmra.mrb[68].mxu0 %v2670_v9  ;;  %2503 = vmatmul.mubr.bf16.gmra.mrb[180].mxu1 %v7242_v35  ;;  %v7265_v9 = vld [vmem:[%s8779_s3 + $0x324] ss:$8 sps:$4 sm:$0xff]  }
 0x2ec   : > { %6433 = vmatpush3.bf16.msra.mxu0 %v7228_v24  ;;  %6444 = vmatprep.mubr.bf16.mxu0 %v2671_v23 }
 0x2ed   : > { %6434 = vmatprep.subr.bf16.mxu0 %v7229_v38  ;;  %2510 = vmatprep.mubr.bf16.mxu1 %v7245_v33  ;;  %v7268_v33 = vld [vmem:[%s8780_s4 + $0x190] sm:$0xff]  }
 0x2ee   : > { %v2296_v40 = vpop.f32.mrb[76].mxu1 }
 0x2ef   : > { %v2298_v42 = vpop.f32.mrb[77].mxu1 }
 0x2f0   : > { %6435 = vmatpush3.bf16.msra.mxu0 %v7229_v38  ;;  %v2299_v43 = vpop.f32.mrb[78].mxu1 }
 0x2f1   : > { %6436 = vmatprep.subr.bf16.mxu0 %v7233_v39  ;;  %v2674_v47 = vpack.c.bf16 %v2299_v43, %v2296_v40  ;;  %v2301_v48 = vpop.f32.mrb[79].mxu1  ;;  %v7282_v40 = vld [vmem:[%s8779_s3 + $0x350] ss:$8 sps:$4 sm:$0xff]  }
 0x2f2   : > { %v7269_v43 = vld [vmem:[%s8780_s4 + $0x198] sm:$0xff]   ;;  %v7273_v48 = vld [vmem:[%s8780_s4 + $0x1a0] sm:$0xff]  }
 0x2f3   : > { %2511 = vmatmul.mubr.bf16.gmra.mrb[184].mxu1 %v7247_v41 }
 0x2f4   : > { %6437 = vmatpush3.bf16.msra.mxu0 %v7233_v39  ;;  %2518 = vmatprep.mubr.bf16.mxu1 %v7250_v45 }
 0x2f5   : > { %6438 = vmatprep.subr.bf16.mxu0 %v7234_v46 }
 0x2f6   : > { %v2304_v50 = vpop.f32.mrb[80].mxu1 }
 0x2f7   : > { %v2306_v54 = vpop.f32.mrb[81].mxu1 }
 0x2f8   : > { %6439 = vmatpush3.bf16.msra.mxu0 %v7234_v46  ;;  %v2307_v55 = vpop.f32.mrb[82].mxu1 }
 0x2f9   : > { %6440 = vmatprep.subr.bf16.mxu0 %v7238_v49  ;;  %v2675_v58 = vpack.c.bf16 %v2307_v55, %v2304_v50  ;;  %v2309_v52 = vpop.f32.mrb[83].mxu1  ;;  %v7287_v50 = vld [vmem:[%s8779_s3 + $0x360] ss:$8 sps:$4 sm:$0xff]   ;;  %v7290_v55 = vld [vmem:[%s8779_s3 + $0x374] ss:$8 sps:$4 sm:$0xff]  }
 0x2fa   : > { %v7278_v52 = vld [vmem:[%s8780_s4 + $0x1b0] sm:$0xff]  }
 0x2fb   : > { %2519 = vmatmul.mubr.bf16.gmra.mrb[188].mxu1 %v7252_v53 }
 0x2fc   : > { %6441 = vmatpush3.bf16.msra.mxu0 %v7238_v49  ;;  %2526 = vmatprep.mubr.bf16.mxu1 %v7255_v56  ;;  %v7274_v56 = vld [vmem:[%s8780_s4 + $0x1a8] sm:$0xff]  }
 0x2fd   : > { %6442 = vmatprep.subr.bf16.mxu0 %v7239_v57 }
 0x2fe   : > { %v8137_v60 = vpop.f32.mrb[84].mxu1 }
 0x2ff   : > { %v2314_v62 = vpop.f32.mrb[85].mxu1 }
 0x300   : > { %6443 = vmatpush3.bf16.msra.mxu0 %v7239_v57  ;;  %v8142_v63 = vpop.f32.mrb[86].mxu1 }
 0x301   : > { %6452 = vmatprep.subr.bf16.mxu0 %v7243_v59  ;;  %v2676_v1 = vpack.c.bf16 %v8142_v63, %v8137_v60  ;;  %v2317_v2 = vpop.f32.mrb[87].mxu1  ;;  %v7292_v60 = vld [vmem:[%s8779_s3 + $0x370] ss:$8 sps:$4 sm:$0xff]   ;;  %v7295_v63 = vld [vmem:[%s8779_s3 + $0x384] ss:$8 sps:$4 sm:$0xff]  }
 0x303   : > { %6445 = vmatmul.mubr.bf16.vlgmr.msra.gmra.mrb[64].mxu0 %v2672_v17  ;;  %2527 = vmatmul.mubr.bf16.gmra.mrb[192].mxu1 %v7257_v61 }
 0x304   : > { %6453 = vmatpush3.bf16.msra.mxu0 %v7243_v59  ;;  %6448 = vmatprep.mubr.bf16.mxu0 %v2673_v28 }
 0x305   : > { %6454 = vmatprep.subr.bf16.mxu0 %v7244_v0  ;;  %2534 = vmatprep.mubr.bf16.mxu1 %v7260_v3  ;;  %v7283_v3 = vld [vmem:[%s8780_s4 + $0x1c0] sm:$0xff]  }
 0x306   : > { %v2320_v5 = vpop.f32.mrb[88].mxu1 }
 0x307   : > { %v2322_v7 = vpop.f32.mrb[89].mxu1 }
 0x308   : > { %6455 = vmatpush3.bf16.msra.mxu0 %v7244_v0  ;;  %v2323_v8 = vpop.f32.mrb[90].mxu1  ;;  %v7279_v0 = vld [vmem:[%s8780_s4 + $0x1b8] sm:$0xff]  }
 0x309   : > { %6456 = vmatprep.subr.bf16.mxu0 %v7248_v4  ;;  %v2677_v11 = vpack.c.bf16 %v2323_v8, %v2320_v5  ;;  %v2325_v51 = vpop.f32.mrb[91].mxu1  ;;  %v7297_v5 = vld [vmem:[%s8779_s3 + $0x380] ss:$8 sps:$4 sm:$0xff]  }
 0x30a   : > { %v7284_v8 = vld [vmem:[%s8780_s4 + $0x1c8] sm:$0xff]   ;;  %v7300_v51 = vld [vmem:[%s8779_s3 + $0x394] ss:$8 sps:$4 sm:$0xff]  }
 0x30b   : > { %6449 = vmatmul.mubr.bf16.gmra.mrb[68].mxu0 %v2674_v47  ;;  %2535 = vmatmul.mubr.bf16.gmra.mrb[196].mxu1 %v7262_v6  ;;  %v7285_v47 = vld [vmem:[%s8779_s3 + $0x364] ss:$8 sps:$4 sm:$0xff]  }
 0x30c   : > { %6457 = vmatpush3.bf16.msra.mxu0 %v7248_v4  ;;  %6468 = vmatprep.mubr.bf16.mxu0 %v2675_v58 }
 0x30d   : > { %6458 = vmatprep.subr.bf16.mxu0 %v7249_v10  ;;  %2542 = vmatprep.mubr.bf16.mxu1 %v7265_v9  ;;  %v7288_v9 = vld [vmem:[%s8780_s4 + $0x1d0] sm:$0xff]  }
 0x30e   : > { %v2328_v12 = vpop.f32.mrb[92].mxu1 }
 0x30f   : > { %v2330_v15 = vpop.f32.mrb[93].mxu1 }
 0x310   : > { %6459 = vmatpush3.bf16.msra.mxu0 %v7249_v10  ;;  %v2331_v16 = vpop.f32.mrb[94].mxu1 }
 0x311   : > { %6460 = vmatprep.subr.bf16.mxu0 %v7253_v44  ;;  %v2678_v22 = vpack.c.bf16 %v2331_v16, %v2328_v12  ;;  %v2333_v23 = vpop.f32.mrb[95].mxu1  ;;  %v7302_v12 = vld [vmem:[%s8779_s3 + $0x390] ss:$8 sps:$4 sm:$0xff]  }
 0x312   : > { %v7289_v16 = vld [vmem:[%s8780_s4 + $0x1d8] sm:$0xff]   ;;  %v7293_v23 = vld [vmem:[%s8780_s4 + $0x1e0] sm:$0xff]  }
 0x313   : > { %2543 = vmatmul.mubr.bf16.gmra.mrb[200].mxu1 %v7267_v13 }
 0x314   : > { %6461 = vmatpush3.bf16.msra.mxu0 %v7253_v44  ;;  %2550 = vmatprep.mubr.bf16.mxu1 %v7270_v18 }
 0x315   : > { %6462 = vmatprep.subr.bf16.mxu0 %v7254_v20 }
 0x316   : > { %v2336_v27 = vpop.f32.mrb[96].mxu1 }
 0x317   : > { %v2338_v30 = vpop.f32.mrb[97].mxu1 }
 0x318   : > { %6463 = vmatpush3.bf16.msra.mxu0 %v7254_v20  ;;  %v2339_v32 = vpop.f32.mrb[98].mxu1 }
 0x319   : > { %6464 = vmatprep.subr.bf16.mxu0 %v7258_v25  ;;  %v2679_v17 = vpack.c.bf16 %v2339_v32, %v2336_v27  ;;  %v2341_v19 = vpop.f32.mrb[99].mxu1  ;;  %v7307_v27 = vld [vmem:[%s8779_s3 + $0x3a0] ss:$8 sps:$4 sm:$0xff]   ;;  %v7310_v32 = vld [vmem:[%s8779_s3 + $0x3b4] ss:$8 sps:$4 sm:$0xff]  }
 0x31a   : > { %v7298_v19 = vld [vmem:[%s8780_s4 + $0x1f0] sm:$0xff]  }
 0x31b   : > { %2551 = vmatmul.mubr.bf16.gmra.mrb[204].mxu1 %v7272_v29 }
 0x31c   : > { %6465 = vmatpush3.bf16.msra.mxu0 %v7258_v25  ;;  %2558 = vmatprep.mubr.bf16.mxu1 %v7275_v34  ;;  %v7294_v34 = vld [vmem:[%s8780_s4 + $0x1e8] sm:$0xff]  }
 0x31d   : > { %6466 = vmatprep.subr.bf16.mxu0 %v7259_v14 }
 0x31e   : > { %v8194_v24 = vpop.f32.mrb[100].mxu1 }
 0x31f   : > { %v2346_v35 = vpop.f32.mrb[101].mxu1 }
 0x320   : > { %6467 = vmatpush3.bf16.msra.mxu0 %v7259_v14  ;;  %v8199_v36 = vpop.f32.mrb[102].mxu1 }
 0x321   : > { %6476 = vmatprep.subr.bf16.mxu0 %v7263_v21  ;;  %v2680_v38 = vpack.c.bf16 %v8199_v36, %v8194_v24  ;;  %v2349_v28 = vpop.f32.mrb[103].mxu1  ;;  %v7312_v24 = vld [vmem:[%s8779_s3 + $0x3b0] ss:$8 sps:$4 sm:$0xff]   ;;  %v7315_v36 = vld [vmem:[%s8779_s3 + $0x3c4] ss:$8 sps:$4 sm:$0xff]  }
 0x323   : > { %6469 = vmatmul.mubr.bf16.vlgmr.msra.gmra.mrb[64].mxu0 %v2676_v1  ;;  %2559 = vmatmul.mubr.bf16.gmra.mrb[208].mxu1 %v7277_v26 }
 0x324   : > { %6477 = vmatpush3.bf16.msra.mxu0 %v7263_v21  ;;  %6472 = vmatprep.mubr.bf16.mxu0 %v2677_v11 }
 0x325   : > { %6478 = vmatprep.subr.bf16.mxu0 %v7264_v37  ;;  %2566 = vmatprep.mubr.bf16.mxu1 %v7280_v31  ;;  %v7303_v31 = vld [vmem:[%s8780_s4 + $0x200] sm:$0xff]  }
 0x326   : > { %v2352_v39 = vpop.f32.mrb[104].mxu1 }
 0x327   : > { %v2354_v41 = vpop.f32.mrb[105].mxu1 }
 0x328   : > { %6479 = vmatpush3.bf16.msra.mxu0 %v7264_v37  ;;  %v2355_v42 = vpop.f32.mrb[106].mxu1  ;;  %v7299_v37 = vld [vmem:[%s8780_s4 + $0x1f8] sm:$0xff]  }
 0x329   : > { %6480 = vmatprep.subr.bf16.mxu0 %v7268_v33  ;;  %v2681_v45 = vpack.c.bf16 %v2355_v42, %v2352_v39  ;;  %v2357_v46 = vpop.f32.mrb[107].mxu1  ;;  %v7317_v39 = vld [vmem:[%s8779_s3 + $0x3c0] ss:$8 sps:$4 sm:$0xff]  }
 0x32a   : > { %v7304_v42 = vld [vmem:[%s8780_s4 + $0x208] sm:$0xff]   ;;  %v7320_v46 = vld [vmem:[%s8779_s3 + $0x3d4] ss:$8 sps:$4 sm:$0xff]  }
 0x32b   : > { %6473 = vmatmul.mubr.bf16.gmra.mrb[68].mxu0 %v2678_v22  ;;  %2567 = vmatmul.mubr.bf16.gmra.mrb[212].mxu1 %v7282_v40  ;;  %v7305_v22 = vld [vmem:[%s8779_s3 + $0x3a4] ss:$8 sps:$4 sm:$0xff]  }
 0x32c   : > { %6481 = vmatpush3.bf16.msra.mxu0 %v7268_v33  ;;  %6492 = vmatprep.mubr.bf16.mxu0 %v2679_v17 }
 0x32d   : > { %6482 = vmatprep.subr.bf16.mxu0 %v7269_v43  ;;  %2574 = vmatprep.mubr.bf16.mxu1 %v7285_v47  ;;  %v7308_v47 = vld [vmem:[%s8780_s4 + $0x210] sm:$0xff]  }
 0x32e   : > { %v2360_v49 = vpop.f32.mrb[108].mxu1 }
 0x32f   : > { %v2362_v53 = vpop.f32.mrb[109].mxu1 }
 0x330   : > { %6483 = vmatpush3.bf16.msra.mxu0 %v7269_v43  ;;  %v2363_v54 = vpop.f32.mrb[110].mxu1 }
 0x331   : > { %6484 = vmatprep.subr.bf16.mxu0 %v7273_v48  ;;  %v2682_v57 = vpack.c.bf16 %v2363_v54, %v2360_v49  ;;  %v2365_v58 = vpop.f32.mrb[111].mxu1  ;;  %v7322_v49 = vld [vmem:[%s8779_s3 + $0x3d0] ss:$8 sps:$4 sm:$0xff]  }
 0x332   : > { %v7309_v54 = vld [vmem:[%s8780_s4 + $0x218] sm:$0xff]   ;;  %v7313_v58 = vld [vmem:[%s8780_s4 + $0x220] sm:$0xff]  }
 0x333   : > { %2575 = vmatmul.mubr.bf16.gmra.mrb[216].mxu1 %v7287_v50 }
 0x334   : > { %6485 = vmatpush3.bf16.msra.mxu0 %v7273_v48  ;;  %2582 = vmatprep.mubr.bf16.mxu1 %v7290_v55 }
 0x335   : > { %6486 = vmatprep.subr.bf16.mxu0 %v7274_v56 }
 0x336   : > { %v2368_v59 = vpop.f32.mrb[112].mxu1 }
 0x337   : > { %v2370_v61 = vpop.f32.mrb[113].mxu1 }
 0x338   : > { %6487 = vmatpush3.bf16.msra.mxu0 %v7274_v56  ;;  %v2371_v62 = vpop.f32.mrb[114].mxu1 }
 0x339   : > { %6488 = vmatprep.subr.bf16.mxu0 %v7278_v52  ;;  %v2683_v1 = vpack.c.bf16 %v2371_v62, %v2368_v59  ;;  %v2373_v2 = vpop.f32.mrb[115].mxu1  ;;  %v7327_v59 = vld [vmem:[%s8779_s3 + $0x3e0] ss:$8 sps:$4 sm:$0xff]   ;;  %v7330_v62 = vld [vmem:[%s8779_s3 + $0x3f4] ss:$8 sps:$4 sm:$0xff]  }
 0x33a   : > { %v7318_v2 = vld [vmem:[%s8780_s4 + $0x230] sm:$0xff]  }
 0x33b   : > { %2583 = vmatmul.mubr.bf16.gmra.mrb[220].mxu1 %v7292_v60 }
 0x33c   : > { %6489 = vmatpush3.bf16.msra.mxu0 %v7278_v52  ;;  %2590 = vmatprep.mubr.bf16.mxu1 %v7295_v63  ;;  %v7314_v63 = vld [vmem:[%s8780_s4 + $0x228] sm:$0xff]  }
 0x33d   : > { %6490 = vmatprep.subr.bf16.mxu0 %v7279_v0 }
 0x33e   : > { %v8251_v4 = vpop.f32.mrb[116].mxu1 }
 0x33f   : > { %v2378_v6 = vpop.f32.mrb[117].mxu1 }
 0x340   : > { %6491 = vmatpush3.bf16.msra.mxu0 %v7279_v0  ;;  %v8256_v7 = vpop.f32.mrb[118].mxu1 }
 0x341   : > { %6500 = vmatprep.subr.bf16.mxu0 %v7283_v3  ;;  %v2684_v10 = vpack.c.bf16 %v8256_v7, %v8251_v4  ;;  %v2381_v11 = vpop.f32.mrb[119].mxu1  ;;  %v7332_v4 = vld [vmem:[%s8779_s3 + $0x3f0] ss:$8 sps:$4 sm:$0xff]  }
 0x342   : > { %v7319_v7 = vld [vmem:[%s8780_s4 + $0x238] sm:$0xff]   ;;  %v7323_v11 = vld [vmem:[%s8780_s4 + $0x240] sm:$0xff]  }
 0x343   : > { %6493 = vmatmul.mubr.bf16.vlgmr.msra.gmra.mrb[64].mxu0 %v2680_v38  ;;  %2591 = vmatmul.mubr.bf16.gmra.mrb[224].mxu1 %v7297_v5 }
 0x344   : > { %6501 = vmatpush3.bf16.msra.mxu0 %v7283_v3  ;;  %6496 = vmatprep.mubr.bf16.mxu0 %v2681_v45 }
 0x345   : > { %6502 = vmatprep.subr.bf16.mxu0 %v7284_v8  ;;  %2598 = vmatprep.mubr.bf16.mxu1 %v7300_v51 }
 0x346   : > { %v2384_v44 = vpop.f32.mrb[120].mxu1 }
 0x347   : > { %v2386_v13 = vpop.f32.mrb[121].mxu1 }
 0x348   : > { %6503 = vmatpush3.bf16.msra.mxu0 %v7284_v8  ;;  %v2387_v15 = vpop.f32.mrb[122].mxu1 }
 0x349   : > { %6504 = vmatprep.subr.bf16.mxu0 %v7288_v9  ;;  %v2685_v18 = vpack.c.bf16 %v2387_v15, %v2384_v44  ;;  %v2389_v20 = vpop.f32.mrb[123].mxu1 }
 0x34b   : > { %6497 = vmatmul.mubr.bf16.gmra.mrb[68].mxu0 %v2682_v57  ;;  %2599 = vmatmul.mubr.bf16.gmra.mrb[228].mxu1 %v7302_v12  ;;  %v7325_v57 = vld [vmem:[%s8779_s3 + $0x3e4] ss:$8 sps:$4 sm:$0xff]  }
 0x34c   : > { %6505 = vmatpush3.bf16.msra.mxu0 %v7288_v9  ;;  %6516 = vmatprep.mubr.bf16.mxu0 %v2683_v1  ;;  %v7324_v12 = vld [vmem:[%s8780_s4 + $0x248] sm:$0xff]  }
 0x34d   : > { %6506 = vmatprep.subr.bf16.mxu0 %v7289_v16  ;;  %2606 = vmatprep.mubr.bf16.mxu1 %v7305_v22 }
 0x34e   : > { %v2392_v25 = vpop.f32.mrb[124].mxu1 }
 0x34f   : > { %v2394_v29 = vpop.f32.mrb[125].mxu1 }
 0x350   : > { %6507 = vmatpush3.bf16.msra.mxu0 %v7289_v16  ;;  %v2395_v30 = vpop.f32.mrb[126].mxu1  ;;  %v7328_v16 = vld [vmem:[%s8780_s4 + $0x250] sm:$0xff]   ;;  %v7333_v29 = vld [vmem:[%s8780_s4 + $0x260] sm:$0xff]  }
 0x351   : > { %6508 = vmatprep.subr.bf16.mxu0 %v7293_v23  ;;  %v2686_v14 = vpack.c.bf16 %v2395_v30, %v2392_v25  ;;  %v2397_v17 = vpop.f32.mrb[127].mxu1 }
 0x353   : > { %2607 = vmatmul.mubr.bf16.gmra.mrb[232].mxu1 %v7307_v27 }
 0x354   : > { %6509 = vmatpush3.bf16.msra.mxu0 %v7293_v23  ;;  %2614 = vmatprep.mubr.bf16.mxu1 %v7310_v32  ;;  %v7329_v23 = vld [vmem:[%s8780_s4 + $0x258] sm:$0xff]  }
 0x355   : > { %6510 = vmatprep.subr.bf16.mxu0 %v7294_v34 }
 0x356   : > { %v2400_v21 = vpop.f32.mrb[128].mxu1 }
 0x357   : > { %v2402_v26 = vpop.f32.mrb[129].mxu1 }
 0x358   : > { %6511 = vmatpush3.bf16.msra.mxu0 %v7294_v34  ;;  %v2403_v35 = vpop.f32.mrb[130].mxu1 }
 0x359   : > { %6512 = vmatprep.subr.bf16.mxu0 %v7298_v19  ;;  %v2687_v38 = vpack.c.bf16 %v2403_v35, %v2400_v21  ;;  %v2405_v28 = vpop.f32.mrb[131].mxu1  ;;  %v7335_v21 = vld [vmem:[%s8780_s4 + $0x270] sm:$0xff]  }
 0x35a   : > { %v7337_v28 = vld [vmem:[%s8780_s4 + $0x280] sm:$0xff]  }
 0x35b   : > { %2615 = vmatmul.mubr.bf16.gmra.mrb[236].mxu1 %v7312_v24 }
 0x35c   : > { %6513 = vmatpush3.bf16.msra.mxu0 %v7298_v19  ;;  %2622 = vmatprep.mubr.bf16.mxu1 %v7315_v36  ;;  %v7336_v36 = vld [vmem:[%s8780_s4 + $0x278] sm:$0xff]  }
 0x35d   : > { %6514 = vmatprep.subr.bf16.mxu0 %v7299_v37 }
 0x35e   : > { %v8308_v33 = vpop.f32.mrb[132].mxu1 }
 0x35f   : > { %v2410_v40 = vpop.f32.mrb[133].mxu1 }
 0x360   : > { %6515 = vmatpush3.bf16.msra.mxu0 %v7299_v37  ;;  %v8313_v41 = vpop.f32.mrb[134].mxu1  ;;  %v7338_v40 = vld [vmem:[%s8780_s4 + $0x288] sm:$0xff]  }
 0x361   : > { %6524 = vmatprep.subr.bf16.mxu0 %v7303_v31  ;;  %v2688_v43 = vpack.c.bf16 %v8313_v41, %v8308_v33  ;;  %v2413_v45 = vpop.f32.mrb[135].mxu1 }
 0x363   : > { %6517 = vmatmul.mubr.bf16.vlgmr.msra.gmra.mrb[64].mxu0 %v2684_v10  ;;  %2623 = vmatmul.mubr.bf16.gmra.mrb[240].mxu1 %v7317_v39 }
 0x364   : > { %6525 = vmatpush3.bf16.msra.mxu0 %v7303_v31  ;;  %6520 = vmatprep.mubr.bf16.mxu0 %v2685_v18 }
 0x365   : > { %6526 = vmatprep.subr.bf16.mxu0 %v7304_v42  ;;  %2630 = vmatprep.mubr.bf16.mxu1 %v7320_v46 }
 0x366   : > { %v2416_v48 = vpop.f32.mrb[136].mxu1 }
 0x367   : > { %v2418_v50 = vpop.f32.mrb[137].mxu1 }
 0x368   : > { %6527 = vmatpush3.bf16.msra.mxu0 %v7304_v42  ;;  %v2419_v53 = vpop.f32.mrb[138].mxu1 }
 0x369   : > { %6528 = vmatprep.subr.bf16.mxu0 %v7308_v47  ;;  %v2689_v55 = vpack.c.bf16 %v2419_v53, %v2416_v48  ;;  %v2421_v56 = vpop.f32.mrb[139].mxu1  ;;  %v7340_v48 = vld [vmem:[%s8780_s4 + $0x298] sm:$0xff]   ;;  %v7341_v53 = vld [vmem:[%s8780_s4 + $0x2a0] sm:$0xff]  }
 0x36b   : > { %6521 = vmatmul.mubr.bf16.gmra.mrb[68].mxu0 %v2686_v14  ;;  %2631 = vmatmul.mubr.bf16.gmra.mrb[244].mxu1 %v7322_v49  ;;  %v7334_v14 = vld [vmem:[%s8780_s4 + $0x268] sm:$0xff]  }
 0x36c   : > { %6529 = vmatpush3.bf16.msra.mxu0 %v7308_v47  ;;  %6540 = vmatprep.mubr.bf16.mxu0 %v2687_v38 }
 0x36d   : > { %6530 = vmatprep.subr.bf16.mxu0 %v7309_v54  ;;  %2638 = vmatprep.mubr.bf16.mxu1 %v7325_v57  ;;  %v7342_v57 = vld [vmem:[%s8780_s4 + $0x2a8] sm:$0xff]  }
 0x36e   : > { %v2424_v52 = vpop.f32.mrb[140].mxu1 }
 0x36f   : > { %v2426_v60 = vpop.f32.mrb[141].mxu1 }
 0x370   : > { %6531 = vmatpush3.bf16.msra.mxu0 %v7309_v54  ;;  %v2427_v61 = vpop.f32.mrb[142].mxu1 }
 0x371   : > { %6532 = vmatprep.subr.bf16.mxu0 %v7313_v58  ;;  %v2690_v0 = vpack.c.bf16 %v2427_v61, %v2424_v52  ;;  %v2429_v1 = vpop.f32.mrb[143].mxu1 }
 0x373   : > { %2639 = vmatmul.mubr.bf16.gmra.mrb[248].mxu1 %v7327_v59  ;;  %v7343_v59 = vld [vmem:[%s8780_s4 + $0x2b0] sm:$0xff]  }
 0x374   : > { %6533 = vmatpush3.bf16.msra.mxu0 %v7313_v58  ;;  %2646 = vmatprep.mubr.bf16.mxu1 %v7330_v62 }
 0x375   : > { %6534 = vmatprep.subr.bf16.mxu0 %v7314_v63 }
 0x376   : > { %v2432_v3 = vpop.f32.mrb[144].mxu1 }
 0x377   : > { %v2434_v5 = vpop.f32.mrb[145].mxu1 }
 0x378   : > { %6535 = vmatpush3.bf16.msra.mxu0 %v7314_v63  ;;  %v2435_v6 = vpop.f32.mrb[146].mxu1  ;;  %v7344_v63 = vld [vmem:[%s8780_s4 + $0x2b8] sm:$0xff]  }
 0x379   : > { %6536 = vmatprep.subr.bf16.mxu0 %v7318_v2  ;;  %v2691_v8 = vpack.c.bf16 %v2435_v6, %v2432_v3  ;;  %v2437_v10 = vpop.f32.mrb[147].mxu1  ;;  %v7346_v6 = vld [vmem:[%s8780_s4 + $0x2c8] sm:$0xff]  }
 0x37a   : > { %v7347_v10 = vld [vmem:[%s8780_s4 + $0x2d0] sm:$0xff]  }
 0x37b   : > { %2647 = vmatmul.mubr.bf16.gmra.mrb[252].mxu1 %v7332_v4 }
 0x37c   : > { %6537 = vmatpush3.bf16.msra.mxu0 %v7318_v2  ;;  %v7345_v2 = vld [vmem:[%s8780_s4 + $0x2c0] sm:$0xff]  }
 0x37d   : > { %6538 = vmatprep.subr.bf16.mxu0 %v7319_v7 }
 0x37e   : > { %v2440_v51 = vpop.f32.mrb[148].mxu1 }
 0x37f   : > { %v2442_v9 = vpop.f32.mrb[149].mxu1 }
 0x380   : > { %6539 = vmatpush3.bf16.msra.mxu0 %v7319_v7  ;;  %v2443_v44 = vpop.f32.mrb[150].mxu1 }
 0x381   : > { %6548 = vmatprep.subr.bf16.mxu0 %v7323_v11  ;;  %v2692_v13 = vpack.c.bf16 %v2443_v44, %v2440_v51  ;;  %v2445_v15 = vpop.f32.mrb[151].mxu1  ;;  %v7348_v44 = vld [vmem:[%s8780_s4 + $0x2d8] sm:$0xff]  }
 0x382   : > { %v7349_v15 = vld [vmem:[%s8780_s4 + $0x2e0] sm:$0xff]  }
 0x383   : > { %6541 = vmatmul.mubr.bf16.vlgmr.msra.gmra.mrb[64].mxu0 %v2688_v43  ;;  %v7339_v43 = vld [vmem:[%s8780_s4 + $0x290] sm:$0xff]  }
 0x384   : > { %6549 = vmatpush3.bf16.msra.mxu0 %v7323_v11  ;;  %6544 = vmatprep.mubr.bf16.mxu0 %v2689_v55 }
 0x385   : > { %6550 = vmatprep.subr.bf16.mxu0 %v7324_v12 }
 0x386   : > { %v2448_v18 = vpop.f32.mrb[152].mxu1 }
 0x387   : > { %v2450_v20 = vpop.f32.mrb[153].mxu1 }
 0x388   : > { %6551 = vmatpush3.bf16.msra.mxu0 %v7324_v12  ;;  %v2451_v22 = vpop.f32.mrb[154].mxu1 }
 0x389   : > { %6552 = vmatprep.subr.bf16.mxu0 %v7328_v16  ;;  %v2693_v25 = vpack.c.bf16 %v2451_v22, %v2448_v18  ;;  %v2453_v27 = vpop.f32.mrb[155].mxu1  ;;  %v7350_v22 = vld [vmem:[%s8780_s4 + $0x2e8] sm:$0xff]  }
 0x38a   : > { %v7351_v27 = vld [vmem:[%s8780_s4 + $0x2f0] sm:$0xff]  }
 0x38b   : > { %6545 = vmatmul.mubr.bf16.gmra.mrb[68].mxu0 %v2690_v0 }
 0x38c   : > { %6553 = vmatpush3.bf16.msra.mxu0 %v7328_v16  ;;  %6564 = vmatprep.mubr.bf16.mxu0 %v2691_v8 }
 0x38d   : > { %6554 = vmatprep.subr.bf16.mxu0 %v7329_v23 }
 0x38e   : > { %v2456_v30 = vpop.f32.mrb[156].mxu1 }
 0x38f   : > { %v2458_v32 = vpop.f32.mrb[157].mxu1 }
 0x390   : > { %6555 = vmatpush3.bf16.msra.mxu0 %v7329_v23  ;;  %v2459_v34 = vpop.f32.mrb[158].mxu1 }
 0x391   : > { %6556 = vmatprep.subr.bf16.mxu0 %v7333_v29  ;;  %v2694_v17 = vpack.c.bf16 %v2459_v34, %v2456_v30  ;;  %v2461_v19 = vpop.f32.mrb[159].mxu1  ;;  %v7352_v34 = vld [vmem:[%s8780_s4 + $0x2f8] sm:$0xff]  }
 0x392   : > { %v7353_v19 = vld [vmem:[%s8780_s4 + $0x300] sm:$0xff]  }
 0x394   : > { %6557 = vmatpush3.bf16.msra.mxu0 %v7333_v29 }
 0x395   : > { %6558 = vmatprep.subr.bf16.mxu0 %v7334_v14 }
 0x396   : > { %v2464_v24 = vpop.f32.mrb[160].mxu1 }
 0x397   : > { %v2466_v26 = vpop.f32.mrb[161].mxu1 }
 0x398   : > { %6559 = vmatpush3.bf16.msra.mxu0 %v7334_v14  ;;  %v2467_v35 = vpop.f32.mrb[162].mxu1 }
 0x399   : > { %6560 = vmatprep.subr.bf16.mxu0 %v7335_v21  ;;  %v2695_v37 = vpack.c.bf16 %v2467_v35, %v2464_v24  ;;  %v2469_v38 = vpop.f32.mrb[163].mxu1  ;;  %v7354_v35 = vld [vmem:[%s8780_s4 + $0x308] sm:$0xff]  }
 0x39a   : > { %v7355_v38 = vld [vmem:[%s8780_s4 + $0x310] sm:$0xff]  }
 0x39c   : > { %6561 = vmatpush3.bf16.msra.mxu0 %v7335_v21 }
 0x39d   : > { %6562 = vmatprep.subr.bf16.mxu0 %v7336_v36 }
 0x39e   : > { %v2472_v31 = vpop.f32.mrb[164].mxu1 }
 0x39f   : > { %v2474_v33 = vpop.f32.mrb[165].mxu1 }
 0x3a0   : > { %6563 = vmatpush3.bf16.msra.mxu0 %v7336_v36  ;;  %v2475_v39 = vpop.f32.mrb[166].mxu1 }
 0x3a1   : > { %6572 = vmatprep.subr.bf16.mxu0 %v7337_v28  ;;  %v2696_v41 = vpack.c.bf16 %v2475_v39, %v2472_v31  ;;  %v2477_v42 = vpop.f32.mrb[167].mxu1  ;;  %v7356_v39 = vld [vmem:[%s8780_s4 + $0x318] sm:$0xff]  }
 0x3a2   : > { %v7357_v42 = vld [vmem:[%s8780_s4 + $0x320] sm:$0xff]  }
 0x3a3   : > { %6565 = vmatmul.mubr.bf16.vlgmr.msra.gmra.mrb[64].mxu0 %v2692_v13 }
 0x3a4   : > { %6573 = vmatpush3.bf16.msra.mxu0 %v7337_v28  ;;  %6568 = vmatprep.mubr.bf16.mxu0 %v2693_v25 }
 0x3a5   : > { %6574 = vmatprep.subr.bf16.mxu0 %v7338_v40 }
 0x3a6   : > { %v2480_v45 = vpop.f32.mrb[168].mxu1 }
 0x3a7   : > { %v2482_v46 = vpop.f32.mrb[169].mxu1 }
 0x3a8   : > { %6575 = vmatpush3.bf16.msra.mxu0 %v7338_v40  ;;  %v2483_v47 = vpop.f32.mrb[170].mxu1 }
 0x3a9   : > { %6576 = vmatprep.subr.bf16.mxu0 %v7339_v43  ;;  %v2697_v49 = vpack.c.bf16 %v2483_v47, %v2480_v45  ;;  %v2485_v50 = vpop.f32.mrb[171].mxu1  ;;  %v7358_v47 = vld [vmem:[%s8780_s4 + $0x328] sm:$0xff]  }
 0x3aa   : > { %v7359_v50 = vld [vmem:[%s8780_s4 + $0x330] sm:$0xff]  }
 0x3ab   : > { %6569 = vmatmul.mubr.bf16.gmra.mrb[68].mxu0 %v2694_v17 }
 0x3ac   : > { %6577 = vmatpush3.bf16.msra.mxu0 %v7339_v43  ;;  %6588 = vmatprep.mubr.bf16.mxu0 %v2695_v37 }
 0x3ad   : > { %6578 = vmatprep.subr.bf16.mxu0 %v7340_v48 }
 0x3ae   : > { %v2488_v54 = vpop.f32.mrb[172].mxu1 }
 0x3af   : > { %v2490_v55 = vpop.f32.mrb[173].mxu1 }
 0x3b0   : > { %6579 = vmatpush3.bf16.msra.mxu0 %v7340_v48  ;;  %v2491_v56 = vpop.f32.mrb[174].mxu1 }
 0x3b1   : > { %6580 = vmatprep.subr.bf16.mxu0 %v7341_v53  ;;  %v2698_v58 = vpack.c.bf16 %v2491_v56, %v2488_v54  ;;  %v2493_v52 = vpop.f32.mrb[175].mxu1  ;;  %v7360_v56 = vld [vmem:[%s8780_s4 + $0x338] sm:$0xff]  }
 0x3b2   : > { %v7361_v52 = vld [vmem:[%s8780_s4 + $0x340] sm:$0xff]  }
 0x3b4   : > { %6581 = vmatpush3.bf16.msra.mxu0 %v7341_v53 }
 0x3b5   : > { %6582 = vmatprep.subr.bf16.mxu0 %v7342_v57 }
 0x3b6   : > { %v2496_v60 = vpop.f32.mrb[176].mxu1 }
 0x3b7   : > { %v2498_v61 = vpop.f32.mrb[177].mxu1 }
 0x3b8   : > { %6583 = vmatpush3.bf16.msra.mxu0 %v7342_v57  ;;  %v2499_v62 = vpop.f32.mrb[178].mxu1 }
 0x3b9   : > { %6584 = vmatprep.subr.bf16.mxu0 %v7343_v59  ;;  %v2699_v0 = vpack.c.bf16 %v2499_v62, %v2496_v60  ;;  %v2501_v1 = vpop.f32.mrb[179].mxu1  ;;  %v7362_v62 = vld [vmem:[%s8780_s4 + $0x348] sm:$0xff]  }
 0x3ba   : > { %v7363_v1 = vld [vmem:[%s8780_s4 + $0x350] sm:$0xff]  }
 0x3bc   : > { %6585 = vmatpush3.bf16.msra.mxu0 %v7343_v59 }
 0x3bd   : > { %6586 = vmatprep.subr.bf16.mxu0 %v7344_v63 }
 0x3be   : > { %v2504_v3 = vpop.f32.mrb[180].mxu1 }
 0x3bf   : > { %v2506_v4 = vpop.f32.mrb[181].mxu1 }
 0x3c0   : > { %6587 = vmatpush3.bf16.msra.mxu0 %v7344_v63  ;;  %v2507_v5 = vpop.f32.mrb[182].mxu1 }
 0x3c1   : > { %6596 = vmatprep.subr.bf16.mxu0 %v7345_v2  ;;  %v2700_v7 = vpack.c.bf16 %v2507_v5, %v2504_v3  ;;  %v2509_v8 = vpop.f32.mrb[183].mxu1  ;;  %v7364_v5 = vld [vmem:[%s8780_s4 + $0x358] sm:$0xff]  }
 0x3c2   : > { %v7365_v8 = vld [vmem:[%s8780_s4 + $0x360] sm:$0xff]  }
 0x3c3   : > { %6589 = vmatmul.mubr.bf16.vlgmr.msra.gmra.mrb[64].mxu0 %v2696_v41 }
 0x3c4   : > { %6597 = vmatpush3.bf16.msra.mxu0 %v7345_v2  ;;  %6592 = vmatprep.mubr.bf16.mxu0 %v2697_v49 }
 0x3c5   : > { %6598 = vmatprep.subr.bf16.mxu0 %v7346_v6 }
 0x3c6   : > { %v2512_v11 = vpop.f32.mrb[184].mxu1 }
 0x3c7   : > { %v2514_v51 = vpop.f32.mrb[185].mxu1 }
 0x3c8   : > { %6599 = vmatpush3.bf16.msra.mxu0 %v7346_v6  ;;  %v2515_v9 = vpop.f32.mrb[186].mxu1 }
 0x3c9   : > { %6600 = vmatprep.subr.bf16.mxu0 %v7347_v10  ;;  %v2701_v12 = vpack.c.bf16 %v2515_v9, %v2512_v11  ;;  %v2517_v13 = vpop.f32.mrb[187].mxu1  ;;  %v7366_v9 = vld [vmem:[%s8780_s4 + $0x368] sm:$0xff]  }
 0x3ca   : > { %v7367_v13 = vld [vmem:[%s8780_s4 + $0x370] sm:$0xff]  }
 0x3cb   : > { %6593 = vmatmul.mubr.bf16.gmra.mrb[68].mxu0 %v2698_v58 }
 0x3cc   : > { %6601 = vmatpush3.bf16.msra.mxu0 %v7347_v10  ;;  %6612 = vmatprep.mubr.bf16.mxu0 %v2699_v0 }
 0x3cd   : > { %6602 = vmatprep.subr.bf16.mxu0 %v7348_v44 }
 0x3ce   : > { %v2520_v16 = vpop.f32.mrb[188].mxu1 }
 0x3cf   : > { %v2522_v18 = vpop.f32.mrb[189].mxu1 }
 0x3d0   : > { %6603 = vmatpush3.bf16.msra.mxu0 %v7348_v44  ;;  %v2523_v20 = vpop.f32.mrb[190].mxu1 }
 0x3d1   : > { %6604 = vmatprep.subr.bf16.mxu0 %v7349_v15  ;;  %v2702_v23 = vpack.c.bf16 %v2523_v20, %v2520_v16  ;;  %v2525_v25 = vpop.f32.mrb[191].mxu1  ;;  %v7368_v20 = vld [vmem:[%s8780_s4 + $0x378] sm:$0xff]  }
 0x3d2   : > { %v7369_v25 = vld [vmem:[%s8780_s4 + $0x380] sm:$0xff]  }
 0x3d4   : > { %6605 = vmatpush3.bf16.msra.mxu0 %v7349_v15 }
 0x3d5   : > { %6606 = vmatprep.subr.bf16.mxu0 %v7350_v22 }
 0x3d6   : > { %v2528_v29 = vpop.f32.mrb[192].mxu1 }
 0x3d7   : > { %v2530_v30 = vpop.f32.mrb[193].mxu1 }
 0x3d8   : > { %6607 = vmatpush3.bf16.msra.mxu0 %v7350_v22  ;;  %v2531_v32 = vpop.f32.mrb[194].mxu1 }
 0x3d9   : > { %6608 = vmatprep.subr.bf16.mxu0 %v7351_v27  ;;  %v2703_v14 = vpack.c.bf16 %v2531_v32, %v2528_v29  ;;  %v2533_v17 = vpop.f32.mrb[195].mxu1  ;;  %v7370_v32 = vld [vmem:[%s8780_s4 + $0x388] sm:$0xff]  }
 0x3da   : > { %v7371_v17 = vld [vmem:[%s8780_s4 + $0x390] sm:$0xff]  }
 0x3dc   : > { %6609 = vmatpush3.bf16.msra.mxu0 %v7351_v27 }
 0x3dd   : > { %6610 = vmatprep.subr.bf16.mxu0 %v7352_v34 }
 0x3de   : > { %v2536_v21 = vpop.f32.mrb[196].mxu1 }
 0x3df   : > { %v2538_v24 = vpop.f32.mrb[197].mxu1 }
 0x3e0   : > { %6611 = vmatpush3.bf16.msra.mxu0 %v7352_v34  ;;  %v2539_v26 = vpop.f32.mrb[198].mxu1 }
 0x3e1   : > { %6620 = vmatprep.subr.bf16.mxu0 %v7353_v19  ;;  %v2704_v36 = vpack.c.bf16 %v2539_v26, %v2536_v21  ;;  %v2541_v37 = vpop.f32.mrb[199].mxu1  ;;  %v7372_v26 = vld [vmem:[%s8780_s4 + $0x398] sm:$0xff]  }
 0x3e2   : > { %v7373_v37 = vld [vmem:[%s8780_s4 + $0x3a0] sm:$0xff]  }
 0x3e3   : > { %6613 = vmatmul.mubr.bf16.vlgmr.msra.gmra.mrb[64].mxu0 %v2700_v7 }
 0x3e4   : > { %6621 = vmatpush3.bf16.msra.mxu0 %v7353_v19  ;;  %6616 = vmatprep.mubr.bf16.mxu0 %v2701_v12 }
 0x3e5   : > { %6622 = vmatprep.subr.bf16.mxu0 %v7354_v35 }
 0x3e6   : > { %v2544_v28 = vpop.f32.mrb[200].mxu1 }
 0x3e7   : > { %v2546_v31 = vpop.f32.mrb[201].mxu1 }
 0x3e8   : > { %6623 = vmatpush3.bf16.msra.mxu0 %v7354_v35  ;;  %v2547_v33 = vpop.f32.mrb[202].mxu1 }
 0x3e9   : > { %6624 = vmatprep.subr.bf16.mxu0 %v7355_v38  ;;  %v2705_v40 = vpack.c.bf16 %v2547_v33, %v2544_v28  ;;  %v2549_v41 = vpop.f32.mrb[203].mxu1  ;;  %v7374_v33 = vld [vmem:[%s8780_s4 + $0x3a8] sm:$0xff]  }
 0x3ea   : > { %v7375_v41 = vld [vmem:[%s8780_s4 + $0x3b0] sm:$0xff]  }
 0x3eb   : > { %6617 = vmatmul.mubr.bf16.gmra.mrb[68].mxu0 %v2702_v23 }
 0x3ec   : > { %6625 = vmatpush3.bf16.msra.mxu0 %v7355_v38  ;;  %6636 = vmatprep.mubr.bf16.mxu0 %v2703_v14 }
 0x3ed   : > { %6626 = vmatprep.subr.bf16.mxu0 %v7356_v39 }
 0x3ee   : > { %v2552_v43 = vpop.f32.mrb[204].mxu1 }
 0x3ef   : > { %v2554_v45 = vpop.f32.mrb[205].mxu1 }
 0x3f0   : > { %6627 = vmatpush3.bf16.msra.mxu0 %v7356_v39  ;;  %v2555_v46 = vpop.f32.mrb[206].mxu1 }
 0x3f1   : > { %6628 = vmatprep.subr.bf16.mxu0 %v7357_v42  ;;  %v2706_v48 = vpack.c.bf16 %v2555_v46, %v2552_v43  ;;  %v2557_v49 = vpop.f32.mrb[207].mxu1  ;;  %v7376_v46 = vld [vmem:[%s8780_s4 + $0x3b8] sm:$0xff]  }
 0x3f2   : > { %v7377_v49 = vld [vmem:[%s8780_s4 + $0x3c0] sm:$0xff]  }
 0x3f4   : > { %6629 = vmatpush3.bf16.msra.mxu0 %v7357_v42 }
 0x3f5   : > { %6630 = vmatprep.subr.bf16.mxu0 %v7358_v47 }
 0x3f6   : > { %v2560_v53 = vpop.f32.mrb[208].mxu1 }
 0x3f7   : > { %v2562_v54 = vpop.f32.mrb[209].mxu1 }
 0x3f8   : > { %6631 = vmatpush3.bf16.msra.mxu0 %v7358_v47  ;;  %v2563_v55 = vpop.f32.mrb[210].mxu1 }
 0x3f9   : > { %6632 = vmatprep.subr.bf16.mxu0 %v7359_v50  ;;  %v2707_v57 = vpack.c.bf16 %v2563_v55, %v2560_v53  ;;  %v2565_v58 = vpop.f32.mrb[211].mxu1  ;;  %v7378_v55 = vld [vmem:[%s8780_s4 + $0x3c8] sm:$0xff]  }
 0x3fa   : > { %v7379_v58 = vld [vmem:[%s8780_s4 + $0x3d0] sm:$0xff]  }
 0x3fc   : > { %6633 = vmatpush3.bf16.msra.mxu0 %v7359_v50 }
 0x3fd   : > { %6634 = vmatprep.subr.bf16.mxu0 %v7360_v56 }
 0x3fe   : > { %v2568_v59 = vpop.f32.mrb[212].mxu1 }
 0x3ff   : > { %v2570_v60 = vpop.f32.mrb[213].mxu1 }
 0x400   : > { %6635 = vmatpush3.bf16.msra.mxu0 %v7360_v56  ;;  %v2571_v61 = vpop.f32.mrb[214].mxu1 }
 0x401   : > { %6644 = vmatprep.subr.bf16.mxu0 %v7361_v52  ;;  %v2708_v63 = vpack.c.bf16 %v2571_v61, %v2568_v59  ;;  %v2573_v0 = vpop.f32.mrb[215].mxu1  ;;  %v7380_v61 = vld [vmem:[%s8780_s4 + $0x3d8] sm:$0xff]  }
 0x402   : > { %v7381_v0 = vld [vmem:[%s8780_s4 + $0x3e0] sm:$0xff]  }
 0x403   : > { %6637 = vmatmul.mubr.bf16.vlgmr.msra.gmra.mrb[64].mxu0 %v2704_v36 }
 0x404   : > { %6645 = vmatpush3.bf16.msra.mxu0 %v7361_v52  ;;  %6640 = vmatprep.mubr.bf16.mxu0 %v2705_v40 }
 0x405   : > { %6646 = vmatprep.subr.bf16.mxu0 %v7362_v62 }
 0x406   : > { %v2576_v2 = vpop.f32.mrb[216].mxu1 }
 0x407   : > { %v2578_v3 = vpop.f32.mrb[217].mxu1 }
 0x408   : > { %6647 = vmatpush3.bf16.msra.mxu0 %v7362_v62  ;;  %v2579_v4 = vpop.f32.mrb[218].mxu1 }
 0x409   : > { %6648 = vmatprep.subr.bf16.mxu0 %v7363_v1  ;;  %v2709_v6 = vpack.c.bf16 %v2579_v4, %v2576_v2  ;;  %v2581_v7 = vpop.f32.mrb[219].mxu1  ;;  %v7382_v4 = vld [vmem:[%s8780_s4 + $0x3e8] sm:$0xff]  }
 0x40a   : > { %v7383_v7 = vld [vmem:[%s8780_s4 + $0x3f0] sm:$0xff]  }
 0x40b   : > { %6641 = vmatmul.mubr.bf16.gmra.mrb[68].mxu0 %v2706_v48 }
 0x40c   : > { %6649 = vmatpush3.bf16.msra.mxu0 %v7363_v1  ;;  %6660 = vmatprep.mubr.bf16.mxu0 %v2707_v57 }
 0x40d   : > { %6650 = vmatprep.subr.bf16.mxu0 %v7364_v5 }
 0x40e   : > { %v2584_v10 = vpop.f32.mrb[220].mxu1 }
 0x40f   : > { %v2586_v11 = vpop.f32.mrb[221].mxu1 }
 0x410   : > { %6651 = vmatpush3.bf16.msra.mxu0 %v7364_v5  ;;  %v2587_v51 = vpop.f32.mrb[222].mxu1  ;;  %v5902_v11 = vld [vmem:[%s8781_s5] ss:$0 sm:$0xff] }
 0x411   : > { %6652 = vmatprep.subr.bf16.mxu0 %v7365_v8  ;;  %v2710_v44 = vpack.c.bf16 %v2587_v51, %v2584_v10  ;;  %v2589_v12 = vpop.f32.mrb[223].mxu1  ;;  %v7443_v10 = vmov 0.0  }
 0x412   : > { %6716 = vmatprep.subr.bf16.mxu1 %v7443_v10  ;;  %6724 = vmatprep.mubr.msk.bf16.mxu1 %vm7444_vm0, %v7443_v10 }
 0x414   : > { %6653 = vmatpush3.bf16.msra.mxu0 %v7365_v8  ;;  %v7384_v8 = vld [vmem:[%s8780_s4 + $0x3f8] sm:$0xff]  }
 0x415   : > { %6654 = vmatprep.subr.bf16.mxu0 %v7366_v9 }
 0x416   : > { %v2592_v15 = vpop.f32.mrb[224].mxu1 }
 0x417   : > { %v2594_v16 = vpop.f32.mrb[225].mxu1 }
 0x418   : > { %6655 = vmatpush3.bf16.msra.mxu0 %v7366_v9  ;;  %v2595_v18 = vpop.f32.mrb[226].mxu1 }
 0x419   : > { %6656 = vmatprep.subr.bf16.mxu0 %v7367_v13  ;;  %v2711_v22 = vpack.c.bf16 %v2595_v18, %v2592_v15  ;;  %v2597_v23 = vpop.f32.mrb[227].mxu1 }
 0x41c   : > { %6657 = vmatpush3.bf16.msra.mxu0 %v7367_v13 }
 0x41d   : > { %6658 = vmatprep.subr.bf16.mxu0 %v7368_v20 }
 0x41e   : > { %v2600_v27 = vpop.f32.mrb[228].mxu1 }
 0x41f   : > { %v2602_v29 = vpop.f32.mrb[229].mxu1 }
 0x420   : > { %6659 = vmatpush3.bf16.msra.mxu0 %v7368_v20  ;;  %v2603_v30 = vpop.f32.mrb[230].mxu1 }
 0x421   : > { %6668 = vmatprep.subr.bf16.mxu0 %v7369_v25  ;;  %v2712_v34 = vpack.c.bf16 %v2603_v30, %v2600_v27  ;;  %v2605_v14 = vpop.f32.mrb[231].mxu1 }
 0x423   : > { %6661 = vmatmul.mubr.bf16.vlgmr.msra.gmra.mrb[64].mxu0 %v2708_v63 }
 0x424   : > { %6669 = vmatpush3.bf16.msra.mxu0 %v7369_v25  ;;  %6664 = vmatprep.mubr.bf16.mxu0 %v2709_v6 }
 0x425   : > { %6670 = vmatprep.subr.bf16.mxu0 %v7370_v32 }
 0x426   : > { %v2608_v19 = vpop.f32.mrb[232].mxu1 }
 0x427   : > { %v2610_v21 = vpop.f32.mrb[233].mxu1 }
 0x428   : > { %6671 = vmatpush3.bf16.msra.mxu0 %v7370_v32  ;;  %v2611_v24 = vpop.f32.mrb[234].mxu1 }
 0x429   : > { %6672 = vmatprep.subr.bf16.mxu0 %v7371_v17  ;;  %v2713_v35 = vpack.c.bf16 %v2611_v24, %v2608_v19  ;;  %v2613_v36 = vpop.f32.mrb[235].mxu1 }
 0x42b   : > { %6665 = vmatmul.mubr.bf16.gmra.mrb[68].mxu0 %v2710_v44 }
 0x42c   : > { %6673 = vmatpush3.bf16.msra.mxu0 %v7371_v17  ;;  %6684 = vmatprep.mubr.bf16.mxu0 %v2711_v22 }
 0x42d   : > { %6674 = vmatprep.subr.bf16.mxu0 %v7372_v26 }
 0x42e   : > { %v2616_v38 = vpop.f32.mrb[236].mxu1 }
 0x42f   : > { %v2618_v28 = vpop.f32.mrb[237].mxu1 }
 0x430   : > { %6675 = vmatpush3.bf16.msra.mxu0 %v7372_v26  ;;  %v2619_v31 = vpop.f32.mrb[238].mxu1 }
 0x431   : > { %6676 = vmatprep.subr.bf16.mxu0 %v7373_v37  ;;  %v2714_v39 = vpack.c.bf16 %v2619_v31, %v2616_v38  ;;  %v2621_v40 = vpop.f32.mrb[239].mxu1 }
 0x434   : > { %6677 = vmatpush3.bf16.msra.mxu0 %v7373_v37 }
 0x435   : > { %6678 = vmatprep.subr.bf16.mxu0 %v7374_v33 }
 0x436   : > { %v2624_v42 = vpop.f32.mrb[240].mxu1 }
 0x437   : > { %v2626_v43 = vpop.f32.mrb[241].mxu1 }
 0x438   : > { %6679 = vmatpush3.bf16.msra.mxu0 %v7374_v33  ;;  %v2627_v45 = vpop.f32.mrb[242].mxu1 }
 0x439   : > { %6680 = vmatprep.subr.bf16.mxu0 %v7375_v41  ;;  %v2715_v47 = vpack.c.bf16 %v2627_v45, %v2624_v42  ;;  %v2629_v48 = vpop.f32.mrb[243].mxu1 }
 0x43a   : > { %v7395_v48 = vld [vmem:[%s8783_s7 + $0x28] sm:$0xff]  }
 0x43c   : > { %6681 = vmatpush3.bf16.msra.mxu0 %v7375_v41 }
 0x43d   : > { %6682 = vmatprep.subr.bf16.mxu0 %v7376_v46 }
 0x43e   : > { %v2632_v50 = vpop.f32.mrb[244].mxu1 }
 0x43f   : > { %v2634_v53 = vpop.f32.mrb[245].mxu1 }
 0x440   : > { %6683 = vmatpush3.bf16.msra.mxu0 %v7376_v46  ;;  %v2635_v54 = vpop.f32.mrb[246].mxu1  ;;  %v7385_v46 = vld [vmem:[%s8782_s6] sm:$0xff]   ;;  %v7388_v53 = vld [vmem:[%s8782_s6 + $0x18] sm:$0xff]  }
 0x441   : > { %6692 = vmatprep.subr.bf16.mxu0 %v7377_v49  ;;  %v2716_v56 = vpack.c.bf16 %v2635_v54, %v2632_v50  ;;  %v2637_v57 = vpop.f32.mrb[247].mxu1  ;;  %v7387_v50 = vld [vmem:[%s8782_s6 + $0x10] sm:$0xff]   ;;  %v7389_v54 = vld [vmem:[%s8782_s6 + $0x20] sm:$0xff]  }
 0x442   : > { %v7392_v57 = vld [vmem:[%s8782_s6 + $0x38] sm:$0xff]  }
 0x443   : > { %6685 = vmatmul.mubr.bf16.vlgmr.msra.gmra.mrb[64].mxu0 %v2712_v34 }
 0x444   : > { %6693 = vmatpush3.bf16.msra.mxu0 %v7377_v49  ;;  %6688 = vmatprep.mubr.bf16.mxu0 %v2713_v35  ;;  %v7386_v49 = vld [vmem:[%s8782_s6 + $0x8] sm:$0xff]  }
 0x445   : > { %6694 = vmatprep.subr.bf16.mxu0 %v7378_v55 }
 0x446   : > { %v2640_v52 = vpop.f32.mrb[248].mxu1 }
 0x447   : > { %v2642_v59 = vpop.f32.mrb[249].mxu1 }
 0x448   : > { %6695 = vmatpush3.bf16.msra.mxu0 %v7378_v55  ;;  %v2643_v60 = vpop.f32.mrb[250].mxu1  ;;  %v7390_v55 = vld [vmem:[%s8782_s6 + $0x28] sm:$0xff]  }
 0x449   : > { %6696 = vmatprep.subr.bf16.mxu0 %v7379_v58  ;;  %v2717_v62 = vpack.c.bf16 %v2643_v60, %v2640_v52  ;;  %v2645_v63 = vpop.f32.mrb[251].mxu1  ;;  %v7398_v52 = vld [vmem:[%s8783_s7] sm:$0xff]   ;;  %v7400_v59 = vld [vmem:[%s8783_s7 + $0x8] sm:$0xff]   ;;  %v7402_v60 = vld [vmem:[%s8783_s7 + $0x10] sm:$0xff]  }
 0x44a   : > { %v7397_v63 = vld [vmem:[%s8783_s7 + $0x38] sm:$0xff]  }
 0x44b   : > { %6689 = vmatmul.mubr.bf16.gmra.mrb[68].mxu0 %v2714_v39 }
 0x44c   : > { %6697 = vmatpush3.bf16.msra.mxu0 %v7379_v58  ;;  %6708 = vmatprep.mubr.bf16.mxu0 %v2715_v47  ;;  %v7394_v47 = vld [vmem:[%s8783_s7 + $0x20] sm:$0xff]  }
 0x44d   : > { %6698 = vmatprep.subr.bf16.mxu0 %v7380_v61  ;;  %v7393_v58 = vld [vmem:[%s8782_s6 + $0x40] sm:$0xff]  }
 0x44e   : > { %v2648_v1 = vpop.f32.mrb[252].mxu1 }
 0x44f   : > { %v2650_v2 = vpop.f32.mrb[253].mxu1 }
 0x450   : > { %6699 = vmatpush3.bf16.msra.mxu0 %v7380_v61  ;;  %v2651_v3 = vpop.f32.mrb[254].mxu1  ;;  %v7396_v61 = vld [vmem:[%s8783_s7 + $0x30] sm:$0xff]  }
 0x451   : > { %6700 = vmatprep.subr.bf16.mxu0 %v7381_v0  ;;  %v2718_v5 = vpack.c.bf16 %v2651_v3, %v2648_v1  ;;  %v2653_v6 = vpop.f32.mrb[255].mxu1  ;;  %v7406_v3 = vld [vmem:[%s8783_s7 + $0x60] sm:$0xff]  }
 0x452   : > { %v7408_v6 = vld [vmem:[%s8783_s7 + $0x68] sm:$0xff]  }
 0x454   : > { %6701 = vmatpush3.bf16.msra.mxu0 %v7381_v0 }
 0x455   : > { %6702 = vmatprep.subr.bf16.mxu0 %v7382_v4 }
 0x458   : > { %6703 = vmatpush3.bf16.msra.mxu0 %v7382_v4 }
 0x459   : > { %6704 = vmatprep.subr.bf16.mxu0 %v7383_v7 }
 0x45c   : > { %6705 = vmatpush3.bf16.msra.mxu0 %v7383_v7 }
 0x45d   : > { %6706 = vmatprep.subr.bf16.mxu0 %v7384_v8 }
 0x460   : > { %6707 = vmatpush3.bf16.msra.mxu0 %v7384_v8 }
 0x461   : > { %6772 = vmatprep.subr.bf16.mxu0 %v7443_v10 }
 0x463   : > { %6709 = vmatmul.mubr.bf16.vlgmr.msra.gmra.mrb[64].mxu0 %v2716_v56  ;;  %v7391_v56 = vld [vmem:[%s8782_s6 + $0x30] sm:$0xff]  }
 0x464   : > { %6712 = vmatprep.mubr.bf16.mxu0 %v2717_v62  ;;  %6773 = vmatpush3.bf16.msra.mxu0 %v7398_v52  ;;  %v7404_v62 = vld [vmem:[%s8783_s7 + $0x18] sm:$0xff]  }
 0x465   : > { %6774 = vmatprep.subr.bf16.mxu0 %v7443_v10  ;;  %v7421_v52 = vld [vmem:[%s8783_s7 + $0xd8] sm:$0xff]  }
 0x468   : > { %6775 = vmatpush3.bf16.msra.mxu0 %v7400_v59  ;;  %v7428_v59 = vld [vmem:[%s8783_s7 + $0xf8] sm:$0xff]  }
 0x469   : > { %6776 = vmatprep.subr.bf16.mxu0 %v7443_v10 }
 0x46b   : > { %6713 = vmatmul.mubr.bf16.gmra.mrb[68].mxu0 %v2718_v5 }
 0x46c   : > { %6780 = vmatprep.mubr.msk.bf16.mxu0 %vm7444_vm0, %v7443_v10  ;;  %6777 = vmatpush3.bf16.msra.mxu0 %v7402_v60 }
 0x46d   : > { %6778 = vmatprep.subr.bf16.mxu0 %v7443_v10 }
 0x470   : > { %6779 = vmatpush3.bf16.msra.mxu0 %v7404_v62  ;;  %v7423_v62 = vld [vmem:[%s8783_s7 + $0x100] sm:$0xff]  }
 0x471   : > { %6796 = vmatprep.subr.bf16.mxu0 %v7443_v10 }
 0x536   : > { %v6710_v51 = vpop.f32.mrb[64].mxu0 }
 0x537   : > { %v4647_v9 = vadd.f32 %v6710_v51, %v5902_v11  ;;  %v4600_v44 = vpop.f32.mrb[65].mxu0  ;;  %v7399_v51 = vld [vmem:[%s8783_s7 + $0x40] sm:$0xff]  }
 0x538   : > { %v4645_v12 = vadd.f32 %v5902_v11, %v4600_v44  ;;  %v6711_v13 = vpop.f32.mrb[66].mxu0 }
 0x539   : > { %v4663_v15 = vmul.f32 0.01, %v4647_v9  ;;  %v4648_v16 = vadd.f32 %v6711_v13, %v5902_v11  ;;  %v4603_v18 = vpop.f32.mrb[67].mxu0  ;;  %vm4655_vm1 = vcmp.gt.f32.partialorder %v4647_v9, 0.0  ;;  %v7401_v13 = vld [vmem:[%s8783_s7 + $0x48] sm:$0xff]  }
 0x53a   : > { %v4661_v20 = vmul.f32 0.01, %v4645_v12  ;;  %v4646_v22 = vadd.f32 %v5902_v11, %v4603_v18  ;;  %vm4653_vm2 = vcmp.gt.f32.partialorder %v4645_v12, 0.0 }
 0x53b   : > { %vm4656_vm3 = vcmp.gt.f32.partialorder %v4648_v16, 0.0  ;;  %v4664_v23 = vmul.f32 0.01, %v4648_v16  ;;  %v4671_v27 = vsel %vm4655_vm1, %v4647_v9, %v4663_v15  ;;  %v7412_v15 = vld [vmem:[%s8783_s7 + $0x78] sm:$0xff]  }
 0x53c   : > { %vm4654_vm4 = vcmp.gt.f32.partialorder %v4646_v22, 0.0  ;;  %v4662_v25 = vmul.f32 0.01, %v4646_v22  ;;  %v4669_v30 = vsel %vm4653_vm2, %v4645_v12, %v4661_v20  ;;  %v7410_v12 = vld [vmem:[%s8783_s7 + $0x70] sm:$0xff]  }
 0x53d   : > { %v4672_v29 = vsel %vm4656_vm3, %v4648_v16, %v4664_v23  ;;  %v7403_v20 = vld [vmem:[%s8783_s7 + $0x50] sm:$0xff]  }
 0x53e   : > { %v4678_v32 = vpack.c.bf16 %v4672_v29, %v4671_v27  ;;  %v4670_v34 = vsel %vm4654_vm4, %v4646_v22, %v4662_v25  ;;  %v6714_v14 = vpop.f32.mrb[68].mxu0  ;;  %v7405_v27 = vld [vmem:[%s8783_s7 + $0x58] sm:$0xff]  }
 0x53f   : > { %v4677_v17 = vpack.c.bf16 %v4670_v34, %v4669_v30  ;;  %v4651_v19 = vadd.f32 %v6714_v14, %v5902_v11  ;;  %v4616_v21 = vpop.f32.mrb[69].mxu0  ;;  %v7414_v14 = vld [vmem:[%s8783_s7 + $0xa0] sm:$0xff]  }
 0x540   : > { %v4649_v24 = vadd.f32 %v5902_v11, %v4616_v21  ;;  %v6715_v26 = vpop.f32.mrb[70].mxu0  ;;  %v7409_v21 = vld [vmem:[%s8783_s7 + $0x88] sm:$0xff]  }
 0x541   : > { %v4667_v35 = vmul.f32 0.01, %v4651_v19  ;;  %v4652_v36 = vadd.f32 %v6715_v26, %v5902_v11  ;;  %v4619_v37 = vpop.f32.mrb[71].mxu0  ;;  %6717 = vmatpush3.bf16.msra.mxu1 %v4677_v17  ;;  %vm4659_vm5 = vcmp.gt.f32.partialorder %v4651_v19, 0.0 }
 0x542   : > { %v4665_v38 = vmul.f32 0.01, %v4649_v24  ;;  %v4650_v28 = vadd.f32 %v5902_v11, %v4619_v37  ;;  %6718 = vmatprep.subr.bf16.mxu1 %v7443_v10  ;;  %vm4657_vm6 = vcmp.gt.f32.partialorder %v4649_v24, 0.0 }
 0x543   : > { %vm4660_vm7 = vcmp.gt.f32.partialorder %v4652_v36, 0.0  ;;  %v4668_v31 = vmul.f32 0.01, %v4652_v36  ;;  %v4675_v39 = vsel %vm4659_vm5, %v4651_v19, %v4667_v35 }
 0x544   : > { %vm4658_vm8 = vcmp.gt.f32.partialorder %v4650_v28, 0.0  ;;  %v4666_v33 = vmul.f32 0.01, %v4650_v28  ;;  %v4673_v41 = vsel %vm4657_vm6, %v4649_v24, %v4665_v38  ;;  %v7416_v24 = vld [vmem:[%s8783_s7 + $0xa8] sm:$0xff]   ;;  %v7418_v38 = vld [vmem:[%s8783_s7 + $0xb0] sm:$0xff]  }
 0x545   : > { %v4676_v40 = vsel %vm4660_vm7, %v4652_v36, %v4668_v31  ;;  %6719 = vmatpush3.bf16.msra.mxu1 %v4678_v32  ;;  %v7407_v32 = vld [vmem:[%s8783_s7 + $0x80] sm:$0xff]   ;;  %v7411_v36 = vld [vmem:[%s8783_s7 + $0x90] sm:$0xff]  }
 0x546   : > { %v4680_v42 = vpack.c.bf16 %v4676_v40, %v4675_v39  ;;  %v4674_v43 = vsel %vm4658_vm8, %v4650_v28, %v4666_v33  ;;  %6720 = vmatprep.subr.bf16.mxu1 %v7443_v10  ;;  %v7413_v33 = vld [vmem:[%s8783_s7 + $0x98] sm:$0xff]  }
 0x547   : > { %v4679_v45 = vpack.c.bf16 %v4674_v43, %v4673_v41  ;;  %v7420_v39 = vld [vmem:[%s8783_s7 + $0xb8] sm:$0xff]  }
 0x549   : > { %6721 = vmatpush3.bf16.msra.mxu1 %v4679_v45  ;;  %v7422_v45 = vld [vmem:[%s8783_s7 + $0xe0] sm:$0xff]  }
 0x54a   : > { %6722 = vmatprep.subr.bf16.mxu1 %v7443_v10 }
 0x54d   : > { %6723 = vmatpush3.bf16.msra.mxu1 %v4680_v42  ;;  %v7415_v42 = vld [vmem:[%s8783_s7 + $0xc0] sm:$0xff]  }
 0x54e   : > { %6760 = vmatprep.subr.bf16.mxu1 %v7443_v10 }
 0x550   : > { %6725 = vmatmul.mubr.msk.bf16.vlgmr.msra.gmra.mrb[0].mxu1 %vm4726_vm9, %v7385_v46 }
 0x551   : > { %6728 = vmatprep.mubr.msk.bf16.mxu1 %vm7444_vm0, %v7443_v10  ;;  %6761 = vmatpush3.bf16.msra.mxu1 %v7394_v47 }
 0x552   : > { %6762 = vmatprep.subr.bf16.mxu1 %v7443_v10 }
 0x555   : > { %6763 = vmatpush3.bf16.msra.mxu1 %v7395_v48  ;;  %v7417_v48 = vld [vmem:[%s8783_s7 + $0xc8] sm:$0xff]  }
 0x556   : > { %6764 = vmatprep.subr.bf16.mxu1 %v7443_v10 }
 0x558   : > { %6729 = vmatmul.mubr.msk.bf16.gmra.mrb[4].mxu1 %vm4726_vm9, %v7386_v49  ;;  %v7424_v49 = vld [vmem:[%s8783_s7 + $0xe8] sm:$0xff]  }
 0x559   : > { %6732 = vmatprep.mubr.msk.bf16.mxu1 %vm7444_vm0, %v7443_v10  ;;  %6765 = vmatpush3.bf16.msra.mxu1 %v7396_v61 }
 0x55a   : > { %6766 = vmatprep.subr.bf16.mxu1 %v7443_v10 }
 0x55d   : > { %6767 = vmatpush3.bf16.msra.mxu1 %v7397_v63 }
 0x55e   : > { %6784 = vmatprep.subr.bf16.mxu1 %v7443_v10 }
 0x560   : > { %6733 = vmatmul.mubr.msk.bf16.gmra.mrb[8].mxu1 %vm4726_vm9, %v7387_v50 }
 0x561   : > { %6736 = vmatprep.mubr.msk.bf16.mxu1 %vm7444_vm0, %v7443_v10 }
 0x568   : > { %6737 = vmatmul.mubr.msk.bf16.gmra.mrb[12].mxu1 %vm4726_vm9, %v7388_v53 }
 0x569   : > { %6740 = vmatprep.mubr.msk.bf16.mxu1 %vm7444_vm0, %v7443_v10 }
 0x570   : > { %6741 = vmatmul.mubr.msk.bf16.gmra.mrb[16].mxu1 %vm4726_vm9, %v7389_v54  ;;  %v7419_v54 = vld [vmem:[%s8783_s7 + $0xd0] sm:$0xff]  }
 0x571   : > { %6744 = vmatprep.mubr.msk.bf16.mxu1 %vm7444_vm0, %v7443_v10 }
 0x578   : > { %6745 = vmatmul.mubr.msk.bf16.gmra.mrb[20].mxu1 %vm4726_vm9, %v7390_v55 }
 0x579   : > { %6748 = vmatprep.mubr.msk.bf16.mxu1 %vm7444_vm0, %v7443_v10 }
 0x580   : > { %6749 = vmatmul.mubr.msk.bf16.gmra.mrb[24].mxu1 %vm4726_vm9, %v7391_v56  ;;  %v7426_v56 = vld [vmem:[%s8783_s7 + $0xf0] sm:$0xff]  }
 0x581   : > { %6752 = vmatprep.mubr.msk.bf16.mxu1 %vm7444_vm0, %v7443_v10 }
 0x588   : > { %6753 = vmatmul.mubr.msk.bf16.gmra.mrb[28].mxu1 %vm4726_vm9, %v7392_v57 }
 0x589   : > { %6756 = vmatprep.mubr.msk.bf16.mxu1 %vm7444_vm0, %v7443_v10 }
 0x590   : > { %6757 = vmatmul.mubr.msk.bf16.gmra.mrb[32].mxu1 %vm4726_vm9, %v7393_v58 }
 0x591   : > { %6768 = vmatprep.mubr.msk.bf16.mxu1 %vm7444_vm0, %v7443_v10 }
 0x623   : > { %v4788_v0 = vpop.f32.mrb[0].mxu1 }
 0x624   : > { %v6726_v1 = vpop.f32.mrb[1].mxu1 }
 0x625   : > { %v4791_v2 = vpop.f32.mrb[2].mxu1 }
 0x626   : > { %v4859_v4 = vpack.c.bf16 %v4791_v2, %v4788_v0  ;;  %v6727_v5 = vpop.f32.mrb[3].mxu1  ;;  %v7425_v2 = vld [vmem:[%s8783_s7 + $0x108] sm:$0xff]  }
 0x627   : > { %v7427_v5 = vld [vmem:[%s8783_s7 + $0x110] sm:$0xff]  }
 0x628   : > { %6781 = vmatmul.mubr.msk.bf16.vlgmr.msra.gmra.mrb[72].mxu0 %vm4726_vm9, %v4859_v4 }
 0x629   : > { %6797 = vmatpush3.bf16.msra.mxu0 %v7406_v3  ;;  %6804 = vmatprep.mubr.msk.bf16.mxu0 %vm7444_vm0, %v7443_v10 }
 0x62a   : > { %6798 = vmatprep.subr.bf16.mxu0 %v7443_v10 }
 0x62b   : > { %v4796_v7 = vpop.f32.mrb[4].mxu1 }
 0x62c   : > { %v6730_v8 = vpop.f32.mrb[5].mxu1 }
 0x62d   : > { %v4799_v11 = vpop.f32.mrb[6].mxu1  ;;  %6799 = vmatpush3.bf16.msra.mxu0 %v7408_v6 }
 0x62e   : > { %v4860_v9 = vpack.c.bf16 %v4799_v11, %v4796_v7  ;;  %v6731_v44 = vpop.f32.mrb[7].mxu1  ;;  %6800 = vmatprep.subr.bf16.mxu0 %v7443_v10  ;;  %v7429_v11 = vld [vmem:[%s8783_s7 + $0x118] sm:$0xff]  }
 0x630   : > { %6769 = vmatmul.mubr.msk.bf16.vlgmr.msra.gmra.mrb[36].mxu1 %vm4726_vm9, %v4860_v9 }
 0x631   : > { %6785 = vmatpush3.bf16.msra.mxu1 %v7399_v51  ;;  %6792 = vmatprep.mubr.msk.bf16.mxu1 %vm7444_vm0, %v7443_v10 }
 0x632   : > { %6786 = vmatprep.subr.bf16.mxu1 %v7443_v10  ;;  %6801 = vmatpush3.bf16.msra.mxu0 %v7410_v12 }
 0x633   : > { %v4804_v16 = vpop.f32.mrb[8].mxu1  ;;  %6802 = vmatprep.subr.bf16.mxu0 %v7443_v10 }
 0x634   : > { %v6734_v18 = vpop.f32.mrb[9].mxu1 }
 0x635   : > { %6787 = vmatpush3.bf16.msra.mxu1 %v7401_v13  ;;  %v4807_v22 = vpop.f32.mrb[10].mxu1 }
 0x636   : > { %6788 = vmatprep.subr.bf16.mxu1 %v7443_v10  ;;  %v4861_v23 = vpack.c.bf16 %v4807_v22, %v4804_v16  ;;  %v6735_v25 = vpop.f32.mrb[11].mxu1  ;;  %6803 = vmatpush3.bf16.msra.mxu0 %v7412_v15 }
 0x637   : > { %6820 = vmatprep.subr.bf16.mxu0 %v7443_v10 }
 0x639   : > { %6789 = vmatpush3.bf16.msra.mxu1 %v7403_v20 }
 0x63a   : > { %6790 = vmatprep.subr.bf16.mxu1 %v7443_v10 }
 0x63b   : > { %v4812_v29 = vpop.f32.mrb[12].mxu1 }
 0x63c   : > { %v6738_v30 = vpop.f32.mrb[13].mxu1 }
 0x63d   : > { %6791 = vmatpush3.bf16.msra.mxu1 %v7405_v27  ;;  %v4815_v34 = vpop.f32.mrb[14].mxu1 }
 0x63e   : > { %6808 = vmatprep.subr.bf16.mxu1 %v7443_v10  ;;  %v4862_v17 = vpack.c.bf16 %v4815_v34, %v4812_v29  ;;  %v6739_v19 = vpop.f32.mrb[15].mxu1 }
 0x640   : > { %6793 = vmatmul.mubr.msk.bf16.vlgmr.msra.gmra.mrb[40].mxu1 %vm4726_vm9, %v4861_v23  ;;  %6805 = vmatmul.mubr.msk.bf16.vlgmr.msra.gmra.mrb[76].mxu0 %vm4726_vm9, %v4862_v17 }
 0x641   : > { %6809 = vmatpush3.bf16.msra.mxu1 %v7407_v32  ;;  %6821 = vmatpush3.bf16.msra.mxu0 %v7414_v14 }
 0x642   : > { %6810 = vmatprep.subr.bf16.mxu1 %v7443_v10  ;;  %6816 = vmatprep.mubr.msk.bf16.mxu1 %vm7444_vm0, %v7443_v10 }
 0x643   : > { %v4820_v26 = vpop.f32.mrb[16].mxu1  ;;  %6822 = vmatprep.subr.bf16.mxu0 %v7443_v10  ;;  %6828 = vmatprep.mubr.msk.bf16.mxu0 %vm7444_vm0, %v7443_v10 }
 0x644   : > { %v6742_v35 = vpop.f32.mrb[17].mxu1 }
 0x645   : > { %6811 = vmatpush3.bf16.msra.mxu1 %v7409_v21  ;;  %v4823_v37 = vpop.f32.mrb[18].mxu1  ;;  %6823 = vmatpush3.bf16.msra.mxu0 %v7416_v24 }
 0x646   : > { %6812 = vmatprep.subr.bf16.mxu1 %v7443_v10  ;;  %v4863_v28 = vpack.c.bf16 %v4823_v37, %v4820_v26  ;;  %6824 = vmatprep.subr.bf16.mxu0 %v7443_v10  ;;  %v6743_v31 = vpop.f32.mrb[19].mxu1 }
 0x649   : > { %6813 = vmatpush3.bf16.msra.mxu1 %v7411_v36  ;;  %6825 = vmatpush3.bf16.msra.mxu0 %v7418_v38 }
 0x64a   : > { %6814 = vmatprep.subr.bf16.mxu1 %v7443_v10  ;;  %6826 = vmatprep.subr.bf16.mxu0 %v7443_v10 }
 0x64b   : > { %v4828_v40 = vpop.f32.mrb[20].mxu1 }
 0x64c   : > { %v6746_v41 = vpop.f32.mrb[21].mxu1 }
 0x64d   : > { %6815 = vmatpush3.bf16.msra.mxu1 %v7413_v33  ;;  %v4831_v43 = vpop.f32.mrb[22].mxu1  ;;  %6827 = vmatpush3.bf16.msra.mxu0 %v7420_v39 }
 0x64e   : > { %6832 = vmatprep.subr.bf16.mxu1 %v7443_v10  ;;  %v4864_v46 = vpack.c.bf16 %v4831_v43, %v4828_v40  ;;  %v6747_v47 = vpop.f32.mrb[23].mxu1  ;;  %6844 = vmatprep.subr.bf16.mxu0 %v7443_v10 }
 0x650   : > { %6817 = vmatmul.mubr.msk.bf16.vlgmr.msra.gmra.mrb[44].mxu1 %vm4726_vm9, %v4863_v28  ;;  %6829 = vmatmul.mubr.msk.bf16.vlgmr.msra.gmra.mrb[80].mxu0 %vm4726_vm9, %v4864_v46 }
 0x651   : > { %6833 = vmatpush3.bf16.msra.mxu1 %v7415_v42  ;;  %6845 = vmatpush3.bf16.msra.mxu0 %v7422_v45 }
 0x652   : > { %6834 = vmatprep.subr.bf16.mxu1 %v7443_v10  ;;  %6840 = vmatprep.mubr.msk.bf16.mxu1 %vm7444_vm0, %v7443_v10 }
 0x653   : > { %v4836_v50 = vpop.f32.mrb[24].mxu1  ;;  %6846 = vmatprep.subr.bf16.mxu0 %v7443_v10  ;;  %6852 = vmatprep.mubr.msk.bf16.mxu0 %vm7444_vm0, %v7443_v10 }
 0x654   : > { %v6750_v53 = vpop.f32.mrb[25].mxu1 }
 0x655   : > { %6835 = vmatpush3.bf16.msra.mxu1 %v7417_v48  ;;  %v4839_v55 = vpop.f32.mrb[26].mxu1  ;;  %6847 = vmatpush3.bf16.msra.mxu0 %v7424_v49 }
 0x656   : > { %6836 = vmatprep.subr.bf16.mxu1 %v7443_v10  ;;  %v4865_v57 = vpack.c.bf16 %v4839_v55, %v4836_v50  ;;  %v6751_v58 = vpop.f32.mrb[27].mxu1  ;;  %6848 = vmatprep.subr.bf16.mxu0 %v7443_v10 }
 0x659   : > { %6837 = vmatpush3.bf16.msra.mxu1 %v7419_v54  ;;  %6849 = vmatpush3.bf16.msra.mxu0 %v7426_v56 }
 0x65a   : > { %6838 = vmatprep.subr.bf16.mxu1 %v7443_v10  ;;  %6850 = vmatprep.subr.bf16.mxu0 %v7443_v10 }
 0x65b   : > { %v4844_v60 = vpop.f32.mrb[28].mxu1 }
 0x65c   : > { %v6754_v61 = vpop.f32.mrb[29].mxu1 }
 0x65d   : > { %6839 = vmatpush3.bf16.msra.mxu1 %v7421_v52  ;;  %v4847_v63 = vpop.f32.mrb[30].mxu1  ;;  %6851 = vmatpush3.bf16.msra.mxu0 %v7428_v59 }
 0x65e   : > { %6856 = vmatprep.subr.bf16.mxu1 %v7443_v10  ;;  %v4866_v0 = vpack.c.bf16 %v4847_v63, %v4844_v60  ;;  %v6755_v1 = vpop.f32.mrb[31].mxu1 }
 0x65f   : > { %v1467_v1 = vld [vmem:[%s8785_s9] sm:$0xff] }
 0x660   : > { %6841 = vmatmul.mubr.msk.bf16.vlgmr.msra.gmra.mrb[48].mxu1 %vm4726_vm9, %v4865_v57  ;;  %6853 = vmatmul.mubr.msk.bf16.vlgmr.msra.gmra.mrb[84].mxu0 %vm4726_vm9, %v4866_v0  ;;  %v5966_v57 = vld [vmem:[%s8784_s8] ss:$0 sm:$0xff] }
 0x661   : > { %6857 = vmatpush3.bf16.msra.mxu1 %v7423_v62  ;;  %6864 = vmatprep.mubr.msk.bf16.mxu1 %vm7444_vm0, %v7443_v10 }
 0x662   : > { %6858 = vmatprep.subr.bf16.mxu1 %v7443_v10 }
 0x663   : > { %v4852_v3 = vpop.f32.mrb[32].mxu1 }
 0x664   : > { %v6758_v4 = vpop.f32.mrb[33].mxu1 }
 0x665   : > { %6859 = vmatpush3.bf16.msra.mxu1 %v7425_v2  ;;  %v4855_v6 = vpop.f32.mrb[34].mxu1 }
 0x666   : > { %6860 = vmatprep.subr.bf16.mxu1 %v7443_v10  ;;  %v4867_v7 = vpack.c.bf16 %v4855_v6, %v4852_v3  ;;  %v6759_v8 = vpop.f32.mrb[35].mxu1  ;;  %v1468_v6 = vld [vmem:[%s8785_s9 + $0x8] sm:$0xff] }
 0x669   : > { %6861 = vmatpush3.bf16.msra.mxu1 %v7427_v5 }
 0x66a   : > { %6862 = vmatprep.subr.bf16.mxu1 %v7443_v10 }
 0x66d   : > { %6863 = vmatpush3.bf16.msra.mxu1 %v7429_v11 }
 0x670   : > { %6865 = vmatmul.mubr.msk.bf16.vlgmr.msra.gmra.mrb[52].mxu1 %vm4726_vm9, %v4867_v7 }
 0x6fb   : > { %v4997_v51 = vpop.f32.mrb[72].mxu0 }
 0x6fc   : > { %v6782_v9 = vpop.f32.mrb[73].mxu0 }
 0x6fd   : > { %v5000_v44 = vpop.f32.mrb[74].mxu0 }
 0x6fe   : > { %v6783_v12 = vpop.f32.mrb[75].mxu0 }
 0x703   : > { %v4929_v13 = vpop.f32.mrb[36].mxu1 }
 0x704   : > { %v6770_v15 = vpop.f32.mrb[37].mxu1  ;;  %v4998_v16 = vadd.f32 %v4997_v51, %v4929_v13 }
 0x705   : > { %v4932_v18 = vpop.f32.mrb[38].mxu1 }
 0x706   : > { %v6771_v20 = vpop.f32.mrb[39].mxu1  ;;  %v5001_v22 = vadd.f32 %v5000_v44, %v4932_v18  ;;  %v1469_v18 = vld [vmem:[#allocation2] sm:$0x1] }
 0x713   : > { %v5065_v23 = vpop.f32.mrb[40].mxu1  ;;  %v5135_v25 = vpop.f32.mrb[76].mxu0 }
 0x714   : > { %v5072_v27 = vadd.f32 %v5065_v23, %v4998_v16  ;;  %v6794_v29 = vpop.f32.mrb[41].mxu1  ;;  %v6806_v30 = vpop.f32.mrb[77].mxu0 }
 0x715   : > { %v5068_v32 = vpop.f32.mrb[42].mxu1  ;;  %v5138_v10 = vpop.f32.mrb[78].mxu0 }
 0x716   : > { %v5073_v34 = vadd.f32 %v5068_v32, %v5001_v22  ;;  %v5142_v14 = vadd.f32 %v5135_v25, %v5072_v27  ;;  %v6795_v17 = vpop.f32.mrb[43].mxu1  ;;  %v6807_v19 = vpop.f32.mrb[79].mxu0 }
 0x718   : > { %v5143_v21 = vadd.f32 %v5138_v10, %v5073_v34 }
 0x723   : > { %v5205_v24 = vpop.f32.mrb[44].mxu1  ;;  %v5275_v26 = vpop.f32.mrb[80].mxu0 }
 0x724   : > { %v5212_v35 = vadd.f32 %v5205_v24, %v5142_v14  ;;  %v6818_v36 = vpop.f32.mrb[45].mxu1  ;;  %v6830_v37 = vpop.f32.mrb[81].mxu0  ;;  %v5537_v14 = vlaneseq }
 0x725   : > { %v5208_v38 = vpop.f32.mrb[46].mxu1  ;;  %v5278_v28 = vpop.f32.mrb[82].mxu0 }
 0x726   : > { %v5213_v31 = vadd.f32 %v5208_v38, %v5143_v21  ;;  %v5282_v33 = vadd.f32 %v5275_v26, %v5212_v35  ;;  %v6819_v39 = vpop.f32.mrb[47].mxu1  ;;  %v6831_v40 = vpop.f32.mrb[83].mxu0  ;;  %v5538_v17 = vshrl.u32 %v5537_v14, 7 }
 0x728   : > { %v5283_v41 = vadd.f32 %v5278_v28, %v5213_v31  ;;  %v5539_v19 = vsub.s32 0, %v5538_v17 }
 0x733   : > { %v5345_v42 = vpop.f32.mrb[48].mxu1  ;;  %v5415_v43 = vpop.f32.mrb[84].mxu0 }
 0x734   : > { %v5352_v45 = vadd.f32 %v5345_v42, %v5282_v33  ;;  %v6842_v46 = vpop.f32.mrb[49].mxu1  ;;  %v6854_v47 = vpop.f32.mrb[85].mxu0 }
 0x735   : > { %v5348_v48 = vpop.f32.mrb[50].mxu1  ;;  %v5418_v49 = vpop.f32.mrb[86].mxu0 }
 0x736   : > { %v5353_v50 = vadd.f32 %v5348_v48, %v5283_v41  ;;  %v5422_v53 = vadd.f32 %v5415_v43, %v5352_v45  ;;  %v6843_v54 = vpop.f32.mrb[51].mxu1  ;;  %v6855_v55 = vpop.f32.mrb[87].mxu0 }
 0x738   : > { %v5423_v56 = vadd.f32 %v5418_v49, %v5353_v50 }
 0x743   : > { %v5485_v58 = vpop.f32.mrb[52].mxu1 }
 0x744   : > { %v5492_v52 = vadd.f32 %v5485_v58, %v5422_v53  ;;  %v6866_v59 = vpop.f32.mrb[53].mxu1 }
 0x745   : > { %v5488_v60 = vpop.f32.mrb[54].mxu1 }
 0x746   : > { %v5500_v61 = vadd.f32 %v5966_v57, %v5492_v52  ;;  %v5493_v62 = vadd.f32 %v5488_v60, %v5423_v56  ;;  %v6867_v63 = vpop.f32.mrb[55].mxu1 }
 0x748   : > { %v5501_v0 = vadd.f32 %v5966_v57, %v5493_v62  ;;  %vm5502_vm10 = vcmp.gt.f32.partialorder %v5500_v61, 0.0  ;;  %v5504_v2 = vmul.f32 0.01, %v5500_v61 }
 0x74a   : > { %v5506_v3 = vsel %vm5502_vm10, %v5500_v61, %v5504_v2  ;;  %vm5503_vm11 = vcmp.gt.f32.partialorder %v5501_v0, 0.0  ;;  %v5505_v4 = vmul.f32 0.01, %v5501_v0 }
 0x74b   : > { %v5508_v5 = vmul.f32 %v5506_v3, %v1467_v1 }
 0x74c   : > { %v5507_v7 = vsel %vm5503_vm11, %v5501_v0, %v5505_v4 }
 0x74d   : > { %5510 = vadd.xlane.f32.xlu0 %v5508_v5  ;;  %v5509_v8 = vmul.f32 %v5507_v7, %v1468_v6 }
 0x751   : > { %5512 = vadd.xlane.f32.xlu0 %v5509_v8 }
 0x7da   : > { %v5511_v11 = vpop.xlane.xlu0 %5510 }
 0x7de   : > { %v5513_v51 = vpop.xlane.xlu0 %5512 }
 0x7df   : > { %v5514_v9 = vadd.f32 %v5513_v51, %v5511_v11 }
 0x7e1   : > { %v5515_v44 = vrot.slane %v5514_v9, 4 }
 0x7e3   : > { %v5516_v12 = vadd.f32 %v5515_v44, %v5514_v9 }
 0x7e5   : > { %v5517_v13 = vrot.slane %v5516_v12, 2 }
 0x7e7   : > { %v5518_v15 = vadd.f32 %v5517_v13, %v5516_v12 }
 0x7e9   : > { %v5519_v16 = vrot.slane %v5518_v15, 1 }
 0x7eb   : > { %v5520_v20 = vadd.f32 %v5519_v16, %v5518_v15 }
 0x7ed   : > { %v5521_v22 = vadd.f32 %v5520_v20, %v1469_v18 }
 0x7ef   : > { %v5522_v23 = vand.u32 2147483647, %v5521_v22  ;;  %vm5526_vm12 = vcmp.ge.f32.partialorder %v5521_v22, 0.0 }
 0x7f1   : > { %v5523_v25 = vsub.f32 0.0, %v5522_v23 }
 0x7f3   : > { %v5524_v27 = vmul.f32 1.442695, %v5523_v25 }
 0x7f5   : > { %7430 = vpow2.f32 %v5524_v27 }
 0x7ff   : > { %v7431_v29 = vpop.eup %7430 }
 0x800   : > { %v5527_v30 = vadd.f32 1.0, %v7431_v29 }
 0x802   : > { %7432 = vrcp.f32 %v5527_v30 }
 0x80c   : > { %v7433_v32 = vpop.eup %7432 }
 0x80d   : > { %v5530_v10 = vmul.f32 %v7433_v32, %v7431_v29 }
 0x80f   : > { %v5531_v34 = vsel %vm5526_vm12, %v7433_v32, %v5530_v10 }
 0x810   : > { %5534 = vperm.xlu1 %6999, %v5531_v34  }
 0x88f   : > { %v5535_v21 = vpop.permute.xlu1 %5534 }
 0x890   : > { %v5540_v24 = vrot.slane %v5535_v21, %v5539_v19 }
 0x892   : > { %5541 = vst [vmem:[%s389_s24] sm:$0x1] %v5540_v24 }
 0x893 PF: > { %s23_s19 = sadd.s32 1, %s7440_s19  }
 0x894   : > { %p20_p5 = scmp.ge.s32.totalorder %s23_s19, 4  }
 0x896   :  { %22 = sbr.rel (!%p20_p5) target bundleno = 3 (0x3), region = 94 }

</bundles_post_ra>
